<compile_context>
chip_gen: v7x
topology: tpu7x:2x2x1
jax: 0.10.0
libtpu: 0.0.40
codegen_flags: <defaults>
</compile_context>

<pallas_src>
import functools
import math

import jax
import jax.numpy as jnp
from jax.experimental import pallas as pl

KH = KW = 5        # conv1 kernel size
POOL = 5           # MaxPool2d(5), stride 5, floor mode
SPP_LEVELS = 4     # SPPLayer(num_levels=4, pool_type='max')
KPAD = 128         # padded contraction dim for the conv matmul (75 -> 128)


# --------------------------------------------------------------------------
# Fused Pallas kernel: conv + bias + ReLU + maxpool + SPP + FC
# --------------------------------------------------------------------------

def _fused_kernel(patches_ref, wc_ref, cb_ref, wall_ref, fcb_ref, o_ref, *,
                  num_windows, tokens):
    """patches_ref: (num_windows, 16*tokens, KPAD) im2col patches; window axis
         enumerates the POOL^2 offsets inside a pooling window, rows are
         ordered (position p, token t) with p = (lh, lw, ih, iw).
       wc_ref: (KPAD, c1) conv weight (zero-padded rows).
       cb_ref: (1, c1) conv bias.
       wall_ref: (21*c1, out) folded fc weight: rows [L1 | L2 g0..g3 | p0..p15].
       fcb_ref: (1, out) fc bias.   o_ref: (tokens, out)."""
    f32 = jnp.float32
    wc = wc_ref[...]

    # Conv2d + MaxPool2d fused: running elementwise max over the 25 window
    # offsets (maxpool commutes with the per-channel bias add and with ReLU).
    acc = jnp.dot(patches_ref[0], wc, preferred_element_type=f32)
    for w in range(1, num_windows):
        acc = jnp.maximum(
            acc, jnp.dot(patches_ref[w], wc, preferred_element_type=f32))
    pooled = jnp.maximum(acc + cb_ref[...], 0.0)     # (16*tokens, c1)

    c1 = cb_ref.shape[1]
    # Per-position (tokens, c1) slabs; slices are sublane-tile aligned because
    # `tokens` is a multiple of 8.
    slabs = [pooled[p * tokens:(p + 1) * tokens, :] for p in range(16)]
    # SPP level-2 (2x2) maxes: positions 4g..4g+3 share the same (lh, lw) cell.
    l2 = [functools.reduce(jnp.maximum, slabs[4 * g:4 * g + 4])
          for g in range(4)]
    # SPP level-1 (global) max.
    l1 = functools.reduce(jnp.maximum, l2)

    # FC: sum of per-slab matmuls against the pre-permuted / pre-folded weight
    # (level-4 + level-8 contributions share the p0..p15 slabs).
    wall = wall_ref[...]
    pieces = [l1] + l2 + slabs                       # 21 slabs of c1 lanes each
    out = jnp.dot(pieces[0], wall[0:c1, :], preferred_element_type=f32)
    for i in range(1, len(pieces)):
        out = out + jnp.dot(pieces[i], wall[i * c1:(i + 1) * c1, :],
                            preferred_element_type=f32)
    o_ref[...] = (out + fcb_ref[...]).astype(o_ref.dtype)


def fused_forward_call(patches, wc, conv_b, w_all, fc_b, tokens):
    win, rows, kpad = patches.shape
    c1 = wc.shape[1]
    out_dim = w_all.shape[1]
    assert rows == 16 * tokens and tokens % 8 == 0
    flops = 2 * win * rows * kpad * c1 + 2 * 21 * tokens * c1 * out_dim
    bytes_accessed = 4 * (patches.size + wc.size + conv_b.size + w_all.size
                          + fc_b.size + tokens * out_dim)
    return pl.pallas_call(
        functools.partial(_fused_kernel, num_windows=win, tokens=tokens),
        out_shape=jax.ShapeDtypeStruct((tokens, out_dim), patches.dtype),
        cost_estimate=pl.CostEstimate(flops=flops, transcendentals=0,
                                      bytes_accessed=bytes_accessed),
    )(patches, wc, conv_b.reshape(1, c1), w_all, fc_b.reshape(1, out_dim))


# --------------------------------------------------------------------------
# Trace-time glue: patch extraction, fc-weight permutation/folding
# --------------------------------------------------------------------------

def _build_patches(xt, kh, kw, pool):
    """xt: (Tp, H, W, C) -> (pool*pool, 16*Tp, KPAD).
    Axis 0 enumerates the offsets inside a pooling window; rows are ordered
    (p, t) with position p = (lh, lw, ih, iw) (ph = lh*2+ih, pw = lw*2+iw)."""
    Tp, H, W, C = xt.shape
    oh, ow = H - kh + 1, W - kw + 1
    cols = [xt[:, ki:ki + oh, kj:kj + ow, :]
            for ki in range(kh) for kj in range(kw)]
    K = kh * kw * C
    p = jnp.stack(cols, axis=3).reshape(Tp, oh, ow, K)   # (ki,kj,cin) order
    PH, PW = oh // pool, ow // pool                       # floor-mode MaxPool2d
    assert (PH, PW) == (4, 4), "fused SPP+FC epilogue assumes a 4x4 pooled map"
    p = p[:, :PH * pool, :PW * pool, :]
    # (t, lh, ih, wi, lw, iw, wj, K) -> (wi, wj, lh, lw, ih, iw, t, K)
    p = p.reshape(Tp, 2, 2, pool, 2, 2, pool, K)
    p = p.transpose(3, 6, 1, 4, 2, 5, 0, 7)
    p = p.reshape(pool * pool, PH * PW * Tp, K)
    assert K <= KPAD
    return jnp.pad(p, ((0, 0), (0, 0), (0, KPAD - K))), (PH, PW)


def _fold_fc_weights(fc_w, c1):
    """fc_w: (85*c1, out) in torch.flatten (channel-major per SPP level) order
    -> (21*c1, out) in the kernel's [L1 | L2 g0..g3 | p0..p15] lane-major
    (position, channel) order, with the level-4 and level-8 blocks folded."""
    o = fc_w.shape[1]
    assert fc_w.shape[0] == 85 * c1

    def to_p_order(w):                       # w: (c, ph, pw, o), ph/pw in 0..3
        w = w.reshape(c1, 2, 2, 2, 2, o)     # (c, lh, ih, lw, iw, o)
        return w.transpose(1, 3, 2, 4, 0, 5).reshape(16 * c1, o)

    w1 = fc_w[0:c1]                                             # level 1: (c,)
    w2 = fc_w[c1:5 * c1].reshape(c1, 2, 2, o)                   # (c, lh, lw)
    w2 = w2.transpose(1, 2, 0, 3).reshape(4 * c1, o)            # (lh, lw, c)
    w4 = fc_w[5 * c1:21 * c1].reshape(c1, 4, 4, o)              # (c, ph, pw)
    # level 8: 1x1 max-pool over the zero-padded 8x8 map; the real 4x4 map sits
    # at rows/cols [2:6], padded positions contribute exact zeros -> drop them.
    w8 = fc_w[21 * c1:85 * c1].reshape(c1, 8, 8, o)[:, 2:6, 2:6, :]
    w48 = to_p_order(w4) + to_p_order(w8)
    return jnp.concatenate([w1, w2, w48], axis=0)               # (21*c1, o)


# --------------------------------------------------------------------------
# Model
# --------------------------------------------------------------------------

def init_params(key, output_size):
    k1, k2, k3, k4 = jax.random.split(key, 4)
    # conv1 weight: torch (16,3,5,5) stored as (kh,kw,cin,cout) = (5,5,3,16)
    conv_w = jax.random.normal(k1, (KH, KW, 3, 16), jnp.float32) * 0.05
    conv_b = jax.random.normal(k2, (16,), jnp.float32) * 0.05
    # fc weight: torch (out,1360) stored transposed as (1360,out)
    fc_w = jax.random.normal(k3, (1360, output_size), jnp.float32) * 0.02
    fc_b = jax.random.normal(k4, (output_size,), jnp.float32) * 0.02
    return conv_w, conv_b, fc_w, fc_b


def cnn_embedding_forward(x, params):
    """x: (b, l, H, W, 3) float32.  Returns (b, l, outputSize)."""
    conv_w, conv_b, fc_w, fc_b = params
    b, l, H, W, cin = x.shape
    c1 = conv_b.shape[0]
    out_dim = fc_w.shape[1]
    T = b * l
    Tp = ((T + 7) // 8) * 8                      # sublane-aligned token count
    xt = x.reshape(T, H, W, cin)
    if Tp != T:
        xt = jnp.pad(xt, ((0, Tp - T), (0, 0), (0, 0), (0, 0)))

    patches, _ = _build_patches(xt, KH, KW, POOL)
    wc = jnp.pad(conv_w.reshape(KH * KW * cin, c1),
                 ((0, KPAD - KH * KW * cin), (0, 0)))
    w_all = _fold_fc_weights(fc_w, c1)

    out = fused_forward_call(patches, wc, conv_b, w_all, fc_b, Tp)
    return out[:T].reshape(b, l, out_dim)


# --------------------------------------------------------------------------
# Pure-JAX reference (follows the PyTorch module op-for-op: torch flatten
# order, separate SPP levels, un-folded fc weight)
# --------------------------------------------------------------------------

def reference_forward(x, params):
    conv_w, conv_b, fc_w, fc_b = params
    b, l, H, W, cin = x.shape
    c1 = conv_b.shape[0]
    T = b * l
    xt = x.reshape(T, H, W, cin)
    oh, ow = H - KH + 1, W - KW + 1
    cols = [xt[:, ki:ki + oh, kj:kj + ow, :]
            for ki in range(KH) for kj in range(KW)]
    pat = jnp.stack(cols, axis=3).reshape(T, oh, ow, KH * KW * cin)
    conv = jnp.einsum('thwk,kc->thwc', pat, conv_w.reshape(KH * KW * cin, c1),
                      precision=jax.lax.Precision.HIGHEST) + conv_b
    act = jnp.maximum(conv, 0.0)
    PH, PW = oh // POOL, ow // POOL
    act = act[:, :PH * POOL, :PW * POOL, :].reshape(T, PH, POOL, PW, POOL, c1)
    pooled = act.max(axis=(2, 4))                          # (T, PH, PW, c1)
    feats = []
    for i in range(SPP_LEVELS):                            # SPPLayer(4, 'max')
        level = 2 ** i
        hk, wk = math.ceil(PH / level), math.ceil(PW / level)
        hp, wp = hk * level - PH, wk * level - PW
        padded = jnp.pad(pooled, ((0, 0), (hp // 2, hp - hp // 2),
                                  (wp // 2, wp - wp // 2), (0, 0)))
        v = padded.reshape(T, level, hk, level, wk, c1).max(axis=(2, 4))
        feats.append(v.transpose(0, 3, 1, 2).reshape(T, c1 * level * level))
    feats = jnp.concatenate(feats, axis=-1)                # (T, 1360)
    out = jnp.dot(feats, fc_w, precision=jax.lax.Precision.HIGHEST) + fc_b
    return out.reshape(b, l, -1)


# --------------------------------------------------------------------------
# Main
# --------------------------------------------------------------------------

if __name__ == "__main__":
    key = jax.random.PRNGKey(0)
    kx, kp = jax.random.split(key)

    b, l, H, W = 2, 3, 24, 24          # conv -> 20x20, maxpool5 -> 4x4, SPP -> 1360
    output_size = 32
    x = jax.random.normal(kx, (b, l, H, W, 3), jnp.float32)
    params = init_params(kp, output_size)

    fwd = jax.jit(cnn_embedding_forward)
    out = jax.block_until_ready(fwd(x, params))

    ref = reference_forward(x, params)
    assert out.shape == (b, l, output_size), out.shape
    max_err = float(jnp.max(jnp.abs(out - ref)))
    assert jnp.allclose(out, ref, atol=1e-4, rtol=1e-4), max_err

    print("KERNEL_OK")
</pallas_src>

<mosaic_0001>
module attributes {stable_mosaic.version = 11 : i64} {
  func.func @_fused_kernel(%arg0: memref<25x128x128xf32, #tpu.memory_space<vmem>>, %arg1: memref<128x16xf32, #tpu.memory_space<vmem>>, %arg2: memref<1x16xf32, #tpu.memory_space<vmem>>, %arg3: memref<336x32xf32, #tpu.memory_space<vmem>>, %arg4: memref<1x32xf32, #tpu.memory_space<vmem>>, %arg5: memref<8x32xf32, #tpu.memory_space<vmem>>) attributes {dimension_semantics = [], scalar_prefetch = 0 : i64, scratch_operands = 0 : i64, tpu.core_type = #tpu.core_type<tc>} {
    %c0 = arith.constant 0 : index
    %c0_0 = arith.constant 0 : index
    %0 = vector.load %arg1[%c0, %c0_0] : memref<128x16xf32, #tpu.memory_space<vmem>>, vector<128x16xf32>
    %c0_1 = arith.constant 0 : index
    %c0_2 = arith.constant 0 : index
    %c0_3 = arith.constant 0 : index
    %1 = vector.load %arg0[%c0_1, %c0_2, %c0_3] : memref<25x128x128xf32, #tpu.memory_space<vmem>>, vector<1x128x128xf32>
    %2 = vector.shape_cast %1 : vector<1x128x128xf32> to vector<128x128xf32>
    %cst = arith.constant dense<0.000000e+00> : vector<128x16xf32>
    %3 = tpu.matmul %2, %0, %cst {dimension_numbers = #tpu.dot_dimension_numbers<[1], [0], [0], [1], [0, 0, 1, 1], [], []>} : vector<128x128xf32>, vector<128x16xf32>, vector<128x16xf32> -> vector<128x16xf32>
    %c1 = arith.constant 1 : index
    %c0_4 = arith.constant 0 : index
    %c0_5 = arith.constant 0 : index
    %4 = vector.load %arg0[%c1, %c0_4, %c0_5] : memref<25x128x128xf32, #tpu.memory_space<vmem>>, vector<1x128x128xf32>
    %5 = vector.shape_cast %4 : vector<1x128x128xf32> to vector<128x128xf32>
    %cst_6 = arith.constant dense<0.000000e+00> : vector<128x16xf32>
    %6 = tpu.matmul %5, %0, %cst_6 {dimension_numbers = #tpu.dot_dimension_numbers<[1], [0], [0], [1], [0, 0, 1, 1], [], []>} : vector<128x128xf32>, vector<128x16xf32>, vector<128x16xf32> -> vector<128x16xf32>
    %7 = arith.maximumf %3, %6 : vector<128x16xf32>
    %c2 = arith.constant 2 : index
    %c0_7 = arith.constant 0 : index
    %c0_8 = arith.constant 0 : index
    %8 = vector.load %arg0[%c2, %c0_7, %c0_8] : memref<25x128x128xf32, #tpu.memory_space<vmem>>, vector<1x128x128xf32>
    %9 = vector.shape_cast %8 : vector<1x128x128xf32> to vector<128x128xf32>
    %cst_9 = arith.constant dense<0.000000e+00> : vector<128x16xf32>
    %10 = tpu.matmul %9, %0, %cst_9 {dimension_numbers = #tpu.dot_dimension_numbers<[1], [0], [0], [1], [0, 0, 1, 1], [], []>} : vector<128x128xf32>, vector<128x16xf32>, vector<128x16xf32> -> vector<128x16xf32>
    %11 = arith.maximumf %7, %10 : vector<128x16xf32>
    %c3 = arith.constant 3 : index
    %c0_10 = arith.constant 0 : index
    %c0_11 = arith.constant 0 : index
    %12 = vector.load %arg0[%c3, %c0_10, %c0_11] : memref<25x128x128xf32, #tpu.memory_space<vmem>>, vector<1x128x128xf32>
    %13 = vector.shape_cast %12 : vector<1x128x128xf32> to vector<128x128xf32>
    %cst_12 = arith.constant dense<0.000000e+00> : vector<128x16xf32>
    %14 = tpu.matmul %13, %0, %cst_12 {dimension_numbers = #tpu.dot_dimension_numbers<[1], [0], [0], [1], [0, 0, 1, 1], [], []>} : vector<128x128xf32>, vector<128x16xf32>, vector<128x16xf32> -> vector<128x16xf32>
    %15 = arith.maximumf %11, %14 : vector<128x16xf32>
    %c4 = arith.constant 4 : index
    %c0_13 = arith.constant 0 : index
    %c0_14 = arith.constant 0 : index
    %16 = vector.load %arg0[%c4, %c0_13, %c0_14] : memref<25x128x128xf32, #tpu.memory_space<vmem>>, vector<1x128x128xf32>
    %17 = vector.shape_cast %16 : vector<1x128x128xf32> to vector<128x128xf32>
    %cst_15 = arith.constant dense<0.000000e+00> : vector<128x16xf32>
    %18 = tpu.matmul %17, %0, %cst_15 {dimension_numbers = #tpu.dot_dimension_numbers<[1], [0], [0], [1], [0, 0, 1, 1], [], []>} : vector<128x128xf32>, vector<128x16xf32>, vector<128x16xf32> -> vector<128x16xf32>
    %19 = arith.maximumf %15, %18 : vector<128x16xf32>
    %c5 = arith.constant 5 : index
    %c0_16 = arith.constant 0 : index
    %c0_17 = arith.constant 0 : index
    %20 = vector.load %arg0[%c5, %c0_16, %c0_17] : memref<25x128x128xf32, #tpu.memory_space<vmem>>, vector<1x128x128xf32>
    %21 = vector.shape_cast %20 : vector<1x128x128xf32> to vector<128x128xf32>
    %cst_18 = arith.constant dense<0.000000e+00> : vector<128x16xf32>
    %22 = tpu.matmul %21, %0, %cst_18 {dimension_numbers = #tpu.dot_dimension_numbers<[1], [0], [0], [1], [0, 0, 1, 1], [], []>} : vector<128x128xf32>, vector<128x16xf32>, vector<128x16xf32> -> vector<128x16xf32>
    %23 = arith.maximumf %19, %22 : vector<128x16xf32>
    %c6 = arith.constant 6 : index
    %c0_19 = arith.constant 0 : index
    %c0_20 = arith.constant 0 : index
    %24 = vector.load %arg0[%c6, %c0_19, %c0_20] : memref<25x128x128xf32, #tpu.memory_space<vmem>>, vector<1x128x128xf32>
    %25 = vector.shape_cast %24 : vector<1x128x128xf32> to vector<128x128xf32>
    %cst_21 = arith.constant dense<0.000000e+00> : vector<128x16xf32>
    %26 = tpu.matmul %25, %0, %cst_21 {dimension_numbers = #tpu.dot_dimension_numbers<[1], [0], [0], [1], [0, 0, 1, 1], [], []>} : vector<128x128xf32>, vector<128x16xf32>, vector<128x16xf32> -> vector<128x16xf32>
    %27 = arith.maximumf %23, %26 : vector<128x16xf32>
    %c7 = arith.constant 7 : index
    %c0_22 = arith.constant 0 : index
    %c0_23 = arith.constant 0 : index
    %28 = vector.load %arg0[%c7, %c0_22, %c0_23] : memref<25x128x128xf32, #tpu.memory_space<vmem>>, vector<1x128x128xf32>
    %29 = vector.shape_cast %28 : vector<1x128x128xf32> to vector<128x128xf32>
    %cst_24 = arith.constant dense<0.000000e+00> : vector<128x16xf32>
    %30 = tpu.matmul %29, %0, %cst_24 {dimension_numbers = #tpu.dot_dimension_numbers<[1], [0], [0], [1], [0, 0, 1, 1], [], []>} : vector<128x128xf32>, vector<128x16xf32>, vector<128x16xf32> -> vector<128x16xf32>
    %31 = arith.maximumf %27, %30 : vector<128x16xf32>
    %c8 = arith.constant 8 : index
    %c0_25 = arith.constant 0 : index
    %c0_26 = arith.constant 0 : index
    %32 = vector.load %arg0[%c8, %c0_25, %c0_26] : memref<25x128x128xf32, #tpu.memory_space<vmem>>, vector<1x128x128xf32>
    %33 = vector.shape_cast %32 : vector<1x128x128xf32> to vector<128x128xf32>
    %cst_27 = arith.constant dense<0.000000e+00> : vector<128x16xf32>
    %34 = tpu.matmul %33, %0, %cst_27 {dimension_numbers = #tpu.dot_dimension_numbers<[1], [0], [0], [1], [0, 0, 1, 1], [], []>} : vector<128x128xf32>, vector<128x16xf32>, vector<128x16xf32> -> vector<128x16xf32>
    %35 = arith.maximumf %31, %34 : vector<128x16xf32>
    %c9 = arith.constant 9 : index
    %c0_28 = arith.constant 0 : index
    %c0_29 = arith.constant 0 : index
    %36 = vector.load %arg0[%c9, %c0_28, %c0_29] : memref<25x128x128xf32, #tpu.memory_space<vmem>>, vector<1x128x128xf32>
    %37 = vector.shape_cast %36 : vector<1x128x128xf32> to vector<128x128xf32>
    %cst_30 = arith.constant dense<0.000000e+00> : vector<128x16xf32>
    %38 = tpu.matmul %37, %0, %cst_30 {dimension_numbers = #tpu.dot_dimension_numbers<[1], [0], [0], [1], [0, 0, 1, 1], [], []>} : vector<128x128xf32>, vector<128x16xf32>, vector<128x16xf32> -> vector<128x16xf32>
    %39 = arith.maximumf %35, %38 : vector<128x16xf32>
    %c10 = arith.constant 10 : index
    %c0_31 = arith.constant 0 : index
    %c0_32 = arith.constant 0 : index
    %40 = vector.load %arg0[%c10, %c0_31, %c0_32] : memref<25x128x128xf32, #tpu.memory_space<vmem>>, vector<1x128x128xf32>
    %41 = vector.shape_cast %40 : vector<1x128x128xf32> to vector<128x128xf32>
    %cst_33 = arith.constant dense<0.000000e+00> : vector<128x16xf32>
    %42 = tpu.matmul %41, %0, %cst_33 {dimension_numbers = #tpu.dot_dimension_numbers<[1], [0], [0], [1], [0, 0, 1, 1], [], []>} : vector<128x128xf32>, vector<128x16xf32>, vector<128x16xf32> -> vector<128x16xf32>
    %43 = arith.maximumf %39, %42 : vector<128x16xf32>
    %c11 = arith.constant 11 : index
    %c0_34 = arith.constant 0 : index
    %c0_35 = arith.constant 0 : index
    %44 = vector.load %arg0[%c11, %c0_34, %c0_35] : memref<25x128x128xf32, #tpu.memory_space<vmem>>, vector<1x128x128xf32>
    %45 = vector.shape_cast %44 : vector<1x128x128xf32> to vector<128x128xf32>
    %cst_36 = arith.constant dense<0.000000e+00> : vector<128x16xf32>
    %46 = tpu.matmul %45, %0, %cst_36 {dimension_numbers = #tpu.dot_dimension_numbers<[1], [0], [0], [1], [0, 0, 1, 1], [], []>} : vector<128x128xf32>, vector<128x16xf32>, vector<128x16xf32> -> vector<128x16xf32>
    %47 = arith.maximumf %43, %46 : vector<128x16xf32>
    %c12 = arith.constant 12 : index
    %c0_37 = arith.constant 0 : index
    %c0_38 = arith.constant 0 : index
    %48 = vector.load %arg0[%c12, %c0_37, %c0_38] : memref<25x128x128xf32, #tpu.memory_space<vmem>>, vector<1x128x128xf32>
    %49 = vector.shape_cast %48 : vector<1x128x128xf32> to vector<128x128xf32>
    %cst_39 = arith.constant dense<0.000000e+00> : vector<128x16xf32>
    %50 = tpu.matmul %49, %0, %cst_39 {dimension_numbers = #tpu.dot_dimension_numbers<[1], [0], [0], [1], [0, 0, 1, 1], [], []>} : vector<128x128xf32>, vector<128x16xf32>, vector<128x16xf32> -> vector<128x16xf32>
    %51 = arith.maximumf %47, %50 : vector<128x16xf32>
    %c13 = arith.constant 13 : index
    %c0_40 = arith.constant 0 : index
    %c0_41 = arith.constant 0 : index
    %52 = vector.load %arg0[%c13, %c0_40, %c0_41] : memref<25x128x128xf32, #tpu.memory_space<vmem>>, vector<1x128x128xf32>
    %53 = vector.shape_cast %52 : vector<1x128x128xf32> to vector<128x128xf32>
    %cst_42 = arith.constant dense<0.000000e+00> : vector<128x16xf32>
    %54 = tpu.matmul %53, %0, %cst_42 {dimension_numbers = #tpu.dot_dimension_numbers<[1], [0], [0], [1], [0, 0, 1, 1], [], []>} : vector<128x128xf32>, vector<128x16xf32>, vector<128x16xf32> -> vector<128x16xf32>
    %55 = arith.maximumf %51, %54 : vector<128x16xf32>
    %c14 = arith.constant 14 : index
    %c0_43 = arith.constant 0 : index
    %c0_44 = arith.constant 0 : index
    %56 = vector.load %arg0[%c14, %c0_43, %c0_44] : memref<25x128x128xf32, #tpu.memory_space<vmem>>, vector<1x128x128xf32>
    %57 = vector.shape_cast %56 : vector<1x128x128xf32> to vector<128x128xf32>
    %cst_45 = arith.constant dense<0.000000e+00> : vector<128x16xf32>
    %58 = tpu.matmul %57, %0, %cst_45 {dimension_numbers = #tpu.dot_dimension_numbers<[1], [0], [0], [1], [0, 0, 1, 1], [], []>} : vector<128x128xf32>, vector<128x16xf32>, vector<128x16xf32> -> vector<128x16xf32>
    %59 = arith.maximumf %55, %58 : vector<128x16xf32>
    %c15 = arith.constant 15 : index
    %c0_46 = arith.constant 0 : index
    %c0_47 = arith.constant 0 : index
    %60 = vector.load %arg0[%c15, %c0_46, %c0_47] : memref<25x128x128xf32, #tpu.memory_space<vmem>>, vector<1x128x128xf32>
    %61 = vector.shape_cast %60 : vector<1x128x128xf32> to vector<128x128xf32>
    %cst_48 = arith.constant dense<0.000000e+00> : vector<128x16xf32>
    %62 = tpu.matmul %61, %0, %cst_48 {dimension_numbers = #tpu.dot_dimension_numbers<[1], [0], [0], [1], [0, 0, 1, 1], [], []>} : vector<128x128xf32>, vector<128x16xf32>, vector<128x16xf32> -> vector<128x16xf32>
    %63 = arith.maximumf %59, %62 : vector<128x16xf32>
    %c16 = arith.constant 16 : index
    %c0_49 = arith.constant 0 : index
    %c0_50 = arith.constant 0 : index
    %64 = vector.load %arg0[%c16, %c0_49, %c0_50] : memref<25x128x128xf32, #tpu.memory_space<vmem>>, vector<1x128x128xf32>
    %65 = vector.shape_cast %64 : vector<1x128x128xf32> to vector<128x128xf32>
    %cst_51 = arith.constant dense<0.000000e+00> : vector<128x16xf32>
    %66 = tpu.matmul %65, %0, %cst_51 {dimension_numbers = #tpu.dot_dimension_numbers<[1], [0], [0], [1], [0, 0, 1, 1], [], []>} : vector<128x128xf32>, vector<128x16xf32>, vector<128x16xf32> -> vector<128x16xf32>
    %67 = arith.maximumf %63, %66 : vector<128x16xf32>
    %c17 = arith.constant 17 : index
    %c0_52 = arith.constant 0 : index
    %c0_53 = arith.constant 0 : index
    %68 = vector.load %arg0[%c17, %c0_52, %c0_53] : memref<25x128x128xf32, #tpu.memory_space<vmem>>, vector<1x128x128xf32>
    %69 = vector.shape_cast %68 : vector<1x128x128xf32> to vector<128x128xf32>
    %cst_54 = arith.constant dense<0.000000e+00> : vector<128x16xf32>
    %70 = tpu.matmul %69, %0, %cst_54 {dimension_numbers = #tpu.dot_dimension_numbers<[1], [0], [0], [1], [0, 0, 1, 1], [], []>} : vector<128x128xf32>, vector<128x16xf32>, vector<128x16xf32> -> vector<128x16xf32>
    %71 = arith.maximumf %67, %70 : vector<128x16xf32>
    %c18 = arith.constant 18 : index
    %c0_55 = arith.constant 0 : index
    %c0_56 = arith.constant 0 : index
    %72 = vector.load %arg0[%c18, %c0_55, %c0_56] : memref<25x128x128xf32, #tpu.memory_space<vmem>>, vector<1x128x128xf32>
    %73 = vector.shape_cast %72 : vector<1x128x128xf32> to vector<128x128xf32>
    %cst_57 = arith.constant dense<0.000000e+00> : vector<128x16xf32>
    %74 = tpu.matmul %73, %0, %cst_57 {dimension_numbers = #tpu.dot_dimension_numbers<[1], [0], [0], [1], [0, 0, 1, 1], [], []>} : vector<128x128xf32>, vector<128x16xf32>, vector<128x16xf32> -> vector<128x16xf32>
    %75 = arith.maximumf %71, %74 : vector<128x16xf32>
    %c19 = arith.constant 19 : index
    %c0_58 = arith.constant 0 : index
    %c0_59 = arith.constant 0 : index
    %76 = vector.load %arg0[%c19, %c0_58, %c0_59] : memref<25x128x128xf32, #tpu.memory_space<vmem>>, vector<1x128x128xf32>
    %77 = vector.shape_cast %76 : vector<1x128x128xf32> to vector<128x128xf32>
    %cst_60 = arith.constant dense<0.000000e+00> : vector<128x16xf32>
    %78 = tpu.matmul %77, %0, %cst_60 {dimension_numbers = #tpu.dot_dimension_numbers<[1], [0], [0], [1], [0, 0, 1, 1], [], []>} : vector<128x128xf32>, vector<128x16xf32>, vector<128x16xf32> -> vector<128x16xf32>
    %79 = arith.maximumf %75, %78 : vector<128x16xf32>
    %c20 = arith.constant 20 : index
    %c0_61 = arith.constant 0 : index
    %c0_62 = arith.constant 0 : index
    %80 = vector.load %arg0[%c20, %c0_61, %c0_62] : memref<25x128x128xf32, #tpu.memory_space<vmem>>, vector<1x128x128xf32>
    %81 = vector.shape_cast %80 : vector<1x128x128xf32> to vector<128x128xf32>
    %cst_63 = arith.constant dense<0.000000e+00> : vector<128x16xf32>
    %82 = tpu.matmul %81, %0, %cst_63 {dimension_numbers = #tpu.dot_dimension_numbers<[1], [0], [0], [1], [0, 0, 1, 1], [], []>} : vector<128x128xf32>, vector<128x16xf32>, vector<128x16xf32> -> vector<128x16xf32>
    %83 = arith.maximumf %79, %82 : vector<128x16xf32>
    %c21 = arith.constant 21 : index
    %c0_64 = arith.constant 0 : index
    %c0_65 = arith.constant 0 : index
    %84 = vector.load %arg0[%c21, %c0_64, %c0_65] : memref<25x128x128xf32, #tpu.memory_space<vmem>>, vector<1x128x128xf32>
    %85 = vector.shape_cast %84 : vector<1x128x128xf32> to vector<128x128xf32>
    %cst_66 = arith.constant dense<0.000000e+00> : vector<128x16xf32>
    %86 = tpu.matmul %85, %0, %cst_66 {dimension_numbers = #tpu.dot_dimension_numbers<[1], [0], [0], [1], [0, 0, 1, 1], [], []>} : vector<128x128xf32>, vector<128x16xf32>, vector<128x16xf32> -> vector<128x16xf32>
    %87 = arith.maximumf %83, %86 : vector<128x16xf32>
    %c22 = arith.constant 22 : index
    %c0_67 = arith.constant 0 : index
    %c0_68 = arith.constant 0 : index
    %88 = vector.load %arg0[%c22, %c0_67, %c0_68] : memref<25x128x128xf32, #tpu.memory_space<vmem>>, vector<1x128x128xf32>
    %89 = vector.shape_cast %88 : vector<1x128x128xf32> to vector<128x128xf32>
    %cst_69 = arith.constant dense<0.000000e+00> : vector<128x16xf32>
    %90 = tpu.matmul %89, %0, %cst_69 {dimension_numbers = #tpu.dot_dimension_numbers<[1], [0], [0], [1], [0, 0, 1, 1], [], []>} : vector<128x128xf32>, vector<128x16xf32>, vector<128x16xf32> -> vector<128x16xf32>
    %91 = arith.maximumf %87, %90 : vector<128x16xf32>
    %c23 = arith.constant 23 : index
    %c0_70 = arith.constant 0 : index
    %c0_71 = arith.constant 0 : index
    %92 = vector.load %arg0[%c23, %c0_70, %c0_71] : memref<25x128x128xf32, #tpu.memory_space<vmem>>, vector<1x128x128xf32>
    %93 = vector.shape_cast %92 : vector<1x128x128xf32> to vector<128x128xf32>
    %cst_72 = arith.constant dense<0.000000e+00> : vector<128x16xf32>
    %94 = tpu.matmul %93, %0, %cst_72 {dimension_numbers = #tpu.dot_dimension_numbers<[1], [0], [0], [1], [0, 0, 1, 1], [], []>} : vector<128x128xf32>, vector<128x16xf32>, vector<128x16xf32> -> vector<128x16xf32>
    %95 = arith.maximumf %91, %94 : vector<128x16xf32>
    %c24 = arith.constant 24 : index
    %c0_73 = arith.constant 0 : index
    %c0_74 = arith.constant 0 : index
    %96 = vector.load %arg0[%c24, %c0_73, %c0_74] : memref<25x128x128xf32, #tpu.memory_space<vmem>>, vector<1x128x128xf32>
    %97 = vector.shape_cast %96 : vector<1x128x128xf32> to vector<128x128xf32>
    %cst_75 = arith.constant dense<0.000000e+00> : vector<128x16xf32>
    %98 = tpu.matmul %97, %0, %cst_75 {dimension_numbers = #tpu.dot_dimension_numbers<[1], [0], [0], [1], [0, 0, 1, 1], [], []>} : vector<128x128xf32>, vector<128x16xf32>, vector<128x16xf32> -> vector<128x16xf32>
    %99 = arith.maximumf %95, %98 : vector<128x16xf32>
    %c0_76 = arith.constant 0 : index
    %c0_77 = arith.constant 0 : index
    %100 = vector.load %arg2[%c0_76, %c0_77] : memref<1x16xf32, #tpu.memory_space<vmem>>, vector<1x16xf32>
    %101 = vector.broadcast %100 : vector<1x16xf32> to vector<128x16xf32>
    %102 = arith.addf %99, %101 : vector<128x16xf32>
    %cst_78 = arith.constant 0.000000e+00 : f32
    %103 = vector.broadcast %cst_78 : f32 to vector<128x16xf32>
    %104 = arith.maximumf %102, %103 : vector<128x16xf32>
    %105 = vector.extract_strided_slice %104 {offsets = [0, 0], sizes = [8, 16], strides = [1, 1]} : vector<128x16xf32> to vector<8x16xf32>
    %106 = vector.extract_strided_slice %104 {offsets = [8, 0], sizes = [8, 16], strides = [1, 1]} : vector<128x16xf32> to vector<8x16xf32>
    %107 = vector.extract_strided_slice %104 {offsets = [16, 0], sizes = [8, 16], strides = [1, 1]} : vector<128x16xf32> to vector<8x16xf32>
    %108 = vector.extract_strided_slice %104 {offsets = [24, 0], sizes = [8, 16], strides = [1, 1]} : vector<128x16xf32> to vector<8x16xf32>
    %109 = vector.extract_strided_slice %104 {offsets = [32, 0], sizes = [8, 16], strides = [1, 1]} : vector<128x16xf32> to vector<8x16xf32>
    %110 = vector.extract_strided_slice %104 {offsets = [40, 0], sizes = [8, 16], strides = [1, 1]} : vector<128x16xf32> to vector<8x16xf32>
    %111 = vector.extract_strided_slice %104 {offsets = [48, 0], sizes = [8, 16], strides = [1, 1]} : vector<128x16xf32> to vector<8x16xf32>
    %112 = vector.extract_strided_slice %104 {offsets = [56, 0], sizes = [8, 16], strides = [1, 1]} : vector<128x16xf32> to vector<8x16xf32>
    %113 = vector.extract_strided_slice %104 {offsets = [64, 0], sizes = [8, 16], strides = [1, 1]} : vector<128x16xf32> to vector<8x16xf32>
    %114 = vector.extract_strided_slice %104 {offsets = [72, 0], sizes = [8, 16], strides = [1, 1]} : vector<128x16xf32> to vector<8x16xf32>
    %115 = vector.extract_strided_slice %104 {offsets = [80, 0], sizes = [8, 16], strides = [1, 1]} : vector<128x16xf32> to vector<8x16xf32>
    %116 = vector.extract_strided_slice %104 {offsets = [88, 0], sizes = [8, 16], strides = [1, 1]} : vector<128x16xf32> to vector<8x16xf32>
    %117 = vector.extract_strided_slice %104 {offsets = [96, 0], sizes = [8, 16], strides = [1, 1]} : vector<128x16xf32> to vector<8x16xf32>
    %118 = vector.extract_strided_slice %104 {offsets = [104, 0], sizes = [8, 16], strides = [1, 1]} : vector<128x16xf32> to vector<8x16xf32>
    %119 = vector.extract_strided_slice %104 {offsets = [112, 0], sizes = [8, 16], strides = [1, 1]} : vector<128x16xf32> to vector<8x16xf32>
    %120 = vector.extract_strided_slice %104 {offsets = [120, 0], sizes = [8, 16], strides = [1, 1]} : vector<128x16xf32> to vector<8x16xf32>
    %121 = arith.maximumf %105, %106 : vector<8x16xf32>
    %122 = arith.maximumf %121, %107 : vector<8x16xf32>
    %123 = arith.maximumf %122, %108 : vector<8x16xf32>
    %124 = arith.maximumf %109, %110 : vector<8x16xf32>
    %125 = arith.maximumf %124, %111 : vector<8x16xf32>
    %126 = arith.maximumf %125, %112 : vector<8x16xf32>
    %127 = arith.maximumf %113, %114 : vector<8x16xf32>
    %128 = arith.maximumf %127, %115 : vector<8x16xf32>
    %129 = arith.maximumf %128, %116 : vector<8x16xf32>
    %130 = arith.maximumf %117, %118 : vector<8x16xf32>
    %131 = arith.maximumf %130, %119 : vector<8x16xf32>
    %132 = arith.maximumf %131, %120 : vector<8x16xf32>
    %133 = arith.maximumf %123, %126 : vector<8x16xf32>
    %134 = arith.maximumf %133, %129 : vector<8x16xf32>
    %135 = arith.maximumf %134, %132 : vector<8x16xf32>
    %c0_79 = arith.constant 0 : index
    %c0_80 = arith.constant 0 : index
    %136 = vector.load %arg3[%c0_79, %c0_80] : memref<336x32xf32, #tpu.memory_space<vmem>>, vector<336x32xf32>
    %137 = vector.extract_strided_slice %136 {offsets = [0, 0], sizes = [16, 32], strides = [1, 1]} : vector<336x32xf32> to vector<16x32xf32>
    %cst_81 = arith.constant dense<0.000000e+00> : vector<8x32xf32>
    %138 = tpu.matmul %135, %137, %cst_81 {dimension_numbers = #tpu.dot_dimension_numbers<[1], [0], [0], [1], [0, 0, 1, 1], [], []>} : vector<8x16xf32>, vector<16x32xf32>, vector<8x32xf32> -> vector<8x32xf32>
    %139 = vector.extract_strided_slice %136 {offsets = [16, 0], sizes = [16, 32], strides = [1, 1]} : vector<336x32xf32> to vector<16x32xf32>
    %cst_82 = arith.constant dense<0.000000e+00> : vector<8x32xf32>
    %140 = tpu.matmul %123, %139, %cst_82 {dimension_numbers = #tpu.dot_dimension_numbers<[1], [0], [0], [1], [0, 0, 1, 1], [], []>} : vector<8x16xf32>, vector<16x32xf32>, vector<8x32xf32> -> vector<8x32xf32>
    %141 = arith.addf %138, %140 : vector<8x32xf32>
    %142 = vector.extract_strided_slice %136 {offsets = [32, 0], sizes = [16, 32], strides = [1, 1]} : vector<336x32xf32> to vector<16x32xf32>
    %cst_83 = arith.constant dense<0.000000e+00> : vector<8x32xf32>
    %143 = tpu.matmul %126, %142, %cst_83 {dimension_numbers = #tpu.dot_dimension_numbers<[1], [0], [0], [1], [0, 0, 1, 1], [], []>} : vector<8x16xf32>, vector<16x32xf32>, vector<8x32xf32> -> vector<8x32xf32>
    %144 = arith.addf %141, %143 : vector<8x32xf32>
    %145 = vector.extract_strided_slice %136 {offsets = [48, 0], sizes = [16, 32], strides = [1, 1]} : vector<336x32xf32> to vector<16x32xf32>
    %cst_84 = arith.constant dense<0.000000e+00> : vector<8x32xf32>
    %146 = tpu.matmul %129, %145, %cst_84 {dimension_numbers = #tpu.dot_dimension_numbers<[1], [0], [0], [1], [0, 0, 1, 1], [], []>} : vector<8x16xf32>, vector<16x32xf32>, vector<8x32xf32> -> vector<8x32xf32>
    %147 = arith.addf %144, %146 : vector<8x32xf32>
    %148 = vector.extract_strided_slice %136 {offsets = [64, 0], sizes = [16, 32], strides = [1, 1]} : vector<336x32xf32> to vector<16x32xf32>
    %cst_85 = arith.constant dense<0.000000e+00> : vector<8x32xf32>
    %149 = tpu.matmul %132, %148, %cst_85 {dimension_numbers = #tpu.dot_dimension_numbers<[1], [0], [0], [1], [0, 0, 1, 1], [], []>} : vector<8x16xf32>, vector<16x32xf32>, vector<8x32xf32> -> vector<8x32xf32>
    %150 = arith.addf %147, %149 : vector<8x32xf32>
    %151 = vector.extract_strided_slice %136 {offsets = [80, 0], sizes = [16, 32], strides = [1, 1]} : vector<336x32xf32> to vector<16x32xf32>
    %cst_86 = arith.constant dense<0.000000e+00> : vector<8x32xf32>
    %152 = tpu.matmul %105, %151, %cst_86 {dimension_numbers = #tpu.dot_dimension_numbers<[1], [0], [0], [1], [0, 0, 1, 1], [], []>} : vector<8x16xf32>, vector<16x32xf32>, vector<8x32xf32> -> vector<8x32xf32>
    %153 = arith.addf %150, %152 : vector<8x32xf32>
    %154 = vector.extract_strided_slice %136 {offsets = [96, 0], sizes = [16, 32], strides = [1, 1]} : vector<336x32xf32> to vector<16x32xf32>
    %cst_87 = arith.constant dense<0.000000e+00> : vector<8x32xf32>
    %155 = tpu.matmul %106, %154, %cst_87 {dimension_numbers = #tpu.dot_dimension_numbers<[1], [0], [0], [1], [0, 0, 1, 1], [], []>} : vector<8x16xf32>, vector<16x32xf32>, vector<8x32xf32> -> vector<8x32xf32>
    %156 = arith.addf %153, %155 : vector<8x32xf32>
    %157 = vector.extract_strided_slice %136 {offsets = [112, 0], sizes = [16, 32], strides = [1, 1]} : vector<336x32xf32> to vector<16x32xf32>
    %cst_88 = arith.constant dense<0.000000e+00> : vector<8x32xf32>
    %158 = tpu.matmul %107, %157, %cst_88 {dimension_numbers = #tpu.dot_dimension_numbers<[1], [0], [0], [1], [0, 0, 1, 1], [], []>} : vector<8x16xf32>, vector<16x32xf32>, vector<8x32xf32> -> vector<8x32xf32>
    %159 = arith.addf %156, %158 : vector<8x32xf32>
    %160 = vector.extract_strided_slice %136 {offsets = [128, 0], sizes = [16, 32], strides = [1, 1]} : vector<336x32xf32> to vector<16x32xf32>
    %cst_89 = arith.constant dense<0.000000e+00> : vector<8x32xf32>
    %161 = tpu.matmul %108, %160, %cst_89 {dimension_numbers = #tpu.dot_dimension_numbers<[1], [0], [0], [1], [0, 0, 1, 1], [], []>} : vector<8x16xf32>, vector<16x32xf32>, vector<8x32xf32> -> vector<8x32xf32>
    %162 = arith.addf %159, %161 : vector<8x32xf32>
    %163 = vector.extract_strided_slice %136 {offsets = [144, 0], sizes = [16, 32], strides = [1, 1]} : vector<336x32xf32> to vector<16x32xf32>
    %cst_90 = arith.constant dense<0.000000e+00> : vector<8x32xf32>
    %164 = tpu.matmul %109, %163, %cst_90 {dimension_numbers = #tpu.dot_dimension_numbers<[1], [0], [0], [1], [0, 0, 1, 1], [], []>} : vector<8x16xf32>, vector<16x32xf32>, vector<8x32xf32> -> vector<8x32xf32>
    %165 = arith.addf %162, %164 : vector<8x32xf32>
    %166 = vector.extract_strided_slice %136 {offsets = [160, 0], sizes = [16, 32], strides = [1, 1]} : vector<336x32xf32> to vector<16x32xf32>
    %cst_91 = arith.constant dense<0.000000e+00> : vector<8x32xf32>
    %167 = tpu.matmul %110, %166, %cst_91 {dimension_numbers = #tpu.dot_dimension_numbers<[1], [0], [0], [1], [0, 0, 1, 1], [], []>} : vector<8x16xf32>, vector<16x32xf32>, vector<8x32xf32> -> vector<8x32xf32>
    %168 = arith.addf %165, %167 : vector<8x32xf32>
    %169 = vector.extract_strided_slice %136 {offsets = [176, 0], sizes = [16, 32], strides = [1, 1]} : vector<336x32xf32> to vector<16x32xf32>
    %cst_92 = arith.constant dense<0.000000e+00> : vector<8x32xf32>
    %170 = tpu.matmul %111, %169, %cst_92 {dimension_numbers = #tpu.dot_dimension_numbers<[1], [0], [0], [1], [0, 0, 1, 1], [], []>} : vector<8x16xf32>, vector<16x32xf32>, vector<8x32xf32> -> vector<8x32xf32>
    %171 = arith.addf %168, %170 : vector<8x32xf32>
    %172 = vector.extract_strided_slice %136 {offsets = [192, 0], sizes = [16, 32], strides = [1, 1]} : vector<336x32xf32> to vector<16x32xf32>
    %cst_93 = arith.constant dense<0.000000e+00> : vector<8x32xf32>
    %173 = tpu.matmul %112, %172, %cst_93 {dimension_numbers = #tpu.dot_dimension_numbers<[1], [0], [0], [1], [0, 0, 1, 1], [], []>} : vector<8x16xf32>, vector<16x32xf32>, vector<8x32xf32> -> vector<8x32xf32>
    %174 = arith.addf %171, %173 : vector<8x32xf32>
    %175 = vector.extract_strided_slice %136 {offsets = [208, 0], sizes = [16, 32], strides = [1, 1]} : vector<336x32xf32> to vector<16x32xf32>
    %cst_94 = arith.constant dense<0.000000e+00> : vector<8x32xf32>
    %176 = tpu.matmul %113, %175, %cst_94 {dimension_numbers = #tpu.dot_dimension_numbers<[1], [0], [0], [1], [0, 0, 1, 1], [], []>} : vector<8x16xf32>, vector<16x32xf32>, vector<8x32xf32> -> vector<8x32xf32>
    %177 = arith.addf %174, %176 : vector<8x32xf32>
    %178 = vector.extract_strided_slice %136 {offsets = [224, 0], sizes = [16, 32], strides = [1, 1]} : vector<336x32xf32> to vector<16x32xf32>
    %cst_95 = arith.constant dense<0.000000e+00> : vector<8x32xf32>
    %179 = tpu.matmul %114, %178, %cst_95 {dimension_numbers = #tpu.dot_dimension_numbers<[1], [0], [0], [1], [0, 0, 1, 1], [], []>} : vector<8x16xf32>, vector<16x32xf32>, vector<8x32xf32> -> vector<8x32xf32>
    %180 = arith.addf %177, %179 : vector<8x32xf32>
    %181 = vector.extract_strided_slice %136 {offsets = [240, 0], sizes = [16, 32], strides = [1, 1]} : vector<336x32xf32> to vector<16x32xf32>
    %cst_96 = arith.constant dense<0.000000e+00> : vector<8x32xf32>
    %182 = tpu.matmul %115, %181, %cst_96 {dimension_numbers = #tpu.dot_dimension_numbers<[1], [0], [0], [1], [0, 0, 1, 1], [], []>} : vector<8x16xf32>, vector<16x32xf32>, vector<8x32xf32> -> vector<8x32xf32>
    %183 = arith.addf %180, %182 : vector<8x32xf32>
    %184 = vector.extract_strided_slice %136 {offsets = [256, 0], sizes = [16, 32], strides = [1, 1]} : vector<336x32xf32> to vector<16x32xf32>
    %cst_97 = arith.constant dense<0.000000e+00> : vector<8x32xf32>
    %185 = tpu.matmul %116, %184, %cst_97 {dimension_numbers = #tpu.dot_dimension_numbers<[1], [0], [0], [1], [0, 0, 1, 1], [], []>} : vector<8x16xf32>, vector<16x32xf32>, vector<8x32xf32> -> vector<8x32xf32>
    %186 = arith.addf %183, %185 : vector<8x32xf32>
    %187 = vector.extract_strided_slice %136 {offsets = [272, 0], sizes = [16, 32], strides = [1, 1]} : vector<336x32xf32> to vector<16x32xf32>
    %cst_98 = arith.constant dense<0.000000e+00> : vector<8x32xf32>
    %188 = tpu.matmul %117, %187, %cst_98 {dimension_numbers = #tpu.dot_dimension_numbers<[1], [0], [0], [1], [0, 0, 1, 1], [], []>} : vector<8x16xf32>, vector<16x32xf32>, vector<8x32xf32> -> vector<8x32xf32>
    %189 = arith.addf %186, %188 : vector<8x32xf32>
    %190 = vector.extract_strided_slice %136 {offsets = [288, 0], sizes = [16, 32], strides = [1, 1]} : vector<336x32xf32> to vector<16x32xf32>
    %cst_99 = arith.constant dense<0.000000e+00> : vector<8x32xf32>
    %191 = tpu.matmul %118, %190, %cst_99 {dimension_numbers = #tpu.dot_dimension_numbers<[1], [0], [0], [1], [0, 0, 1, 1], [], []>} : vector<8x16xf32>, vector<16x32xf32>, vector<8x32xf32> -> vector<8x32xf32>
    %192 = arith.addf %189, %191 : vector<8x32xf32>
    %193 = vector.extract_strided_slice %136 {offsets = [304, 0], sizes = [16, 32], strides = [1, 1]} : vector<336x32xf32> to vector<16x32xf32>
    %cst_100 = arith.constant dense<0.000000e+00> : vector<8x32xf32>
    %194 = tpu.matmul %119, %193, %cst_100 {dimension_numbers = #tpu.dot_dimension_numbers<[1], [0], [0], [1], [0, 0, 1, 1], [], []>} : vector<8x16xf32>, vector<16x32xf32>, vector<8x32xf32> -> vector<8x32xf32>
    %195 = arith.addf %192, %194 : vector<8x32xf32>
    %196 = vector.extract_strided_slice %136 {offsets = [320, 0], sizes = [16, 32], strides = [1, 1]} : vector<336x32xf32> to vector<16x32xf32>
    %cst_101 = arith.constant dense<0.000000e+00> : vector<8x32xf32>
    %197 = tpu.matmul %120, %196, %cst_101 {dimension_numbers = #tpu.dot_dimension_numbers<[1], [0], [0], [1], [0, 0, 1, 1], [], []>} : vector<8x16xf32>, vector<16x32xf32>, vector<8x32xf32> -> vector<8x32xf32>
    %198 = arith.addf %195, %197 : vector<8x32xf32>
    %c0_102 = arith.constant 0 : index
    %c0_103 = arith.constant 0 : index
    %199 = vector.load %arg4[%c0_102, %c0_103] : memref<1x32xf32, #tpu.memory_space<vmem>>, vector<1x32xf32>
    %200 = vector.broadcast %199 : vector<1x32xf32> to vector<8x32xf32>
    %201 = arith.addf %198, %200 : vector<8x32xf32>
    %c0_104 = arith.constant 0 : index
    %c0_105 = arith.constant 0 : index
    %202 = vector.load %arg5[%c0_104, %c0_105] : memref<8x32xf32, #tpu.memory_space<vmem>>, vector<8x32xf32>
    tpu.vector_store %arg5[%c0_104, %c0_105], %201 {strides = array<i32>} : memref<8x32xf32, #tpu.memory_space<vmem>>, vector<8x32xf32>,
    return
  }
}

</mosaic_0001>

<bundles_post_ra>
// kernel: cnn_embedding_forward.1
= control target key start
LH: loop header
LB: loop body
LE: loop exit
PB: predicated region body
PF: predicated region fallthrough
CT: control target
= control target key end

     0   :  { %vm9816_vm0 = vmmov 0   ;;  %vm4565_vm1 = vcmask 130048   ;;  %vm6126_vm2 = vcmask 261120   ;;  %s13355_s1 = inlined_call_operand.vmem [shape: f32[128,16], index: 1, kind: input, shape index: {}]   ;;  %s13356_s0 = inlined_call_operand.vmem [shape: f32[25,128,128], index: 0, kind: input, shape index: {}]   ;;  %s13357_s3 = inlined_call_operand.vmem [shape: f32[336,32], index: 3, kind: input, shape index: {}]   ;;  %s13358_s2 = inlined_call_operand.vmem [shape: f32[1,16], index: 2, kind: input, shape index: {}]   ;;  %s13359_s4 = inlined_call_operand.vmem [shape: f32[1,32], index: 4, kind: input, shape index: {}]   ;;  %s13360_s5 = inlined_call_operand.vmem [shape: f32[8,32], index: 5, kind: output, shape index: {}]  }
   0x1   :  { %v20_v0 = vld [vmem:[%s13355_s1] sm:$0xff]  ;;  %v21_v1 = vld [vmem:[%s13355_s1 + $0x8] sm:$0xff]  ;;  %v22_v2 = vld [vmem:[%s13355_s1 + $0x10] sm:$0xff] }
   0x2   :  { %v9857_v3 = vpack.c.bf16 %v21_v1, %v20_v0  ;;  %v23_v4 = vld [vmem:[%s13355_s1 + $0x18] sm:$0xff]  ;;  %v24_v6 = vld [vmem:[%s13355_s1 + $0x20] sm:$0xff]  ;;  %v25_v7 = vld [vmem:[%s13355_s1 + $0x28] sm:$0xff] }
   0x3   :  { %v9862_v5 = vpack.c.bf16 %v23_v4, %v22_v2  ;;  %v9876_v8 = vpack.c.bf16 %v25_v7, %v24_v6  ;;  %v36_v9 = vld [vmem:[%s13356_s0] sm:$0xff]  ;;  %v26_v11 = vld [vmem:[%s13355_s1 + $0x30] sm:$0xff]  ;;  %v27_v12 = vld [vmem:[%s13355_s1 + $0x38] sm:$0xff] }
   0x4   :  { %8950 = vmatprep.subr.bf16.mxu0 %v9857_v3  ;;  %8982 = vmatprep.subr.bf16.mxu1 %v9857_v3  ;;  %v6132_v10 = vld [vmem:[%s13356_s0 + $0x80] sm:$0xff]  ;;  %v9894_v13 = vpack.c.bf16 %v27_v12, %v26_v11  ;;  %v29_v15 = vld [vmem:[%s13355_s1 + $0x48] sm:$0xff]  ;;  %v30_v17 = vld [vmem:[%s13355_s1 + $0x50] sm:$0xff] }
   0x5   :  { %8952 = vmatpush3.bf16.msra.mxu0 %v9857_v3  ;;  %8984 = vmatpush3.bf16.msra.mxu1 %v9857_v3  ;;  %v28_v14 = vld [vmem:[%s13355_s1 + $0x40] sm:$0xff]  ;;  %v31_v18 = vld [vmem:[%s13355_s1 + $0x58] sm:$0xff]  ;;  %v33_v21 = vld [vmem:[%s13355_s1 + $0x68] sm:$0xff] }
   0x6   :  { %8954 = vmatprep.subr.bf16.mxu0 %v9862_v5  ;;  %8986 = vmatprep.subr.bf16.mxu1 %v9862_v5  ;;  %v9906_v16 = vpack.c.bf16 %v29_v15, %v28_v14  ;;  %v9918_v19 = vpack.c.bf16 %v31_v18, %v30_v17  ;;  %v32_v20 = vld [vmem:[%s13355_s1 + $0x60] sm:$0xff]  ;;  %v34_v23 = vld [vmem:[%s13355_s1 + $0x70] sm:$0xff]  ;;  %v35_v24 = vld [vmem:[%s13355_s1 + $0x78] sm:$0xff] }
   0x7   :  { %7434 = vmatprep.mubr.f32.mxu0 %v36_v9  ;;  %7490 = vmatprep.mubr.f32.mxu1 %v6132_v10  ;;  %v9930_v22 = vpack.c.bf16 %v33_v21, %v32_v20  ;;  %v9942_v25 = vpack.c.bf16 %v35_v24, %v34_v23  ;;  %v37_v26 = vld [vmem:[%s13356_s0 + $0x8] sm:$0xff]  ;;  %v38_v28 = vld [vmem:[%s13356_s0 + $0x10] sm:$0xff]  ;;  %v39_v30 = vld [vmem:[%s13356_s0 + $0x18] sm:$0xff] }
   0x8   :  { %v6133_v27 = vld [vmem:[%s13356_s0 + $0x88] sm:$0xff]  ;;  %v6134_v29 = vld [vmem:[%s13356_s0 + $0x90] sm:$0xff]  ;;  %v6135_v31 = vld [vmem:[%s13356_s0 + $0x98] sm:$0xff] }
   0x9   :  { %8956 = vmatpush3.bf16.msra.mxu0 %v9862_v5  ;;  %8988 = vmatpush3.bf16.msra.mxu1 %v9862_v5  ;;  %v40_v32 = vld [vmem:[%s13356_s0 + $0x20] sm:$0xff]  ;;  %v41_v34 = vld [vmem:[%s13356_s0 + $0x28] sm:$0xff]  ;;  %v42_v36 = vld [vmem:[%s13356_s0 + $0x30] sm:$0xff] }
   0xa   :  { %8958 = vmatprep.subr.bf16.mxu0 %v9876_v8  ;;  %8990 = vmatprep.subr.bf16.mxu1 %v9876_v8  ;;  %v6136_v33 = vld [vmem:[%s13356_s0 + $0xa0] sm:$0xff]  ;;  %v6137_v35 = vld [vmem:[%s13356_s0 + $0xa8] sm:$0xff]  ;;  %v6138_v37 = vld [vmem:[%s13356_s0 + $0xb0] sm:$0xff] }
   0xb   :  { %v43_v38 = vld [vmem:[%s13356_s0 + $0x38] sm:$0xff]  ;;  %v44_v40 = vld [vmem:[%s13356_s0 + $0x40] sm:$0xff]  ;;  %v45_v42 = vld [vmem:[%s13356_s0 + $0x48] sm:$0xff] }
   0xc   :  { %v6139_v39 = vld [vmem:[%s13356_s0 + $0xb8] sm:$0xff]  ;;  %v6140_v41 = vld [vmem:[%s13356_s0 + $0xc0] sm:$0xff]  ;;  %v6141_v43 = vld [vmem:[%s13356_s0 + $0xc8] sm:$0xff] }
   0xd   :  { %8960 = vmatpush3.bf16.msra.mxu0 %v9876_v8  ;;  %8992 = vmatpush3.bf16.msra.mxu1 %v9876_v8  ;;  %v46_v44 = vld [vmem:[%s13356_s0 + $0x50] sm:$0xff]  ;;  %v47_v46 = vld [vmem:[%s13356_s0 + $0x58] sm:$0xff]  ;;  %v48_v48 = vld [vmem:[%s13356_s0 + $0x60] sm:$0xff] }
   0xe   :  { %8962 = vmatprep.subr.bf16.mxu0 %v9894_v13  ;;  %8994 = vmatprep.subr.bf16.mxu1 %v9894_v13  ;;  %v6142_v45 = vld [vmem:[%s13356_s0 + $0xd0] sm:$0xff]  ;;  %v6143_v47 = vld [vmem:[%s13356_s0 + $0xd8] sm:$0xff]  ;;  %v6144_v49 = vld [vmem:[%s13356_s0 + $0xe0] sm:$0xff] }
   0xf   :  { %v49_v50 = vld [vmem:[%s13356_s0 + $0x68] sm:$0xff]  ;;  %v50_v52 = vld [vmem:[%s13356_s0 + $0x70] sm:$0xff]  ;;  %v51_v54 = vld [vmem:[%s13356_s0 + $0x78] sm:$0xff] }
  0x10   :  { %v6145_v51 = vld [vmem:[%s13356_s0 + $0xe8] sm:$0xff]  ;;  %v6146_v53 = vld [vmem:[%s13356_s0 + $0xf0] sm:$0xff]  ;;  %v6147_v55 = vld [vmem:[%s13356_s0 + $0xf8] sm:$0xff] }
  0x11   :  { %8964 = vmatpush3.bf16.msra.mxu0 %v9894_v13  ;;  %8996 = vmatpush3.bf16.msra.mxu1 %v9894_v13  ;;  %v6148_v56 = vld [vmem:[%s13356_s0 + $0x100] sm:$0xff]  ;;  %v6149_v58 = vld [vmem:[%s13356_s0 + $0x108] sm:$0xff]  ;;  %v6150_v60 = vld [vmem:[%s13356_s0 + $0x110] sm:$0xff] }
  0x12   :  { %8966 = vmatprep.subr.bf16.mxu0 %v9906_v16  ;;  %8998 = vmatprep.subr.bf16.mxu1 %v9906_v16  ;;  %v6164_v57 = vld [vmem:[%s13356_s0 + $0x180] sm:$0xff]  ;;  %v6165_v59 = vld [vmem:[%s13356_s0 + $0x188] sm:$0xff]  ;;  %v6166_v61 = vld [vmem:[%s13356_s0 + $0x190] sm:$0xff] }
  0x13   :  { %v6151_v62 = vld [vmem:[%s13356_s0 + $0x118] sm:$0xff]  ;;  %v6152_v0 = vld [vmem:[%s13356_s0 + $0x120] sm:$0xff]  ;;  %v6153_v2 = vld [vmem:[%s13356_s0 + $0x128] sm:$0xff] }
  0x14   :  { %v6167_v63 = vld [vmem:[%s13356_s0 + $0x198] sm:$0xff]  ;;  %v6168_v1 = vld [vmem:[%s13356_s0 + $0x1a0] sm:$0xff]  ;;  %v6169_v4 = vld [vmem:[%s13356_s0 + $0x1a8] sm:$0xff] }
  0x15   :  { %8968 = vmatpush3.bf16.msra.mxu0 %v9906_v16  ;;  %9000 = vmatpush3.bf16.msra.mxu1 %v9906_v16  ;;  %v6154_v6 = vld [vmem:[%s13356_s0 + $0x130] sm:$0xff]  ;;  %v6155_v9 = vld [vmem:[%s13356_s0 + $0x138] sm:$0xff]  ;;  %v6156_v11 = vld [vmem:[%s13356_s0 + $0x140] sm:$0xff] }
  0x16   :  { %8970 = vmatprep.subr.bf16.mxu0 %v9918_v19  ;;  %9002 = vmatprep.subr.bf16.mxu1 %v9918_v19  ;;  %v6170_v7 = vld [vmem:[%s13356_s0 + $0x1b0] sm:$0xff]  ;;  %v6171_v10 = vld [vmem:[%s13356_s0 + $0x1b8] sm:$0xff]  ;;  %v6172_v12 = vld [vmem:[%s13356_s0 + $0x1c0] sm:$0xff] }
  0x17   :  { %v6157_v14 = vld [vmem:[%s13356_s0 + $0x148] sm:$0xff]  ;;  %v6158_v17 = vld [vmem:[%s13356_s0 + $0x150] sm:$0xff]  ;;  %v6159_v20 = vld [vmem:[%s13356_s0 + $0x158] sm:$0xff] }
  0x18   :  { %v6173_v15 = vld [vmem:[%s13356_s0 + $0x1c8] sm:$0xff]  ;;  %v6174_v18 = vld [vmem:[%s13356_s0 + $0x1d0] sm:$0xff]  ;;  %v6175_v21 = vld [vmem:[%s13356_s0 + $0x1d8] sm:$0xff] }
  0x19   :  { %8972 = vmatpush3.bf16.msra.mxu0 %v9918_v19  ;;  %9004 = vmatpush3.bf16.msra.mxu1 %v9918_v19  ;;  %v6160_v23 = vld [vmem:[%s13356_s0 + $0x160] sm:$0xff] }
  0x1a   :  { %8974 = vmatprep.subr.bf16.mxu0 %v9930_v22  ;;  %9006 = vmatprep.subr.bf16.mxu1 %v9930_v22  ;;  %v6176_v24 = vld [vmem:[%s13356_s0 + $0x1e0] sm:$0xff] }
  0x1d   :  { %8976 = vmatpush3.bf16.msra.mxu0 %v9930_v22  ;;  %9008 = vmatpush3.bf16.msra.mxu1 %v9930_v22 }
  0x1e   :  { %8978 = vmatprep.subr.bf16.mxu0 %v9942_v25  ;;  %9010 = vmatprep.subr.bf16.mxu1 %v9942_v25 }
  0x21   :  { %8980 = vmatpush3.bf16.msra.mxu0 %v9942_v25  ;;  %9012 = vmatpush3.bf16.msra.mxu1 %v9942_v25 }
  0x22   :  { %9014 = vmatprep.subr.bf16.mxu0 %v9857_v3  ;;  %9046 = vmatprep.subr.bf16.mxu1 %v9857_v3 }
  0x24   :  { %7435 = vmatmul.mubr.f32.vlgmr.msra.gmra.mrb[0].mxu0 %v37_v26  ;;  %7491 = vmatmul.mubr.f32.vlgmr.msra.gmra.mrb[0].mxu1 %v6133_v27  ;;  %v6161_v26 = vld [vmem:[%s13356_s0 + $0x168] sm:$0xff] }
  0x25   :  { %9016 = vmatpush3.bf16.msra.mxu0 %v9857_v3  ;;  %7437 = vmatprep.mubr.f32.mxu0 %v38_v28  ;;  %v6177_v27 = vld [vmem:[%s13356_s0 + $0x1e8] sm:$0xff]  ;;  %v6162_v28 = vld [vmem:[%s13356_s0 + $0x170] sm:$0xff] }
  0x26   :  { %7493 = vmatprep.mubr.f32.mxu1 %v6134_v29  ;;  %9048 = vmatpush3.bf16.msra.mxu1 %v9857_v3  ;;  %v6178_v29 = vld [vmem:[%s13356_s0 + $0x1f0] sm:$0xff] }
  0x27   :  { %9018 = vmatprep.subr.bf16.mxu0 %v9862_v5  ;;  %9050 = vmatprep.subr.bf16.mxu1 %v9862_v5 }
  0x28   :  { %7438 = vmatmul.mubr.f32.gmra.mrb[2].mxu0 %v39_v30  ;;  %7494 = vmatmul.mubr.f32.gmra.mrb[2].mxu1 %v6135_v31  ;;  %v6163_v30 = vld [vmem:[%s13356_s0 + $0x178] sm:$0xff] }
  0x29   :  { %9020 = vmatpush3.bf16.msra.mxu0 %v9862_v5  ;;  %7440 = vmatprep.mubr.f32.mxu0 %v40_v32  ;;  %v6179_v31 = vld [vmem:[%s13356_s0 + $0x1f8] sm:$0xff]  ;;  %v6180_v32 = vld [vmem:[%s13356_s0 + $0x200] sm:$0xff] }
  0x2a   :  { %7496 = vmatprep.mubr.f32.mxu1 %v6136_v33  ;;  %9052 = vmatpush3.bf16.msra.mxu1 %v9862_v5  ;;  %v6196_v33 = vld [vmem:[%s13356_s0 + $0x280] sm:$0xff] }
  0x2b   :  { %9022 = vmatprep.subr.bf16.mxu0 %v9876_v8  ;;  %9054 = vmatprep.subr.bf16.mxu1 %v9876_v8 }
  0x2c   :  { %7441 = vmatmul.mubr.f32.gmra.mrb[4].mxu0 %v41_v34  ;;  %7497 = vmatmul.mubr.f32.gmra.mrb[4].mxu1 %v6137_v35  ;;  %v6181_v34 = vld [vmem:[%s13356_s0 + $0x208] sm:$0xff] }
  0x2d   :  { %9024 = vmatpush3.bf16.msra.mxu0 %v9876_v8  ;;  %7443 = vmatprep.mubr.f32.mxu0 %v42_v36  ;;  %v6197_v35 = vld [vmem:[%s13356_s0 + $0x288] sm:$0xff]  ;;  %v6182_v36 = vld [vmem:[%s13356_s0 + $0x210] sm:$0xff] }
  0x2e   :  { %7499 = vmatprep.mubr.f32.mxu1 %v6138_v37  ;;  %9056 = vmatpush3.bf16.msra.mxu1 %v9876_v8  ;;  %v6198_v37 = vld [vmem:[%s13356_s0 + $0x290] sm:$0xff] }
  0x2f   :  { %9026 = vmatprep.subr.bf16.mxu0 %v9894_v13  ;;  %9058 = vmatprep.subr.bf16.mxu1 %v9894_v13 }
  0x30   :  { %7444 = vmatmul.mubr.f32.gmra.mrb[6].mxu0 %v43_v38  ;;  %7500 = vmatmul.mubr.f32.gmra.mrb[6].mxu1 %v6139_v39  ;;  %v6183_v38 = vld [vmem:[%s13356_s0 + $0x218] sm:$0xff] }
  0x31   :  { %9028 = vmatpush3.bf16.msra.mxu0 %v9894_v13  ;;  %7446 = vmatprep.mubr.f32.mxu0 %v44_v40  ;;  %v6199_v39 = vld [vmem:[%s13356_s0 + $0x298] sm:$0xff]  ;;  %v6184_v40 = vld [vmem:[%s13356_s0 + $0x220] sm:$0xff] }
  0x32   :  { %7502 = vmatprep.mubr.f32.mxu1 %v6140_v41  ;;  %9060 = vmatpush3.bf16.msra.mxu1 %v9894_v13  ;;  %v6200_v41 = vld [vmem:[%s13356_s0 + $0x2a0] sm:$0xff] }
  0x33   :  { %9030 = vmatprep.subr.bf16.mxu0 %v9906_v16  ;;  %9062 = vmatprep.subr.bf16.mxu1 %v9906_v16 }
  0x34   :  { %7447 = vmatmul.mubr.f32.gmra.mrb[8].mxu0 %v45_v42  ;;  %7503 = vmatmul.mubr.f32.gmra.mrb[8].mxu1 %v6141_v43  ;;  %v6185_v42 = vld [vmem:[%s13356_s0 + $0x228] sm:$0xff] }
  0x35   :  { %9032 = vmatpush3.bf16.msra.mxu0 %v9906_v16  ;;  %7449 = vmatprep.mubr.f32.mxu0 %v46_v44  ;;  %v6201_v43 = vld [vmem:[%s13356_s0 + $0x2a8] sm:$0xff]  ;;  %v6186_v44 = vld [vmem:[%s13356_s0 + $0x230] sm:$0xff] }
  0x36   :  { %7505 = vmatprep.mubr.f32.mxu1 %v6142_v45  ;;  %9064 = vmatpush3.bf16.msra.mxu1 %v9906_v16  ;;  %v6202_v45 = vld [vmem:[%s13356_s0 + $0x2b0] sm:$0xff] }
  0x37   :  { %9034 = vmatprep.subr.bf16.mxu0 %v9918_v19  ;;  %9066 = vmatprep.subr.bf16.mxu1 %v9918_v19 }
  0x38   :  { %7450 = vmatmul.mubr.f32.gmra.mrb[10].mxu0 %v47_v46  ;;  %7506 = vmatmul.mubr.f32.gmra.mrb[10].mxu1 %v6143_v47  ;;  %v6187_v46 = vld [vmem:[%s13356_s0 + $0x238] sm:$0xff] }
  0x39   :  { %9036 = vmatpush3.bf16.msra.mxu0 %v9918_v19  ;;  %7452 = vmatprep.mubr.f32.mxu0 %v48_v48  ;;  %v6203_v47 = vld [vmem:[%s13356_s0 + $0x2b8] sm:$0xff]  ;;  %v6188_v48 = vld [vmem:[%s13356_s0 + $0x240] sm:$0xff] }
  0x3a   :  { %7508 = vmatprep.mubr.f32.mxu1 %v6144_v49  ;;  %9068 = vmatpush3.bf16.msra.mxu1 %v9918_v19  ;;  %v6204_v49 = vld [vmem:[%s13356_s0 + $0x2c0] sm:$0xff] }
  0x3b   :  { %9038 = vmatprep.subr.bf16.mxu0 %v9930_v22  ;;  %9070 = vmatprep.subr.bf16.mxu1 %v9930_v22 }
  0x3c   :  { %7453 = vmatmul.mubr.f32.gmra.mrb[12].mxu0 %v49_v50  ;;  %7509 = vmatmul.mubr.f32.gmra.mrb[12].mxu1 %v6145_v51  ;;  %v6189_v50 = vld [vmem:[%s13356_s0 + $0x248] sm:$0xff] }
  0x3d   :  { %9040 = vmatpush3.bf16.msra.mxu0 %v9930_v22  ;;  %7455 = vmatprep.mubr.f32.mxu0 %v50_v52  ;;  %v6205_v51 = vld [vmem:[%s13356_s0 + $0x2c8] sm:$0xff]  ;;  %v6190_v52 = vld [vmem:[%s13356_s0 + $0x250] sm:$0xff] }
  0x3e   :  { %7511 = vmatprep.mubr.f32.mxu1 %v6146_v53  ;;  %9072 = vmatpush3.bf16.msra.mxu1 %v9930_v22  ;;  %v6206_v53 = vld [vmem:[%s13356_s0 + $0x2d0] sm:$0xff] }
  0x3f   :  { %9042 = vmatprep.subr.bf16.mxu0 %v9942_v25  ;;  %9074 = vmatprep.subr.bf16.mxu1 %v9942_v25 }
  0x40   :  { %7456 = vmatmul.mubr.f32.gmra.mrb[14].mxu0 %v51_v54  ;;  %7512 = vmatmul.mubr.f32.gmra.mrb[14].mxu1 %v6147_v55  ;;  %v6191_v54 = vld [vmem:[%s13356_s0 + $0x258] sm:$0xff] }
  0x41   :  { %9044 = vmatpush3.bf16.msra.mxu0 %v9942_v25  ;;  %7546 = vmatprep.mubr.f32.mxu0 %v6148_v56  ;;  %v6207_v55 = vld [vmem:[%s13356_s0 + $0x2d8] sm:$0xff]  ;;  %v6192_v56 = vld [vmem:[%s13356_s0 + $0x260] sm:$0xff] }
  0x42   :  { %9076 = vmatpush3.bf16.msra.mxu1 %v9942_v25  ;;  %9078 = vmatprep.subr.bf16.mxu0 %v9857_v3 }
  0x43   :  { %7602 = vmatprep.mubr.f32.mxu1 %v6164_v57  ;;  %9110 = vmatprep.subr.bf16.mxu1 %v9857_v3  ;;  %v6208_v57 = vld [vmem:[%s13356_s0 + $0x2e0] sm:$0xff] }
  0x44   :  { %7547 = vmatmul.mubr.f32.vlgmr.msra.gmra.mrb[16].mxu0 %v6149_v58  ;;  %v6193_v58 = vld [vmem:[%s13356_s0 + $0x268] sm:$0xff] }
  0x45   :  { %9080 = vmatpush3.bf16.msra.mxu0 %v9857_v3  ;;  %7603 = vmatmul.mubr.f32.vlgmr.msra.gmra.mrb[16].mxu1 %v6165_v59  ;;  %v6209_v59 = vld [vmem:[%s13356_s0 + $0x2e8] sm:$0xff] }
  0x46   :  { %7549 = vmatprep.mubr.f32.mxu0 %v6150_v60  ;;  %9112 = vmatpush3.bf16.msra.mxu1 %v9857_v3  ;;  %v6194_v60 = vld [vmem:[%s13356_s0 + $0x270] sm:$0xff] }
  0x47   :  { %9082 = vmatprep.subr.bf16.mxu0 %v9862_v5  ;;  %7605 = vmatprep.mubr.f32.mxu1 %v6166_v61  ;;  %v6210_v61 = vld [vmem:[%s13356_s0 + $0x2f0] sm:$0xff] }
  0x48   :  { %7550 = vmatmul.mubr.f32.gmra.mrb[18].mxu0 %v6151_v62  ;;  %9114 = vmatprep.subr.bf16.mxu1 %v9862_v5  ;;  %v6195_v62 = vld [vmem:[%s13356_s0 + $0x278] sm:$0xff] }
  0x49   :  { %9084 = vmatpush3.bf16.msra.mxu0 %v9862_v5  ;;  %7606 = vmatmul.mubr.f32.gmra.mrb[18].mxu1 %v6167_v63  ;;  %v6211_v63 = vld [vmem:[%s13356_s0 + $0x2f8] sm:$0xff] }
  0x4a   :  { %7552 = vmatprep.mubr.f32.mxu0 %v6152_v0  ;;  %9116 = vmatpush3.bf16.msra.mxu1 %v9862_v5  ;;  %v6212_v0 = vld [vmem:[%s13356_s0 + $0x300] sm:$0xff] }
  0x4b   :  { %9086 = vmatprep.subr.bf16.mxu0 %v9876_v8  ;;  %7608 = vmatprep.mubr.f32.mxu1 %v6168_v1  ;;  %v6228_v1 = vld [vmem:[%s13356_s0 + $0x380] sm:$0xff] }
  0x4c   :  { %7553 = vmatmul.mubr.f32.gmra.mrb[20].mxu0 %v6153_v2  ;;  %9118 = vmatprep.subr.bf16.mxu1 %v9876_v8  ;;  %v6213_v2 = vld [vmem:[%s13356_s0 + $0x308] sm:$0xff] }
  0x4d   :  { %9088 = vmatpush3.bf16.msra.mxu0 %v9876_v8  ;;  %7609 = vmatmul.mubr.f32.gmra.mrb[20].mxu1 %v6169_v4  ;;  %v6229_v4 = vld [vmem:[%s13356_s0 + $0x388] sm:$0xff] }
  0x4e   :  { %7555 = vmatprep.mubr.f32.mxu0 %v6154_v6  ;;  %9120 = vmatpush3.bf16.msra.mxu1 %v9876_v8  ;;  %v6214_v6 = vld [vmem:[%s13356_s0 + $0x310] sm:$0xff] }
  0x4f   :  { %9090 = vmatprep.subr.bf16.mxu0 %v9894_v13  ;;  %7611 = vmatprep.mubr.f32.mxu1 %v6170_v7  ;;  %v6230_v7 = vld [vmem:[%s13356_s0 + $0x390] sm:$0xff] }
  0x50   :  { %7556 = vmatmul.mubr.f32.gmra.mrb[22].mxu0 %v6155_v9  ;;  %9122 = vmatprep.subr.bf16.mxu1 %v9894_v13  ;;  %v6215_v9 = vld [vmem:[%s13356_s0 + $0x318] sm:$0xff] }
  0x51   :  { %9092 = vmatpush3.bf16.msra.mxu0 %v9894_v13  ;;  %7612 = vmatmul.mubr.f32.gmra.mrb[22].mxu1 %v6171_v10  ;;  %v6231_v10 = vld [vmem:[%s13356_s0 + $0x398] sm:$0xff] }
  0x52   :  { %7558 = vmatprep.mubr.f32.mxu0 %v6156_v11  ;;  %9124 = vmatpush3.bf16.msra.mxu1 %v9894_v13  ;;  %v6216_v11 = vld [vmem:[%s13356_s0 + $0x320] sm:$0xff] }
  0x53   :  { %9094 = vmatprep.subr.bf16.mxu0 %v9906_v16  ;;  %7614 = vmatprep.mubr.f32.mxu1 %v6172_v12  ;;  %v6232_v12 = vld [vmem:[%s13356_s0 + $0x3a0] sm:$0xff] }
  0x54   :  { %7559 = vmatmul.mubr.f32.gmra.mrb[24].mxu0 %v6157_v14  ;;  %9126 = vmatprep.subr.bf16.mxu1 %v9906_v16  ;;  %v6217_v14 = vld [vmem:[%s13356_s0 + $0x328] sm:$0xff] }
  0x55   :  { %9096 = vmatpush3.bf16.msra.mxu0 %v9906_v16  ;;  %7615 = vmatmul.mubr.f32.gmra.mrb[24].mxu1 %v6173_v15  ;;  %v6233_v15 = vld [vmem:[%s13356_s0 + $0x3a8] sm:$0xff] }
  0x56   :  { %7561 = vmatprep.mubr.f32.mxu0 %v6158_v17  ;;  %9128 = vmatpush3.bf16.msra.mxu1 %v9906_v16  ;;  %v6218_v17 = vld [vmem:[%s13356_s0 + $0x330] sm:$0xff] }
  0x57   :  { %9098 = vmatprep.subr.bf16.mxu0 %v9918_v19  ;;  %7617 = vmatprep.mubr.f32.mxu1 %v6174_v18  ;;  %v6234_v18 = vld [vmem:[%s13356_s0 + $0x3b0] sm:$0xff] }
  0x58   :  { %7562 = vmatmul.mubr.f32.gmra.mrb[26].mxu0 %v6159_v20  ;;  %9130 = vmatprep.subr.bf16.mxu1 %v9918_v19  ;;  %v6219_v20 = vld [vmem:[%s13356_s0 + $0x338] sm:$0xff] }
  0x59   :  { %9100 = vmatpush3.bf16.msra.mxu0 %v9918_v19  ;;  %7618 = vmatmul.mubr.f32.gmra.mrb[26].mxu1 %v6175_v21  ;;  %v6235_v21 = vld [vmem:[%s13356_s0 + $0x3b8] sm:$0xff] }
  0x5a   :  { %7564 = vmatprep.mubr.f32.mxu0 %v6160_v23  ;;  %9132 = vmatpush3.bf16.msra.mxu1 %v9918_v19  ;;  %v6220_v23 = vld [vmem:[%s13356_s0 + $0x340] sm:$0xff] }
  0x5b   :  { %9102 = vmatprep.subr.bf16.mxu0 %v9930_v22  ;;  %7620 = vmatprep.mubr.f32.mxu1 %v6176_v24  ;;  %v6236_v24 = vld [vmem:[%s13356_s0 + $0x3c0] sm:$0xff] }
  0x5c   :  { %7565 = vmatmul.mubr.f32.gmra.mrb[28].mxu0 %v6161_v26  ;;  %9134 = vmatprep.subr.bf16.mxu1 %v9930_v22  ;;  %v6221_v26 = vld [vmem:[%s13356_s0 + $0x348] sm:$0xff] }
  0x5d   :  { %9104 = vmatpush3.bf16.msra.mxu0 %v9930_v22  ;;  %7621 = vmatmul.mubr.f32.gmra.mrb[28].mxu1 %v6177_v27  ;;  %v6237_v27 = vld [vmem:[%s13356_s0 + $0x3c8] sm:$0xff] }
  0x5e   :  { %7567 = vmatprep.mubr.f32.mxu0 %v6162_v28  ;;  %9136 = vmatpush3.bf16.msra.mxu1 %v9930_v22  ;;  %v6222_v28 = vld [vmem:[%s13356_s0 + $0x350] sm:$0xff] }
  0x5f   :  { %9106 = vmatprep.subr.bf16.mxu0 %v9942_v25  ;;  %7623 = vmatprep.mubr.f32.mxu1 %v6178_v29  ;;  %v6238_v29 = vld [vmem:[%s13356_s0 + $0x3d0] sm:$0xff] }
  0x60   :  { %7568 = vmatmul.mubr.f32.gmra.mrb[30].mxu0 %v6163_v30  ;;  %9138 = vmatprep.subr.bf16.mxu1 %v9942_v25  ;;  %v6223_v30 = vld [vmem:[%s13356_s0 + $0x358] sm:$0xff] }
  0x61   :  { %9108 = vmatpush3.bf16.msra.mxu0 %v9942_v25  ;;  %7624 = vmatmul.mubr.f32.gmra.mrb[30].mxu1 %v6179_v31  ;;  %v6239_v31 = vld [vmem:[%s13356_s0 + $0x3d8] sm:$0xff] }
  0x62   :  { %7658 = vmatprep.mubr.f32.mxu0 %v6180_v32  ;;  %9140 = vmatpush3.bf16.msra.mxu1 %v9942_v25  ;;  %v6224_v32 = vld [vmem:[%s13356_s0 + $0x360] sm:$0xff] }
  0x63   :  { %9142 = vmatprep.subr.bf16.mxu0 %v9857_v3  ;;  %7714 = vmatprep.mubr.f32.mxu1 %v6196_v33  ;;  %v6240_v33 = vld [vmem:[%s13356_s0 + $0x3e0] sm:$0xff] }
  0x64   :  { %7659 = vmatmul.mubr.f32.vlgmr.msra.gmra.mrb[32].mxu0 %v6181_v34  ;;  %9174 = vmatprep.subr.bf16.mxu1 %v9857_v3  ;;  %v6225_v34 = vld [vmem:[%s13356_s0 + $0x368] sm:$0xff] }
  0x65   :  { %9144 = vmatpush3.bf16.msra.mxu0 %v9857_v3  ;;  %7715 = vmatmul.mubr.f32.vlgmr.msra.gmra.mrb[32].mxu1 %v6197_v35  ;;  %v6241_v35 = vld [vmem:[%s13356_s0 + $0x3e8] sm:$0xff] }
  0x66   :  { %7661 = vmatprep.mubr.f32.mxu0 %v6182_v36  ;;  %9176 = vmatpush3.bf16.msra.mxu1 %v9857_v3  ;;  %v6226_v36 = vld [vmem:[%s13356_s0 + $0x370] sm:$0xff] }
  0x67   :  { %9146 = vmatprep.subr.bf16.mxu0 %v9862_v5  ;;  %7717 = vmatprep.mubr.f32.mxu1 %v6198_v37  ;;  %v6242_v37 = vld [vmem:[%s13356_s0 + $0x3f0] sm:$0xff] }
  0x68   :  { %7662 = vmatmul.mubr.f32.gmra.mrb[34].mxu0 %v6183_v38  ;;  %9178 = vmatprep.subr.bf16.mxu1 %v9862_v5  ;;  %v6227_v38 = vld [vmem:[%s13356_s0 + $0x378] sm:$0xff] }
  0x69   :  { %9148 = vmatpush3.bf16.msra.mxu0 %v9862_v5  ;;  %7718 = vmatmul.mubr.f32.gmra.mrb[34].mxu1 %v6199_v39  ;;  %v6243_v39 = vld [vmem:[%s13356_s0 + $0x3f8] sm:$0xff] }
  0x6a   :  { %7664 = vmatprep.mubr.f32.mxu0 %v6184_v40  ;;  %9180 = vmatpush3.bf16.msra.mxu1 %v9862_v5  ;;  %v6244_v40 = vld [vmem:[%s13356_s0 + $0x400] sm:$0xff] }
  0x6b   :  { %9150 = vmatprep.subr.bf16.mxu0 %v9876_v8  ;;  %7720 = vmatprep.mubr.f32.mxu1 %v6200_v41  ;;  %v6260_v41 = vld [vmem:[%s13356_s0 + $0x480] sm:$0xff] }
  0x6c   :  { %7665 = vmatmul.mubr.f32.gmra.mrb[36].mxu0 %v6185_v42  ;;  %9182 = vmatprep.subr.bf16.mxu1 %v9876_v8  ;;  %v6245_v42 = vld [vmem:[%s13356_s0 + $0x408] sm:$0xff] }
  0x6d   :  { %9152 = vmatpush3.bf16.msra.mxu0 %v9876_v8  ;;  %7721 = vmatmul.mubr.f32.gmra.mrb[36].mxu1 %v6201_v43  ;;  %v6261_v43 = vld [vmem:[%s13356_s0 + $0x488] sm:$0xff] }
  0x6e   :  { %7667 = vmatprep.mubr.f32.mxu0 %v6186_v44  ;;  %9184 = vmatpush3.bf16.msra.mxu1 %v9876_v8  ;;  %v6246_v44 = vld [vmem:[%s13356_s0 + $0x410] sm:$0xff] }
  0x6f   :  { %9154 = vmatprep.subr.bf16.mxu0 %v9894_v13  ;;  %7723 = vmatprep.mubr.f32.mxu1 %v6202_v45  ;;  %v6262_v45 = vld [vmem:[%s13356_s0 + $0x490] sm:$0xff] }
  0x70   :  { %7668 = vmatmul.mubr.f32.gmra.mrb[38].mxu0 %v6187_v46  ;;  %9186 = vmatprep.subr.bf16.mxu1 %v9894_v13  ;;  %v6247_v46 = vld [vmem:[%s13356_s0 + $0x418] sm:$0xff] }
  0x71   :  { %9156 = vmatpush3.bf16.msra.mxu0 %v9894_v13  ;;  %7724 = vmatmul.mubr.f32.gmra.mrb[38].mxu1 %v6203_v47  ;;  %v6263_v47 = vld [vmem:[%s13356_s0 + $0x498] sm:$0xff] }
  0x72   :  { %7670 = vmatprep.mubr.f32.mxu0 %v6188_v48  ;;  %9188 = vmatpush3.bf16.msra.mxu1 %v9894_v13  ;;  %v6248_v48 = vld [vmem:[%s13356_s0 + $0x420] sm:$0xff] }
  0x73   :  { %9158 = vmatprep.subr.bf16.mxu0 %v9906_v16  ;;  %7726 = vmatprep.mubr.f32.mxu1 %v6204_v49  ;;  %v6264_v49 = vld [vmem:[%s13356_s0 + $0x4a0] sm:$0xff] }
  0x74   :  { %7671 = vmatmul.mubr.f32.gmra.mrb[40].mxu0 %v6189_v50  ;;  %9190 = vmatprep.subr.bf16.mxu1 %v9906_v16  ;;  %v6249_v50 = vld [vmem:[%s13356_s0 + $0x428] sm:$0xff] }
  0x75   :  { %9160 = vmatpush3.bf16.msra.mxu0 %v9906_v16  ;;  %7727 = vmatmul.mubr.f32.gmra.mrb[40].mxu1 %v6205_v51  ;;  %v6265_v51 = vld [vmem:[%s13356_s0 + $0x4a8] sm:$0xff] }
  0x76   :  { %7673 = vmatprep.mubr.f32.mxu0 %v6190_v52  ;;  %9192 = vmatpush3.bf16.msra.mxu1 %v9906_v16  ;;  %v6250_v52 = vld [vmem:[%s13356_s0 + $0x430] sm:$0xff] }
  0x77   :  { %9162 = vmatprep.subr.bf16.mxu0 %v9918_v19  ;;  %7729 = vmatprep.mubr.f32.mxu1 %v6206_v53  ;;  %v6266_v53 = vld [vmem:[%s13356_s0 + $0x4b0] sm:$0xff] }
  0x78   :  { %7674 = vmatmul.mubr.f32.gmra.mrb[42].mxu0 %v6191_v54  ;;  %9194 = vmatprep.subr.bf16.mxu1 %v9918_v19  ;;  %v6251_v54 = vld [vmem:[%s13356_s0 + $0x438] sm:$0xff] }
  0x79   :  { %9164 = vmatpush3.bf16.msra.mxu0 %v9918_v19  ;;  %7730 = vmatmul.mubr.f32.gmra.mrb[42].mxu1 %v6207_v55  ;;  %v6267_v55 = vld [vmem:[%s13356_s0 + $0x4b8] sm:$0xff] }
  0x7a   :  { %7676 = vmatprep.mubr.f32.mxu0 %v6192_v56  ;;  %9196 = vmatpush3.bf16.msra.mxu1 %v9918_v19  ;;  %v6252_v56 = vld [vmem:[%s13356_s0 + $0x440] sm:$0xff] }
  0x7b   :  { %9166 = vmatprep.subr.bf16.mxu0 %v9930_v22  ;;  %7732 = vmatprep.mubr.f32.mxu1 %v6208_v57  ;;  %v6268_v57 = vld [vmem:[%s13356_s0 + $0x4c0] sm:$0xff] }
  0x7c   :  { %7677 = vmatmul.mubr.f32.gmra.mrb[44].mxu0 %v6193_v58  ;;  %9198 = vmatprep.subr.bf16.mxu1 %v9930_v22  ;;  %v6253_v58 = vld [vmem:[%s13356_s0 + $0x448] sm:$0xff] }
  0x7d   :  { %9168 = vmatpush3.bf16.msra.mxu0 %v9930_v22  ;;  %7733 = vmatmul.mubr.f32.gmra.mrb[44].mxu1 %v6209_v59  ;;  %v6269_v59 = vld [vmem:[%s13356_s0 + $0x4c8] sm:$0xff] }
  0x7e   :  { %7679 = vmatprep.mubr.f32.mxu0 %v6194_v60  ;;  %9200 = vmatpush3.bf16.msra.mxu1 %v9930_v22  ;;  %v6254_v60 = vld [vmem:[%s13356_s0 + $0x450] sm:$0xff] }
  0x7f   :  { %9170 = vmatprep.subr.bf16.mxu0 %v9942_v25  ;;  %7735 = vmatprep.mubr.f32.mxu1 %v6210_v61  ;;  %v6270_v61 = vld [vmem:[%s13356_s0 + $0x4d0] sm:$0xff] }
  0x80   :  { %7680 = vmatmul.mubr.f32.gmra.mrb[46].mxu0 %v6195_v62  ;;  %9202 = vmatprep.subr.bf16.mxu1 %v9942_v25  ;;  %v6255_v62 = vld [vmem:[%s13356_s0 + $0x458] sm:$0xff] }
  0x81   :  { %9172 = vmatpush3.bf16.msra.mxu0 %v9942_v25  ;;  %7736 = vmatmul.mubr.f32.gmra.mrb[46].mxu1 %v6211_v63  ;;  %v6271_v63 = vld [vmem:[%s13356_s0 + $0x4d8] sm:$0xff] }
  0x82   :  { %7770 = vmatprep.mubr.f32.mxu0 %v6212_v0  ;;  %9204 = vmatpush3.bf16.msra.mxu1 %v9942_v25  ;;  %v6256_v0 = vld [vmem:[%s13356_s0 + $0x460] sm:$0xff] }
  0x83   :  { %9206 = vmatprep.subr.bf16.mxu0 %v9857_v3  ;;  %7826 = vmatprep.mubr.f32.mxu1 %v6228_v1  ;;  %v6272_v1 = vld [vmem:[%s13356_s0 + $0x4e0] sm:$0xff] }
  0x84   :  { %7771 = vmatmul.mubr.f32.vlgmr.msra.gmra.mrb[48].mxu0 %v6213_v2  ;;  %9238 = vmatprep.subr.bf16.mxu1 %v9857_v3  ;;  %v6257_v2 = vld [vmem:[%s13356_s0 + $0x468] sm:$0xff] }
  0x85   :  { %9208 = vmatpush3.bf16.msra.mxu0 %v9857_v3  ;;  %7827 = vmatmul.mubr.f32.vlgmr.msra.gmra.mrb[48].mxu1 %v6229_v4  ;;  %v6273_v4 = vld [vmem:[%s13356_s0 + $0x4e8] sm:$0xff] }
  0x86   :  { %7773 = vmatprep.mubr.f32.mxu0 %v6214_v6  ;;  %9240 = vmatpush3.bf16.msra.mxu1 %v9857_v3  ;;  %v6258_v6 = vld [vmem:[%s13356_s0 + $0x470] sm:$0xff] }
  0x87   :  { %9210 = vmatprep.subr.bf16.mxu0 %v9862_v5  ;;  %7829 = vmatprep.mubr.f32.mxu1 %v6230_v7  ;;  %v6274_v7 = vld [vmem:[%s13356_s0 + $0x4f0] sm:$0xff] }
  0x88   :  { %7774 = vmatmul.mubr.f32.gmra.mrb[50].mxu0 %v6215_v9  ;;  %9242 = vmatprep.subr.bf16.mxu1 %v9862_v5  ;;  %v6259_v9 = vld [vmem:[%s13356_s0 + $0x478] sm:$0xff] }
  0x89   :  { %9212 = vmatpush3.bf16.msra.mxu0 %v9862_v5  ;;  %7830 = vmatmul.mubr.f32.gmra.mrb[50].mxu1 %v6231_v10  ;;  %v6275_v10 = vld [vmem:[%s13356_s0 + $0x4f8] sm:$0xff] }
  0x8a   :  { %7776 = vmatprep.mubr.f32.mxu0 %v6216_v11  ;;  %9244 = vmatpush3.bf16.msra.mxu1 %v9862_v5  ;;  %v6276_v11 = vld [vmem:[%s13356_s0 + $0x500] sm:$0xff] }
  0x8b   :  { %9214 = vmatprep.subr.bf16.mxu0 %v9876_v8  ;;  %7832 = vmatprep.mubr.f32.mxu1 %v6232_v12  ;;  %v6292_v12 = vld [vmem:[%s13356_s0 + $0x580] sm:$0xff] }
  0x8c   :  { %7777 = vmatmul.mubr.f32.gmra.mrb[52].mxu0 %v6217_v14  ;;  %9246 = vmatprep.subr.bf16.mxu1 %v9876_v8  ;;  %v6277_v14 = vld [vmem:[%s13356_s0 + $0x508] sm:$0xff] }
  0x8d   :  { %9216 = vmatpush3.bf16.msra.mxu0 %v9876_v8  ;;  %7833 = vmatmul.mubr.f32.gmra.mrb[52].mxu1 %v6233_v15  ;;  %v6293_v15 = vld [vmem:[%s13356_s0 + $0x588] sm:$0xff] }
  0x8e   :  { %7779 = vmatprep.mubr.f32.mxu0 %v6218_v17  ;;  %9248 = vmatpush3.bf16.msra.mxu1 %v9876_v8  ;;  %v6278_v17 = vld [vmem:[%s13356_s0 + $0x510] sm:$0xff] }
  0x8f   :  { %9218 = vmatprep.subr.bf16.mxu0 %v9894_v13  ;;  %7835 = vmatprep.mubr.f32.mxu1 %v6234_v18  ;;  %v6294_v18 = vld [vmem:[%s13356_s0 + $0x590] sm:$0xff] }
  0x90   :  { %7780 = vmatmul.mubr.f32.gmra.mrb[54].mxu0 %v6219_v20  ;;  %9250 = vmatprep.subr.bf16.mxu1 %v9894_v13  ;;  %v6279_v20 = vld [vmem:[%s13356_s0 + $0x518] sm:$0xff] }
  0x91   :  { %9220 = vmatpush3.bf16.msra.mxu0 %v9894_v13  ;;  %7836 = vmatmul.mubr.f32.gmra.mrb[54].mxu1 %v6235_v21  ;;  %v6295_v21 = vld [vmem:[%s13356_s0 + $0x598] sm:$0xff] }
  0x92   :  { %7782 = vmatprep.mubr.f32.mxu0 %v6220_v23  ;;  %9252 = vmatpush3.bf16.msra.mxu1 %v9894_v13  ;;  %v6280_v23 = vld [vmem:[%s13356_s0 + $0x520] sm:$0xff] }
  0x93   :  { %9222 = vmatprep.subr.bf16.mxu0 %v9906_v16  ;;  %7838 = vmatprep.mubr.f32.mxu1 %v6236_v24  ;;  %v6296_v24 = vld [vmem:[%s13356_s0 + $0x5a0] sm:$0xff] }
  0x94   :  { %7783 = vmatmul.mubr.f32.gmra.mrb[56].mxu0 %v6221_v26  ;;  %9254 = vmatprep.subr.bf16.mxu1 %v9906_v16  ;;  %v6281_v26 = vld [vmem:[%s13356_s0 + $0x528] sm:$0xff] }
  0x95   :  { %9224 = vmatpush3.bf16.msra.mxu0 %v9906_v16  ;;  %7839 = vmatmul.mubr.f32.gmra.mrb[56].mxu1 %v6237_v27  ;;  %v6297_v27 = vld [vmem:[%s13356_s0 + $0x5a8] sm:$0xff] }
  0x96   :  { %7785 = vmatprep.mubr.f32.mxu0 %v6222_v28  ;;  %9256 = vmatpush3.bf16.msra.mxu1 %v9906_v16  ;;  %v6282_v28 = vld [vmem:[%s13356_s0 + $0x530] sm:$0xff] }
  0x97   :  { %9226 = vmatprep.subr.bf16.mxu0 %v9918_v19  ;;  %7841 = vmatprep.mubr.f32.mxu1 %v6238_v29  ;;  %v6298_v29 = vld [vmem:[%s13356_s0 + $0x5b0] sm:$0xff] }
  0x98   :  { %7786 = vmatmul.mubr.f32.gmra.mrb[58].mxu0 %v6223_v30  ;;  %9258 = vmatprep.subr.bf16.mxu1 %v9918_v19  ;;  %v6283_v30 = vld [vmem:[%s13356_s0 + $0x538] sm:$0xff] }
  0x99   :  { %9228 = vmatpush3.bf16.msra.mxu0 %v9918_v19  ;;  %7842 = vmatmul.mubr.f32.gmra.mrb[58].mxu1 %v6239_v31  ;;  %v6299_v31 = vld [vmem:[%s13356_s0 + $0x5b8] sm:$0xff] }
  0x9a   :  { %7788 = vmatprep.mubr.f32.mxu0 %v6224_v32  ;;  %9260 = vmatpush3.bf16.msra.mxu1 %v9918_v19  ;;  %v6284_v32 = vld [vmem:[%s13356_s0 + $0x540] sm:$0xff] }
  0x9b   :  { %9230 = vmatprep.subr.bf16.mxu0 %v9930_v22  ;;  %7844 = vmatprep.mubr.f32.mxu1 %v6240_v33  ;;  %v6300_v33 = vld [vmem:[%s13356_s0 + $0x5c0] sm:$0xff] }
  0x9c   :  { %7789 = vmatmul.mubr.f32.gmra.mrb[60].mxu0 %v6225_v34  ;;  %9262 = vmatprep.subr.bf16.mxu1 %v9930_v22  ;;  %v6285_v34 = vld [vmem:[%s13356_s0 + $0x548] sm:$0xff] }
  0x9d   :  { %9232 = vmatpush3.bf16.msra.mxu0 %v9930_v22  ;;  %7845 = vmatmul.mubr.f32.gmra.mrb[60].mxu1 %v6241_v35  ;;  %v6301_v35 = vld [vmem:[%s13356_s0 + $0x5c8] sm:$0xff] }
  0x9e   :  { %7791 = vmatprep.mubr.f32.mxu0 %v6226_v36  ;;  %9264 = vmatpush3.bf16.msra.mxu1 %v9930_v22  ;;  %v6286_v36 = vld [vmem:[%s13356_s0 + $0x550] sm:$0xff] }
  0x9f   :  { %9234 = vmatprep.subr.bf16.mxu0 %v9942_v25  ;;  %7847 = vmatprep.mubr.f32.mxu1 %v6242_v37  ;;  %v6302_v37 = vld [vmem:[%s13356_s0 + $0x5d0] sm:$0xff] }
  0xa0   :  { %7792 = vmatmul.mubr.f32.gmra.mrb[62].mxu0 %v6227_v38  ;;  %9266 = vmatprep.subr.bf16.mxu1 %v9942_v25  ;;  %v6287_v38 = vld [vmem:[%s13356_s0 + $0x558] sm:$0xff] }
  0xa1   :  { %9236 = vmatpush3.bf16.msra.mxu0 %v9942_v25  ;;  %7848 = vmatmul.mubr.f32.gmra.mrb[62].mxu1 %v6243_v39  ;;  %v6303_v39 = vld [vmem:[%s13356_s0 + $0x5d8] sm:$0xff] }
  0xa2   :  { %7882 = vmatprep.mubr.f32.mxu0 %v6244_v40  ;;  %9268 = vmatpush3.bf16.msra.mxu1 %v9942_v25  ;;  %v6288_v40 = vld [vmem:[%s13356_s0 + $0x560] sm:$0xff] }
  0xa3   :  { %9270 = vmatprep.subr.bf16.mxu0 %v9857_v3  ;;  %7938 = vmatprep.mubr.f32.mxu1 %v6260_v41  ;;  %v6304_v41 = vld [vmem:[%s13356_s0 + $0x5e0] sm:$0xff] }
  0xa4   :  { %7883 = vmatmul.mubr.f32.vlgmr.msra.gmra.mrb[64].mxu0 %v6245_v42  ;;  %9302 = vmatprep.subr.bf16.mxu1 %v9857_v3  ;;  %v6289_v42 = vld [vmem:[%s13356_s0 + $0x568] sm:$0xff] }
  0xa5   :  { %9272 = vmatpush3.bf16.msra.mxu0 %v9857_v3  ;;  %7939 = vmatmul.mubr.f32.vlgmr.msra.gmra.mrb[64].mxu1 %v6261_v43  ;;  %v6305_v43 = vld [vmem:[%s13356_s0 + $0x5e8] sm:$0xff] }
  0xa6   :  { %7885 = vmatprep.mubr.f32.mxu0 %v6246_v44  ;;  %9304 = vmatpush3.bf16.msra.mxu1 %v9857_v3  ;;  %v6290_v44 = vld [vmem:[%s13356_s0 + $0x570] sm:$0xff] }
  0xa7   :  { %9274 = vmatprep.subr.bf16.mxu0 %v9862_v5  ;;  %7941 = vmatprep.mubr.f32.mxu1 %v6262_v45  ;;  %v6306_v45 = vld [vmem:[%s13356_s0 + $0x5f0] sm:$0xff] }
  0xa8   :  { %7886 = vmatmul.mubr.f32.gmra.mrb[66].mxu0 %v6247_v46  ;;  %9306 = vmatprep.subr.bf16.mxu1 %v9862_v5  ;;  %v6291_v46 = vld [vmem:[%s13356_s0 + $0x578] sm:$0xff] }
  0xa9   :  { %9276 = vmatpush3.bf16.msra.mxu0 %v9862_v5  ;;  %7942 = vmatmul.mubr.f32.gmra.mrb[66].mxu1 %v6263_v47  ;;  %v6307_v47 = vld [vmem:[%s13356_s0 + $0x5f8] sm:$0xff] }
  0xaa   :  { %7888 = vmatprep.mubr.f32.mxu0 %v6248_v48  ;;  %9308 = vmatpush3.bf16.msra.mxu1 %v9862_v5  ;;  %v6308_v48 = vld [vmem:[%s13356_s0 + $0x600] sm:$0xff] }
  0xab   :  { %9278 = vmatprep.subr.bf16.mxu0 %v9876_v8  ;;  %7944 = vmatprep.mubr.f32.mxu1 %v6264_v49  ;;  %v6324_v49 = vld [vmem:[%s13356_s0 + $0x680] sm:$0xff] }
  0xac   :  { %7889 = vmatmul.mubr.f32.gmra.mrb[68].mxu0 %v6249_v50  ;;  %9310 = vmatprep.subr.bf16.mxu1 %v9876_v8  ;;  %v6309_v50 = vld [vmem:[%s13356_s0 + $0x608] sm:$0xff] }
  0xad   :  { %9280 = vmatpush3.bf16.msra.mxu0 %v9876_v8  ;;  %7945 = vmatmul.mubr.f32.gmra.mrb[68].mxu1 %v6265_v51  ;;  %v6325_v51 = vld [vmem:[%s13356_s0 + $0x688] sm:$0xff] }
  0xae   :  { %7891 = vmatprep.mubr.f32.mxu0 %v6250_v52  ;;  %9312 = vmatpush3.bf16.msra.mxu1 %v9876_v8  ;;  %v6310_v52 = vld [vmem:[%s13356_s0 + $0x610] sm:$0xff] }
  0xaf   :  { %9282 = vmatprep.subr.bf16.mxu0 %v9894_v13  ;;  %7947 = vmatprep.mubr.f32.mxu1 %v6266_v53  ;;  %v6326_v53 = vld [vmem:[%s13356_s0 + $0x690] sm:$0xff] }
  0xb0   :  { %7892 = vmatmul.mubr.f32.gmra.mrb[70].mxu0 %v6251_v54  ;;  %9314 = vmatprep.subr.bf16.mxu1 %v9894_v13  ;;  %v6311_v54 = vld [vmem:[%s13356_s0 + $0x618] sm:$0xff] }
  0xb1   :  { %9284 = vmatpush3.bf16.msra.mxu0 %v9894_v13  ;;  %7948 = vmatmul.mubr.f32.gmra.mrb[70].mxu1 %v6267_v55  ;;  %v6327_v55 = vld [vmem:[%s13356_s0 + $0x698] sm:$0xff] }
  0xb2   :  { %7894 = vmatprep.mubr.f32.mxu0 %v6252_v56  ;;  %9316 = vmatpush3.bf16.msra.mxu1 %v9894_v13  ;;  %v6312_v56 = vld [vmem:[%s13356_s0 + $0x620] sm:$0xff] }
  0xb3   :  { %9286 = vmatprep.subr.bf16.mxu0 %v9906_v16  ;;  %7950 = vmatprep.mubr.f32.mxu1 %v6268_v57  ;;  %v6328_v57 = vld [vmem:[%s13356_s0 + $0x6a0] sm:$0xff] }
  0xb4   :  { %7895 = vmatmul.mubr.f32.gmra.mrb[72].mxu0 %v6253_v58  ;;  %9318 = vmatprep.subr.bf16.mxu1 %v9906_v16  ;;  %v6313_v58 = vld [vmem:[%s13356_s0 + $0x628] sm:$0xff] }
  0xb5   :  { %9288 = vmatpush3.bf16.msra.mxu0 %v9906_v16  ;;  %7951 = vmatmul.mubr.f32.gmra.mrb[72].mxu1 %v6269_v59  ;;  %v6329_v59 = vld [vmem:[%s13356_s0 + $0x6a8] sm:$0xff] }
  0xb6   :  { %7897 = vmatprep.mubr.f32.mxu0 %v6254_v60  ;;  %9320 = vmatpush3.bf16.msra.mxu1 %v9906_v16  ;;  %v6314_v60 = vld [vmem:[%s13356_s0 + $0x630] sm:$0xff] }
  0xb7   :  { %9290 = vmatprep.subr.bf16.mxu0 %v9918_v19  ;;  %7953 = vmatprep.mubr.f32.mxu1 %v6270_v61  ;;  %v6330_v61 = vld [vmem:[%s13356_s0 + $0x6b0] sm:$0xff] }
  0xb8   :  { %7898 = vmatmul.mubr.f32.gmra.mrb[74].mxu0 %v6255_v62  ;;  %9322 = vmatprep.subr.bf16.mxu1 %v9918_v19  ;;  %v6315_v62 = vld [vmem:[%s13356_s0 + $0x638] sm:$0xff] }
  0xb9   :  { %9292 = vmatpush3.bf16.msra.mxu0 %v9918_v19  ;;  %7954 = vmatmul.mubr.f32.gmra.mrb[74].mxu1 %v6271_v63  ;;  %v6331_v63 = vld [vmem:[%s13356_s0 + $0x6b8] sm:$0xff] }
  0xba   :  { %7900 = vmatprep.mubr.f32.mxu0 %v6256_v0  ;;  %9324 = vmatpush3.bf16.msra.mxu1 %v9918_v19  ;;  %v6316_v0 = vld [vmem:[%s13356_s0 + $0x640] sm:$0xff] }
  0xbb   :  { %9294 = vmatprep.subr.bf16.mxu0 %v9930_v22  ;;  %7956 = vmatprep.mubr.f32.mxu1 %v6272_v1  ;;  %v6332_v1 = vld [vmem:[%s13356_s0 + $0x6c0] sm:$0xff] }
  0xbc   :  { %7901 = vmatmul.mubr.f32.gmra.mrb[76].mxu0 %v6257_v2  ;;  %9326 = vmatprep.subr.bf16.mxu1 %v9930_v22  ;;  %v6317_v2 = vld [vmem:[%s13356_s0 + $0x648] sm:$0xff] }
  0xbd   :  { %9296 = vmatpush3.bf16.msra.mxu0 %v9930_v22  ;;  %7957 = vmatmul.mubr.f32.gmra.mrb[76].mxu1 %v6273_v4  ;;  %v6333_v4 = vld [vmem:[%s13356_s0 + $0x6c8] sm:$0xff] }
  0xbe   :  { %7903 = vmatprep.mubr.f32.mxu0 %v6258_v6  ;;  %9328 = vmatpush3.bf16.msra.mxu1 %v9930_v22  ;;  %v6318_v6 = vld [vmem:[%s13356_s0 + $0x650] sm:$0xff] }
  0xbf   :  { %9298 = vmatprep.subr.bf16.mxu0 %v9942_v25  ;;  %7959 = vmatprep.mubr.f32.mxu1 %v6274_v7  ;;  %v6334_v7 = vld [vmem:[%s13356_s0 + $0x6d0] sm:$0xff] }
  0xc0   :  { %7904 = vmatmul.mubr.f32.gmra.mrb[78].mxu0 %v6259_v9  ;;  %9330 = vmatprep.subr.bf16.mxu1 %v9942_v25  ;;  %v6319_v9 = vld [vmem:[%s13356_s0 + $0x658] sm:$0xff] }
  0xc1   :  { %9300 = vmatpush3.bf16.msra.mxu0 %v9942_v25  ;;  %7960 = vmatmul.mubr.f32.gmra.mrb[78].mxu1 %v6275_v10  ;;  %v6335_v10 = vld [vmem:[%s13356_s0 + $0x6d8] sm:$0xff] }
  0xc2   :  { %7994 = vmatprep.mubr.f32.mxu0 %v6276_v11  ;;  %9332 = vmatpush3.bf16.msra.mxu1 %v9942_v25 }
  0xc3   :  { %9334 = vmatprep.subr.bf16.mxu0 %v9857_v3  ;;  %8050 = vmatprep.mubr.f32.mxu1 %v6292_v12 }
  0xc4   :  { %7995 = vmatmul.mubr.f32.vlgmr.msra.gmra.mrb[80].mxu0 %v6277_v14  ;;  %9366 = vmatprep.subr.bf16.mxu1 %v9857_v3  ;;  %v6320_v14 = vld [vmem:[%s13356_s0 + $0x660] sm:$0xff] }
  0xc5   :  { %9336 = vmatpush3.bf16.msra.mxu0 %v9857_v3  ;;  %8051 = vmatmul.mubr.f32.vlgmr.msra.gmra.mrb[80].mxu1 %v6293_v15 }
  0xc6   :  { %7997 = vmatprep.mubr.f32.mxu0 %v6278_v17  ;;  %9368 = vmatpush3.bf16.msra.mxu1 %v9857_v3 }
  0xc7   :  { %9338 = vmatprep.subr.bf16.mxu0 %v9862_v5  ;;  %8053 = vmatprep.mubr.f32.mxu1 %v6294_v18 }
  0xc8   :  { %7998 = vmatmul.mubr.f32.gmra.mrb[82].mxu0 %v6279_v20  ;;  %9370 = vmatprep.subr.bf16.mxu1 %v9862_v5  ;;  %v6336_v20 = vld [vmem:[%s13356_s0 + $0x6e0] sm:$0xff] }
  0xc9   :  { %9340 = vmatpush3.bf16.msra.mxu0 %v9862_v5  ;;  %8054 = vmatmul.mubr.f32.gmra.mrb[82].mxu1 %v6295_v21 }
  0xca   :  { %8000 = vmatprep.mubr.f32.mxu0 %v6280_v23  ;;  %9372 = vmatpush3.bf16.msra.mxu1 %v9862_v5  ;;  %v6321_v23 = vld [vmem:[%s13356_s0 + $0x668] sm:$0xff] }
  0xcb   :  { %9342 = vmatprep.subr.bf16.mxu0 %v9876_v8  ;;  %8056 = vmatprep.mubr.f32.mxu1 %v6296_v24  ;;  %v6337_v24 = vld [vmem:[%s13356_s0 + $0x6e8] sm:$0xff] }
  0xcc   :  { %8001 = vmatmul.mubr.f32.gmra.mrb[84].mxu0 %v6281_v26  ;;  %9374 = vmatprep.subr.bf16.mxu1 %v9876_v8 }
  0xcd   :  { %9344 = vmatpush3.bf16.msra.mxu0 %v9876_v8  ;;  %8057 = vmatmul.mubr.f32.gmra.mrb[84].mxu1 %v6297_v27 }
  0xce   :  { %8003 = vmatprep.mubr.f32.mxu0 %v6282_v28  ;;  %9376 = vmatpush3.bf16.msra.mxu1 %v9876_v8  ;;  %v6322_v28 = vld [vmem:[%s13356_s0 + $0x670] sm:$0xff] }
  0xcf   :  { %9346 = vmatprep.subr.bf16.mxu0 %v9894_v13  ;;  %8059 = vmatprep.mubr.f32.mxu1 %v6298_v29 }
  0xd0   :  { %8004 = vmatmul.mubr.f32.gmra.mrb[86].mxu0 %v6283_v30  ;;  %9378 = vmatprep.subr.bf16.mxu1 %v9894_v13 }
  0xd1   :  { %9348 = vmatpush3.bf16.msra.mxu0 %v9894_v13  ;;  %8060 = vmatmul.mubr.f32.gmra.mrb[86].mxu1 %v6299_v31 }
  0xd2   :  { %8006 = vmatprep.mubr.f32.mxu0 %v6284_v32  ;;  %9380 = vmatpush3.bf16.msra.mxu1 %v9894_v13  ;;  %v6338_v32 = vld [vmem:[%s13356_s0 + $0x6f0] sm:$0xff] }
  0xd3   :  { %9350 = vmatprep.subr.bf16.mxu0 %v9906_v16  ;;  %8062 = vmatprep.mubr.f32.mxu1 %v6300_v33 }
  0xd4   :  { %8007 = vmatmul.mubr.f32.gmra.mrb[88].mxu0 %v6285_v34  ;;  %9382 = vmatprep.subr.bf16.mxu1 %v9906_v16  ;;  %v6323_v34 = vld [vmem:[%s13356_s0 + $0x678] sm:$0xff] }
  0xd5   :  { %9352 = vmatpush3.bf16.msra.mxu0 %v9906_v16  ;;  %8063 = vmatmul.mubr.f32.gmra.mrb[88].mxu1 %v6301_v35  ;;  %v6339_v35 = vld [vmem:[%s13356_s0 + $0x6f8] sm:$0xff] }
  0xd6   :  { %8009 = vmatprep.mubr.f32.mxu0 %v6286_v36  ;;  %9384 = vmatpush3.bf16.msra.mxu1 %v9906_v16 }
  0xd7   :  { %9354 = vmatprep.subr.bf16.mxu0 %v9918_v19  ;;  %8065 = vmatprep.mubr.f32.mxu1 %v6302_v37 }
  0xd8   :  { %8010 = vmatmul.mubr.f32.gmra.mrb[90].mxu0 %v6287_v38  ;;  %9386 = vmatprep.subr.bf16.mxu1 %v9918_v19  ;;  %v6340_v38 = vld [vmem:[%s13356_s0 + $0x700] sm:$0xff] }
  0xd9   :  { %9356 = vmatpush3.bf16.msra.mxu0 %v9918_v19  ;;  %8066 = vmatmul.mubr.f32.gmra.mrb[90].mxu1 %v6303_v39 }
  0xda   :  { %8012 = vmatprep.mubr.f32.mxu0 %v6288_v40  ;;  %9388 = vmatpush3.bf16.msra.mxu1 %v9918_v19 }
  0xdb   :  { %9358 = vmatprep.subr.bf16.mxu0 %v9930_v22  ;;  %8068 = vmatprep.mubr.f32.mxu1 %v6304_v41 }
  0xdc   :  { %8013 = vmatmul.mubr.f32.gmra.mrb[92].mxu0 %v6289_v42  ;;  %9390 = vmatprep.subr.bf16.mxu1 %v9930_v22  ;;  %v6356_v42 = vld [vmem:[%s13356_s0 + $0x780] sm:$0xff] }
  0xdd   :  { %9360 = vmatpush3.bf16.msra.mxu0 %v9930_v22  ;;  %8069 = vmatmul.mubr.f32.gmra.mrb[92].mxu1 %v6305_v43 }
  0xde   :  { %8015 = vmatprep.mubr.f32.mxu0 %v6290_v44  ;;  %9392 = vmatpush3.bf16.msra.mxu1 %v9930_v22  ;;  %v6341_v44 = vld [vmem:[%s13356_s0 + $0x708] sm:$0xff] }
  0xdf   :  { %9362 = vmatprep.subr.bf16.mxu0 %v9942_v25  ;;  %8071 = vmatprep.mubr.f32.mxu1 %v6306_v45  ;;  %v6357_v45 = vld [vmem:[%s13356_s0 + $0x788] sm:$0xff] }
  0xe0   :  { %8016 = vmatmul.mubr.f32.gmra.mrb[94].mxu0 %v6291_v46  ;;  %9394 = vmatprep.subr.bf16.mxu1 %v9942_v25 }
  0xe1   :  { %9364 = vmatpush3.bf16.msra.mxu0 %v9942_v25  ;;  %8072 = vmatmul.mubr.f32.gmra.mrb[94].mxu1 %v6307_v47 }
  0xe2   :  { %8106 = vmatprep.mubr.f32.mxu0 %v6308_v48  ;;  %9396 = vmatpush3.bf16.msra.mxu1 %v9942_v25  ;;  %v6342_v48 = vld [vmem:[%s13356_s0 + $0x710] sm:$0xff] }
  0xe3   :  { %9398 = vmatprep.subr.bf16.mxu0 %v9857_v3  ;;  %8162 = vmatprep.mubr.f32.mxu1 %v6324_v49 }
  0xe4   :  { %8107 = vmatmul.mubr.f32.vlgmr.msra.gmra.mrb[96].mxu0 %v6309_v50  ;;  %9430 = vmatprep.subr.bf16.mxu1 %v9857_v3 }
  0xe5   :  { %9400 = vmatpush3.bf16.msra.mxu0 %v9857_v3  ;;  %8163 = vmatmul.mubr.f32.vlgmr.msra.gmra.mrb[96].mxu1 %v6325_v51 }
  0xe6   :  { %8109 = vmatprep.mubr.f32.mxu0 %v6310_v52  ;;  %9432 = vmatpush3.bf16.msra.mxu1 %v9857_v3  ;;  %v6358_v52 = vld [vmem:[%s13356_s0 + $0x790] sm:$0xff] }
  0xe7   :  { %9402 = vmatprep.subr.bf16.mxu0 %v9862_v5  ;;  %8165 = vmatprep.mubr.f32.mxu1 %v6326_v53 }
  0xe8   :  { %8110 = vmatmul.mubr.f32.gmra.mrb[98].mxu0 %v6311_v54  ;;  %9434 = vmatprep.subr.bf16.mxu1 %v9862_v5  ;;  %v6343_v54 = vld [vmem:[%s13356_s0 + $0x718] sm:$0xff] }
  0xe9   :  { %9404 = vmatpush3.bf16.msra.mxu0 %v9862_v5  ;;  %8166 = vmatmul.mubr.f32.gmra.mrb[98].mxu1 %v6327_v55  ;;  %v6359_v55 = vld [vmem:[%s13356_s0 + $0x798] sm:$0xff] }
  0xea   :  { %8112 = vmatprep.mubr.f32.mxu0 %v6312_v56  ;;  %9436 = vmatpush3.bf16.msra.mxu1 %v9862_v5 }
  0xeb   :  { %9406 = vmatprep.subr.bf16.mxu0 %v9876_v8  ;;  %8168 = vmatprep.mubr.f32.mxu1 %v6328_v57 }
  0xec   :  { %8113 = vmatmul.mubr.f32.gmra.mrb[100].mxu0 %v6313_v58  ;;  %9438 = vmatprep.subr.bf16.mxu1 %v9876_v8  ;;  %v6344_v58 = vld [vmem:[%s13356_s0 + $0x720] sm:$0xff] }
  0xed   :  { %9408 = vmatpush3.bf16.msra.mxu0 %v9876_v8  ;;  %8169 = vmatmul.mubr.f32.gmra.mrb[100].mxu1 %v6329_v59 }
  0xee   :  { %8115 = vmatprep.mubr.f32.mxu0 %v6314_v60  ;;  %9440 = vmatpush3.bf16.msra.mxu1 %v9876_v8 }
  0xef   :  { %9410 = vmatprep.subr.bf16.mxu0 %v9894_v13  ;;  %8171 = vmatprep.mubr.f32.mxu1 %v6330_v61 }
  0xf0   :  { %8116 = vmatmul.mubr.f32.gmra.mrb[102].mxu0 %v6315_v62  ;;  %9442 = vmatprep.subr.bf16.mxu1 %v9894_v13  ;;  %v6360_v62 = vld [vmem:[%s13356_s0 + $0x7a0] sm:$0xff] }
  0xf1   :  { %9412 = vmatpush3.bf16.msra.mxu0 %v9894_v13  ;;  %8172 = vmatmul.mubr.f32.gmra.mrb[102].mxu1 %v6331_v63 }
  0xf2   :  { %8118 = vmatprep.mubr.f32.mxu0 %v6316_v0  ;;  %9444 = vmatpush3.bf16.msra.mxu1 %v9894_v13  ;;  %v6345_v0 = vld [vmem:[%s13356_s0 + $0x728] sm:$0xff] }
  0xf3   :  { %9414 = vmatprep.subr.bf16.mxu0 %v9906_v16  ;;  %8174 = vmatprep.mubr.f32.mxu1 %v6332_v1  ;;  %v6361_v1 = vld [vmem:[%s13356_s0 + $0x7a8] sm:$0xff] }
  0xf4   :  { %8119 = vmatmul.mubr.f32.gmra.mrb[104].mxu0 %v6317_v2  ;;  %9446 = vmatprep.subr.bf16.mxu1 %v9906_v16 }
  0xf5   :  { %9416 = vmatpush3.bf16.msra.mxu0 %v9906_v16  ;;  %8175 = vmatmul.mubr.f32.gmra.mrb[104].mxu1 %v6333_v4 }
  0xf6   :  { %8121 = vmatprep.mubr.f32.mxu0 %v6318_v6  ;;  %9448 = vmatpush3.bf16.msra.mxu1 %v9906_v16  ;;  %v6346_v6 = vld [vmem:[%s13356_s0 + $0x730] sm:$0xff] }
  0xf7   :  { %v10804_v11 = vpop.f32.mrb[0].mxu0  ;;  %v10806_v12 = vpop.f32.mrb[0].mxu1  ;;  %9418 = vmatprep.subr.bf16.mxu0 %v9918_v19  ;;  %8177 = vmatprep.mubr.f32.mxu1 %v6334_v7 }
  0xf8   :  { %v360_v15 = vmax.f32 %v10804_v11, %v10806_v12  ;;  %v10814_v17 = vpop.f32.mrb[1].mxu0  ;;  %v10816_v18 = vpop.f32.mrb[1].mxu1  ;;  %8122 = vmatmul.mubr.f32.gmra.mrb[106].mxu0 %v6319_v9  ;;  %9450 = vmatprep.subr.bf16.mxu1 %v9918_v19  ;;  %v6353_v12 = vld [vmem:[%s13356_s0 + $0x768] sm:$0xff] }
  0xf9   :  { %v359_v21 = vmax.f32 %v10814_v17, %v10816_v18  ;;  %9420 = vmatpush3.bf16.msra.mxu0 %v9918_v19  ;;  %8178 = vmatmul.mubr.f32.gmra.mrb[106].mxu1 %v6335_v10  ;;  %v6369_v17 = vld [vmem:[%s13356_s0 + $0x7e8] sm:$0xff] }
  0xfa   :  { %8124 = vmatprep.mubr.f32.mxu0 %v6320_v14  ;;  %9452 = vmatpush3.bf16.msra.mxu1 %v9918_v19  ;;  %v6362_v14 = vld [vmem:[%s13356_s0 + $0x7b0] sm:$0xff] }
  0xfb   :  { %v10832_v26 = vpop.f32.mrb[2].mxu0  ;;  %v10834_v27 = vpop.f32.mrb[2].mxu1  ;;  %9422 = vmatprep.subr.bf16.mxu0 %v9930_v22  ;;  %8180 = vmatprep.mubr.f32.mxu1 %v6336_v20 }
  0xfc   :  { %v362_v29 = vmax.f32 %v10832_v26, %v10834_v27  ;;  %v10842_v30 = vpop.f32.mrb[3].mxu0  ;;  %v10844_v31 = vpop.f32.mrb[3].mxu1  ;;  %8125 = vmatmul.mubr.f32.gmra.mrb[108].mxu0 %v6321_v23  ;;  %9454 = vmatprep.subr.bf16.mxu1 %v9930_v22  ;;  %v6347_v23 = vld [vmem:[%s13356_s0 + $0x738] sm:$0xff] }
  0xfd   :  { %v361_v33 = vmax.f32 %v10842_v30, %v10844_v31  ;;  %9424 = vmatpush3.bf16.msra.mxu0 %v9930_v22  ;;  %8181 = vmatmul.mubr.f32.gmra.mrb[108].mxu1 %v6337_v24  ;;  %v6363_v24 = vld [vmem:[%s13356_s0 + $0x7b8] sm:$0xff] }
  0xfe   :  { %8127 = vmatprep.mubr.f32.mxu0 %v6322_v28  ;;  %9456 = vmatpush3.bf16.msra.mxu1 %v9930_v22  ;;  %v6355_v27 = vld [vmem:[%s13356_s0 + $0x778] sm:$0xff] }
  0xff   :  { %v10860_v36 = vpop.f32.mrb[4].mxu0  ;;  %v10862_v37 = vpop.f32.mrb[4].mxu1  ;;  %9426 = vmatprep.subr.bf16.mxu0 %v9942_v25  ;;  %8183 = vmatprep.mubr.f32.mxu1 %v6338_v32  ;;  %v6371_v30 = vld [vmem:[%s13356_s0 + $0x7f8] sm:$0xff] }
 0x100   :  { %v364_v39 = vmax.f32 %v10860_v36, %v10862_v37  ;;  %v10870_v40 = vpop.f32.mrb[5].mxu0  ;;  %v10872_v41 = vpop.f32.mrb[5].mxu1  ;;  %8128 = vmatmul.mubr.f32.gmra.mrb[110].mxu0 %v6323_v34  ;;  %9458 = vmatprep.subr.bf16.mxu1 %v9942_v25  ;;  %v6348_v34 = vld [vmem:[%s13356_s0 + $0x740] sm:$0xff]  ;;  %v6373_v37 = vld [vmem:[%s13356_s0 + $0x808] sm:$0xff] }
 0x101   :  { %v363_v43 = vmax.f32 %v10870_v40, %v10872_v41  ;;  %9428 = vmatpush3.bf16.msra.mxu0 %v9942_v25  ;;  %8184 = vmatmul.mubr.f32.gmra.mrb[110].mxu1 %v6339_v35  ;;  %v6389_v40 = vld [vmem:[%s13356_s0 + $0x888] sm:$0xff] }
 0x102   :  { %8218 = vmatprep.mubr.f32.mxu0 %v6340_v38  ;;  %9460 = vmatpush3.bf16.msra.mxu1 %v9942_v25 }
 0x103   :  { %v10888_v46 = vpop.f32.mrb[6].mxu0  ;;  %v10890_v47 = vpop.f32.mrb[6].mxu1  ;;  %9462 = vmatprep.subr.bf16.mxu0 %v9857_v3  ;;  %8274 = vmatprep.mubr.f32.mxu1 %v6356_v42 }
 0x104   :  { %v366_v49 = vmax.f32 %v10888_v46, %v10890_v47  ;;  %v10898_v50 = vpop.f32.mrb[7].mxu0  ;;  %v10900_v51 = vpop.f32.mrb[7].mxu1  ;;  %8219 = vmatmul.mubr.f32.vlgmr.msra.gmra.mrb[112].mxu0 %v6341_v44  ;;  %9494 = vmatprep.subr.bf16.mxu1 %v9857_v3  ;;  %v6364_v44 = vld [vmem:[%s13356_s0 + $0x7c0] sm:$0xff]  ;;  %v6375_v47 = vld [vmem:[%s13356_s0 + $0x818] sm:$0xff] }
 0x105   :  { %v365_v53 = vmax.f32 %v10898_v50, %v10900_v51  ;;  %9464 = vmatpush3.bf16.msra.mxu0 %v9857_v3  ;;  %8275 = vmatmul.mubr.f32.vlgmr.msra.gmra.mrb[112].mxu1 %v6357_v45  ;;  %v6391_v50 = vld [vmem:[%s13356_s0 + $0x898] sm:$0xff] }
 0x106   :  { %8221 = vmatprep.mubr.f32.mxu0 %v6342_v48  ;;  %9496 = vmatpush3.bf16.msra.mxu1 %v9857_v3  ;;  %v6349_v48 = vld [vmem:[%s13356_s0 + $0x748] sm:$0xff] }
 0x107   :  { %v10916_v56 = vpop.f32.mrb[8].mxu0  ;;  %v10918_v57 = vpop.f32.mrb[8].mxu1  ;;  %9466 = vmatprep.subr.bf16.mxu0 %v9862_v5  ;;  %8277 = vmatprep.mubr.f32.mxu1 %v6358_v52  ;;  %v6365_v52 = vld [vmem:[%s13356_s0 + $0x7c8] sm:$0xff] }
 0x108   :  { %v368_v59 = vmax.f32 %v10916_v56, %v10918_v57  ;;  %v10926_v60 = vpop.f32.mrb[9].mxu0  ;;  %v10928_v61 = vpop.f32.mrb[9].mxu1  ;;  %8222 = vmatmul.mubr.f32.gmra.mrb[114].mxu0 %v6343_v54  ;;  %9498 = vmatprep.subr.bf16.mxu1 %v9862_v5  ;;  %v6377_v57 = vld [vmem:[%s13356_s0 + $0x828] sm:$0xff] }
 0x109   :  { %v367_v63 = vmax.f32 %v10926_v60, %v10928_v61  ;;  %9468 = vmatpush3.bf16.msra.mxu0 %v9862_v5  ;;  %8278 = vmatmul.mubr.f32.gmra.mrb[114].mxu1 %v6359_v55  ;;  %v6393_v60 = vld [vmem:[%s13356_s0 + $0x8a8] sm:$0xff] }
 0x10a   :  { %8224 = vmatprep.mubr.f32.mxu0 %v6344_v58  ;;  %9500 = vmatpush3.bf16.msra.mxu1 %v9862_v5  ;;  %v6350_v58 = vld [vmem:[%s13356_s0 + $0x750] sm:$0xff] }
 0x10b   :  { %v10944_v2 = vpop.f32.mrb[10].mxu0  ;;  %v10946_v4 = vpop.f32.mrb[10].mxu1  ;;  %9470 = vmatprep.subr.bf16.mxu0 %v9876_v8  ;;  %8280 = vmatprep.mubr.f32.mxu1 %v6360_v62 }
 0x10c   :  { %v370_v7 = vmax.f32 %v10944_v2, %v10946_v4  ;;  %v10954_v9 = vpop.f32.mrb[11].mxu0  ;;  %v10956_v10 = vpop.f32.mrb[11].mxu1  ;;  %8225 = vmatmul.mubr.f32.gmra.mrb[116].mxu0 %v6345_v0  ;;  %9502 = vmatprep.subr.bf16.mxu1 %v9876_v8  ;;  %v6379_v4 = vld [vmem:[%s13356_s0 + $0x838] sm:$0xff] }
 0x10d   :  { %v369_v20 = vmax.f32 %v10954_v9, %v10956_v10  ;;  %9472 = vmatpush3.bf16.msra.mxu0 %v9876_v8  ;;  %8281 = vmatmul.mubr.f32.gmra.mrb[116].mxu1 %v6361_v1  ;;  %v6395_v9 = vld [vmem:[%s13356_s0 + $0x8b8] sm:$0xff] }
 0x10e   :  { %8227 = vmatprep.mubr.f32.mxu0 %v6346_v6  ;;  %9504 = vmatpush3.bf16.msra.mxu1 %v9876_v8  ;;  %v6366_v6 = vld [vmem:[%s13356_s0 + $0x7d0] sm:$0xff] }
 0x10f   :  { %v10972_v28 = vpop.f32.mrb[12].mxu0  ;;  %v10974_v32 = vpop.f32.mrb[12].mxu1  ;;  %9474 = vmatprep.subr.bf16.mxu0 %v9894_v13  ;;  %8283 = vmatprep.mubr.f32.mxu1 %v6362_v14  ;;  %v6368_v14 = vld [vmem:[%s13356_s0 + $0x7e0] sm:$0xff] }
 0x110   :  { %v372_v35 = vmax.f32 %v10972_v28, %v10974_v32  ;;  %v10982_v38 = vpop.f32.mrb[13].mxu0  ;;  %v10984_v42 = vpop.f32.mrb[13].mxu1  ;;  %8228 = vmatmul.mubr.f32.gmra.mrb[118].mxu0 %v6347_v23  ;;  %9506 = vmatprep.subr.bf16.mxu1 %v9894_v13  ;;  %v6351_v23 = vld [vmem:[%s13356_s0 + $0x758] sm:$0xff]  ;;  %v6381_v32 = vld [vmem:[%s13356_s0 + $0x848] sm:$0xff] }
 0x111   :  { %v371_v45 = vmax.f32 %v10982_v38, %v10984_v42  ;;  %9476 = vmatpush3.bf16.msra.mxu0 %v9894_v13  ;;  %8284 = vmatmul.mubr.f32.gmra.mrb[118].mxu1 %v6363_v24  ;;  %v6367_v24 = vld [vmem:[%s13356_s0 + $0x7d8] sm:$0xff]  ;;  %v6397_v38 = vld [vmem:[%s13356_s0 + $0x8c8] sm:$0xff] }
 0x112   :  { %8230 = vmatprep.mubr.f32.mxu0 %v6348_v34  ;;  %9508 = vmatpush3.bf16.msra.mxu1 %v9894_v13 }
 0x113   :  { %v11000_v54 = vpop.f32.mrb[14].mxu0  ;;  %v11002_v55 = vpop.f32.mrb[14].mxu1  ;;  %9478 = vmatprep.subr.bf16.mxu0 %v9906_v16  ;;  %8286 = vmatprep.mubr.f32.mxu1 %v6364_v44  ;;  %v6352_v44 = vld [vmem:[%s13356_s0 + $0x760] sm:$0xff] }
 0x114   :  { %v374_v62 = vmax.f32 %v11000_v54, %v11002_v55  ;;  %v11010_v0 = vpop.f32.mrb[15].mxu0  ;;  %v11012_v1 = vpop.f32.mrb[15].mxu1  ;;  %8231 = vmatmul.mubr.f32.gmra.mrb[120].mxu0 %v6349_v48  ;;  %9510 = vmatprep.subr.bf16.mxu1 %v9906_v16  ;;  %v6383_v55 = vld [vmem:[%s13356_s0 + $0x858] sm:$0xff] }
 0x115   :  { %9480 = vmatpush3.bf16.msra.mxu0 %v9906_v16  ;;  %8287 = vmatmul.mubr.f32.gmra.mrb[120].mxu1 %v6365_v52 }
 0x116   :  { %8233 = vmatprep.mubr.f32.mxu0 %v6350_v58  ;;  %9512 = vmatpush3.bf16.msra.mxu1 %v9906_v16 }
 0x117   :  { %v7548_v34 = vpop.f32.mrb[16].mxu0  ;;  %9482 = vmatprep.subr.bf16.mxu0 %v9918_v19  ;;  %8289 = vmatprep.mubr.f32.mxu1 %v6366_v6 }
 0x118   :  { %v11035_v48 = vmax.f32 %v360_v15, %v7548_v34  ;;  %v458_v52 = vpop.f32.mrb[17].mxu0  ;;  %8234 = vmatmul.mubr.f32.gmra.mrb[122].mxu0 %v6351_v23  ;;  %v11037_v58 = vpop.f32.mrb[16].mxu1  ;;  %9514 = vmatprep.subr.bf16.mxu1 %v9918_v19  ;;  %v6354_v23 = vld [vmem:[%s13356_s0 + $0x770] sm:$0xff] }
 0x119   :  { %v11046_v6 = vmax.f32 %v359_v21, %v458_v52  ;;  %9484 = vmatpush3.bf16.msra.mxu0 %v9918_v19  ;;  %v11049_v11 = vpop.f32.mrb[17].mxu1  ;;  %8290 = vmatmul.mubr.f32.gmra.mrb[122].mxu1 %v6367_v24  ;;  %v6370_v52 = vld [vmem:[%s13356_s0 + $0x7f0] sm:$0xff] }
 0x11a   :  { %v716_v15 = vmax.f32 %v11035_v48, %v11037_v58  ;;  %8236 = vmatprep.mubr.f32.mxu0 %v6352_v44  ;;  %9516 = vmatpush3.bf16.msra.mxu1 %v9918_v19  ;;  %v6385_v58 = vld [vmem:[%s13356_s0 + $0x868] sm:$0xff] }
 0x11b   :  { %v715_v18 = vmax.f32 %v11046_v6, %v11049_v11  ;;  %v7551_v21 = vpop.f32.mrb[18].mxu0  ;;  %9486 = vmatprep.subr.bf16.mxu0 %v9930_v22  ;;  %8292 = vmatprep.mubr.f32.mxu1 %v6368_v14  ;;  %v6401_v6 = vld [vmem:[%s13356_s0 + $0x8e8] sm:$0xff] }
 0x11c   :  { %v11069_v24 = vmax.f32 %v362_v29, %v7551_v21  ;;  %v468_v34 = vpop.f32.mrb[19].mxu0  ;;  %8237 = vmatmul.mubr.f32.gmra.mrb[124].mxu0 %v6353_v12  ;;  %v11071_v44 = vpop.f32.mrb[18].mxu1  ;;  %9518 = vmatprep.subr.bf16.mxu1 %v9930_v22  ;;  %v6372_v12 = vld [vmem:[%s13356_s0 + $0x800] sm:$0xff] }
 0x11d   :  { %v11080_v14 = vmax.f32 %v361_v33, %v468_v34  ;;  %9488 = vmatpush3.bf16.msra.mxu0 %v9930_v22  ;;  %v11083_v26 = vpop.f32.mrb[19].mxu1  ;;  %8293 = vmatmul.mubr.f32.gmra.mrb[124].mxu1 %v6369_v17  ;;  %v6388_v34 = vld [vmem:[%s13356_s0 + $0x880] sm:$0xff] }
 0x11e   :  { %v718_v29 = vmax.f32 %v11069_v24, %v11071_v44  ;;  %8239 = vmatprep.mubr.f32.mxu0 %v6354_v23  ;;  %9520 = vmatpush3.bf16.msra.mxu1 %v9930_v22  ;;  %v6387_v44 = vld [vmem:[%s13356_s0 + $0x878] sm:$0xff] }
 0x11f   :  { %v717_v31 = vmax.f32 %v11080_v14, %v11083_v26  ;;  %v7554_v33 = vpop.f32.mrb[20].mxu0  ;;  %9490 = vmatprep.subr.bf16.mxu0 %v9942_v25  ;;  %8295 = vmatprep.mubr.f32.mxu1 %v6370_v52  ;;  %v6403_v14 = vld [vmem:[%s13356_s0 + $0x8f8] sm:$0xff] }
 0x120   :  { %v11103_v17 = vmax.f32 %v364_v39, %v7554_v33  ;;  %v478_v21 = vpop.f32.mrb[21].mxu0  ;;  %8240 = vmatmul.mubr.f32.gmra.mrb[126].mxu0 %v6355_v27  ;;  %v11105_v23 = vpop.f32.mrb[20].mxu1  ;;  %9522 = vmatprep.subr.bf16.mxu1 %v9942_v25  ;;  %v6374_v27 = vld [vmem:[%s13356_s0 + $0x810] sm:$0xff] }
 0x121   :  { %v11114_v52 = vmax.f32 %v363_v43, %v478_v21  ;;  %9492 = vmatpush3.bf16.msra.mxu0 %v9942_v25  ;;  %v11117_v36 = vpop.f32.mrb[21].mxu1  ;;  %8296 = vmatmul.mubr.f32.gmra.mrb[126].mxu1 %v6371_v30  ;;  %v6390_v21 = vld [vmem:[%s13356_s0 + $0x890] sm:$0xff] }
 0x122   :  { %v720_v39 = vmax.f32 %v11103_v17, %v11105_v23  ;;  %8330 = vmatprep.mubr.f32.mxu0 %v6372_v12  ;;  %9524 = vmatpush3.bf16.msra.mxu1 %v9942_v25  ;;  %v6405_v23 = vld [vmem:[%s13356_s0 + $0x908] sm:$0xff] }
 0x123   :  { %v719_v41 = vmax.f32 %v11114_v52, %v11117_v36  ;;  %v7557_v43 = vpop.f32.mrb[22].mxu0  ;;  %9526 = vmatprep.subr.bf16.mxu0 %v9857_v3  ;;  %8386 = vmatprep.mubr.f32.mxu1 %v6388_v34  ;;  %v6421_v52 = vld [vmem:[%s13356_s0 + $0x988] sm:$0xff] }
 0x124   :  { %v11137_v30 = vmax.f32 %v366_v49, %v7557_v43  ;;  %v488_v33 = vpop.f32.mrb[23].mxu0  ;;  %8331 = vmatmul.mubr.f32.vlgmr.msra.gmra.mrb[128].mxu0 %v6373_v37  ;;  %v11139_v12 = vpop.f32.mrb[22].mxu1  ;;  %9558 = vmatprep.subr.bf16.mxu1 %v9857_v3  ;;  %v6376_v37 = vld [vmem:[%s13356_s0 + $0x820] sm:$0xff] }
 0x125   :  { %v11148_v34 = vmax.f32 %v365_v53, %v488_v33  ;;  %9528 = vmatpush3.bf16.msra.mxu0 %v9857_v3  ;;  %v11151_v46 = vpop.f32.mrb[23].mxu1  ;;  %8387 = vmatmul.mubr.f32.vlgmr.msra.gmra.mrb[128].mxu1 %v6389_v40  ;;  %v6392_v33 = vld [vmem:[%s13356_s0 + $0x8a0] sm:$0xff] }
 0x126   :  { %v722_v49 = vmax.f32 %v11137_v30, %v11139_v12  ;;  %8333 = vmatprep.mubr.f32.mxu0 %v6374_v27  ;;  %9560 = vmatpush3.bf16.msra.mxu1 %v9857_v3  ;;  %v6407_v12 = vld [vmem:[%s13356_s0 + $0x918] sm:$0xff] }
 0x127   :  { %v721_v51 = vmax.f32 %v11148_v34, %v11151_v46  ;;  %v7560_v53 = vpop.f32.mrb[24].mxu0  ;;  %9530 = vmatprep.subr.bf16.mxu0 %v9862_v5  ;;  %8389 = vmatprep.mubr.f32.mxu1 %v6390_v21  ;;  %v6423_v34 = vld [vmem:[%s13356_s0 + $0x998] sm:$0xff] }
 0x128   :  { %v11171_v40 = vmax.f32 %v368_v59, %v7560_v53  ;;  %v498_v43 = vpop.f32.mrb[25].mxu0  ;;  %8334 = vmatmul.mubr.f32.gmra.mrb[130].mxu0 %v6375_v47  ;;  %v11173_v27 = vpop.f32.mrb[24].mxu1  ;;  %9562 = vmatprep.subr.bf16.mxu1 %v9862_v5  ;;  %v6378_v47 = vld [vmem:[%s13356_s0 + $0x830] sm:$0xff] }
 0x129   :  { %v11182_v21 = vmax.f32 %v367_v63, %v498_v43  ;;  %9532 = vmatpush3.bf16.msra.mxu0 %v9862_v5  ;;  %v11185_v56 = vpop.f32.mrb[25].mxu1  ;;  %8390 = vmatmul.mubr.f32.gmra.mrb[130].mxu1 %v6391_v50  ;;  %v6394_v43 = vld [vmem:[%s13356_s0 + $0x8b0] sm:$0xff] }
 0x12a   :  { %v724_v59 = vmax.f32 %v11171_v40, %v11173_v27  ;;  %8336 = vmatprep.mubr.f32.mxu0 %v6376_v37  ;;  %9564 = vmatpush3.bf16.msra.mxu1 %v9862_v5  ;;  %v6409_v27 = vld [vmem:[%s13356_s0 + $0x928] sm:$0xff] }
 0x12b   :  { %v723_v61 = vmax.f32 %v11182_v21, %v11185_v56  ;;  %v7563_v63 = vpop.f32.mrb[26].mxu0  ;;  %9534 = vmatprep.subr.bf16.mxu0 %v9876_v8  ;;  %8392 = vmatprep.mubr.f32.mxu1 %v6392_v33  ;;  %v6425_v21 = vld [vmem:[%s13356_s0 + $0x9a8] sm:$0xff] }
 0x12c   :  { %v11205_v50 = vmax.f32 %v370_v7, %v7563_v63  ;;  %v508_v53 = vpop.f32.mrb[27].mxu0  ;;  %8337 = vmatmul.mubr.f32.gmra.mrb[132].mxu0 %v6377_v57  ;;  %v11207_v37 = vpop.f32.mrb[26].mxu1  ;;  %9566 = vmatprep.subr.bf16.mxu1 %v9876_v8  ;;  %v6380_v57 = vld [vmem:[%s13356_s0 + $0x840] sm:$0xff] }
 0x12d   :  { %v11216_v33 = vmax.f32 %v369_v20, %v508_v53  ;;  %9536 = vmatpush3.bf16.msra.mxu0 %v9876_v8  ;;  %v11219_v2 = vpop.f32.mrb[27].mxu1  ;;  %8393 = vmatmul.mubr.f32.gmra.mrb[132].mxu1 %v6393_v60  ;;  %v6396_v53 = vld [vmem:[%s13356_s0 + $0x8c0] sm:$0xff] }
 0x12e   :  { %v726_v7 = vmax.f32 %v11205_v50, %v11207_v37  ;;  %8339 = vmatprep.mubr.f32.mxu0 %v6378_v47  ;;  %9568 = vmatpush3.bf16.msra.mxu1 %v9876_v8  ;;  %v6411_v37 = vld [vmem:[%s13356_s0 + $0x938] sm:$0xff] }
 0x12f   :  { %v725_v10 = vmax.f32 %v11216_v33, %v11219_v2  ;;  %v7566_v20 = vpop.f32.mrb[28].mxu0  ;;  %9538 = vmatprep.subr.bf16.mxu0 %v9894_v13  ;;  %8395 = vmatprep.mubr.f32.mxu1 %v6394_v43  ;;  %v6427_v33 = vld [vmem:[%s13356_s0 + $0x9b8] sm:$0xff] }
 0x130   :  { %v11239_v60 = vmax.f32 %v372_v35, %v7566_v20  ;;  %v518_v63 = vpop.f32.mrb[29].mxu0  ;;  %8340 = vmatmul.mubr.f32.gmra.mrb[134].mxu0 %v6379_v4  ;;  %v11241_v47 = vpop.f32.mrb[28].mxu1  ;;  %9570 = vmatprep.subr.bf16.mxu1 %v9894_v13  ;;  %v6382_v4 = vld [vmem:[%s13356_s0 + $0x850] sm:$0xff] }
 0x131   :  { %v11250_v43 = vmax.f32 %v371_v45, %v518_v63  ;;  %9540 = vmatpush3.bf16.msra.mxu0 %v9894_v13  ;;  %v11253_v28 = vpop.f32.mrb[29].mxu1  ;;  %8396 = vmatmul.mubr.f32.gmra.mrb[134].mxu1 %v6395_v9  ;;  %v6398_v63 = vld [vmem:[%s13356_s0 + $0x8d0] sm:$0xff] }
 0x132   :  { %v728_v35 = vmax.f32 %v11239_v60, %v11241_v47  ;;  %8342 = vmatprep.mubr.f32.mxu0 %v6380_v57  ;;  %9572 = vmatpush3.bf16.msra.mxu1 %v9894_v13  ;;  %v6413_v47 = vld [vmem:[%s13356_s0 + $0x948] sm:$0xff] }
 0x133   :  { %v7569_v45 = vpop.f32.mrb[30].mxu0  ;;  %9542 = vmatprep.subr.bf16.mxu0 %v9906_v16  ;;  %8398 = vmatprep.mubr.f32.mxu1 %v6396_v53  ;;  %v13361_v53 = vmax.f32 %v11010_v0, %v11012_v1  ;;  %v6399_v0 = vld [vmem:[%s13356_s0 + $0x8d8] sm:$0xff] }
 0x134   :  { %v11273_v9 = vmax.f32 %v374_v62, %v7569_v45  ;;  %v528_v20 = vpop.f32.mrb[31].mxu0  ;;  %8343 = vmatmul.mubr.f32.gmra.mrb[136].mxu0 %v6381_v32  ;;  %v11275_v57 = vpop.f32.mrb[30].mxu1  ;;  %9574 = vmatprep.subr.bf16.mxu1 %v9906_v16 }
 0x135   :  { %v11284_v42 = vmax.f32 %v13361_v53, %v528_v20  ;;  %9544 = vmatpush3.bf16.msra.mxu0 %v9906_v16  ;;  %v11287_v54 = vpop.f32.mrb[31].mxu1  ;;  %8399 = vmatmul.mubr.f32.gmra.mrb[136].mxu1 %v6397_v38  ;;  %v6384_v38 = vld [vmem:[%s13356_s0 + $0x860] sm:$0xff] }
 0x136   :  { %v730_v62 = vmax.f32 %v11273_v9, %v11275_v57  ;;  %8345 = vmatprep.mubr.f32.mxu0 %v6382_v4  ;;  %9576 = vmatpush3.bf16.msra.mxu1 %v9906_v16  ;;  %v6400_v53 = vld [vmem:[%s13356_s0 + $0x8e0] sm:$0xff]  ;;  %v6415_v57 = vld [vmem:[%s13356_s0 + $0x958] sm:$0xff] }
 0x137   :  { %v729_v1 = vmax.f32 %v11284_v42, %v11287_v54  ;;  %v7660_v32 = vpop.f32.mrb[32].mxu0  ;;  %9546 = vmatprep.subr.bf16.mxu0 %v9918_v19  ;;  %8401 = vmatprep.mubr.f32.mxu1 %v6398_v63  ;;  %v6431_v42 = vld [vmem:[%s13356_s0 + $0x9d8] sm:$0xff] }
 0x138   :  { %v11307_v45 = vmax.f32 %v716_v15, %v7660_v32  ;;  %v814_v4 = vpop.f32.mrb[33].mxu0  ;;  %8346 = vmatmul.mubr.f32.gmra.mrb[138].mxu0 %v6383_v55  ;;  %v11309_v20 = vpop.f32.mrb[32].mxu1  ;;  %9578 = vmatprep.subr.bf16.mxu1 %v9918_v19  ;;  %v6386_v55 = vld [vmem:[%s13356_s0 + $0x870] sm:$0xff] }
 0x139   :  { %v11318_v63 = vmax.f32 %v715_v18, %v814_v4  ;;  %9548 = vmatpush3.bf16.msra.mxu0 %v9918_v19  ;;  %v11321_v48 = vpop.f32.mrb[33].mxu1  ;;  %8402 = vmatmul.mubr.f32.gmra.mrb[138].mxu1 %v6399_v0  ;;  %v6402_v4 = vld [vmem:[%s13356_s0 + $0x8f0] sm:$0xff] }
 0x13a   :  { %v1072_v15 = vmax.f32 %v11307_v45, %v11309_v20  ;;  %8348 = vmatprep.mubr.f32.mxu0 %v6384_v38  ;;  %9580 = vmatpush3.bf16.msra.mxu1 %v9918_v19  ;;  %v6417_v20 = vld [vmem:[%s13356_s0 + $0x968] sm:$0xff] }
 0x13b   :  { %v1071_v11 = vmax.f32 %v11318_v63, %v11321_v48  ;;  %v7663_v18 = vpop.f32.mrb[34].mxu0  ;;  %9550 = vmatprep.subr.bf16.mxu0 %v9930_v22  ;;  %8404 = vmatprep.mubr.f32.mxu1 %v6400_v53  ;;  %v6433_v63 = vld [vmem:[%s13356_s0 + $0x9e8] sm:$0xff] }
 0x13c   :  { %v11341_v0 = vmax.f32 %v718_v29, %v7663_v18  ;;  %v824_v32 = vpop.f32.mrb[35].mxu0  ;;  %8349 = vmatmul.mubr.f32.gmra.mrb[140].mxu0 %v6385_v58  ;;  %v11343_v38 = vpop.f32.mrb[34].mxu1  ;;  %9582 = vmatprep.subr.bf16.mxu1 %v9930_v22  ;;  %v6404_v58 = vld [vmem:[%s13356_s0 + $0x900] sm:$0xff] }
 0x13d   :  { %v11352_v53 = vmax.f32 %v717_v31, %v824_v32  ;;  %9552 = vmatpush3.bf16.msra.mxu0 %v9930_v22  ;;  %v11355_v24 = vpop.f32.mrb[35].mxu1  ;;  %8405 = vmatmul.mubr.f32.gmra.mrb[140].mxu1 %v6401_v6  ;;  %v6420_v32 = vld [vmem:[%s13356_s0 + $0x980] sm:$0xff] }
 0x13e   :  { %v1074_v29 = vmax.f32 %v11341_v0, %v11343_v38  ;;  %8351 = vmatprep.mubr.f32.mxu0 %v6386_v55  ;;  %9584 = vmatpush3.bf16.msra.mxu1 %v9930_v22  ;;  %v6419_v38 = vld [vmem:[%s13356_s0 + $0x978] sm:$0xff] }
 0x13f   :  { %v1073_v26 = vmax.f32 %v11352_v53, %v11355_v24  ;;  %v7666_v31 = vpop.f32.mrb[36].mxu0  ;;  %9554 = vmatprep.subr.bf16.mxu0 %v9942_v25  ;;  %8407 = vmatprep.mubr.f32.mxu1 %v6402_v4  ;;  %v6435_v53 = vld [vmem:[%s13356_s0 + $0x9f8] sm:$0xff] }
 0x140   :  { %v11375_v6 = vmax.f32 %v720_v39, %v7666_v31  ;;  %v834_v18 = vpop.f32.mrb[37].mxu0  ;;  %8352 = vmatmul.mubr.f32.gmra.mrb[142].mxu0 %v6387_v44  ;;  %v11377_v55 = vpop.f32.mrb[36].mxu1  ;;  %9586 = vmatprep.subr.bf16.mxu1 %v9942_v25  ;;  %v6406_v44 = vld [vmem:[%s13356_s0 + $0x910] sm:$0xff] }
 0x141   :  { %v11386_v4 = vmax.f32 %v719_v41, %v834_v18  ;;  %9556 = vmatpush3.bf16.msra.mxu0 %v9942_v25  ;;  %v11389_v17 = vpop.f32.mrb[37].mxu1  ;;  %8408 = vmatmul.mubr.f32.gmra.mrb[142].mxu1 %v6403_v14  ;;  %v6422_v18 = vld [vmem:[%s13356_s0 + $0x990] sm:$0xff] }
 0x142   :  { %v1076_v39 = vmax.f32 %v11375_v6, %v11377_v55  ;;  %8442 = vmatprep.mubr.f32.mxu0 %v6404_v58  ;;  %9588 = vmatpush3.bf16.msra.mxu1 %v9942_v25  ;;  %v6437_v55 = vld [vmem:[%s13356_s0 + $0xa08] sm:$0xff] }
 0x143   :  { %v1075_v36 = vmax.f32 %v11386_v4, %v11389_v17  ;;  %v7669_v41 = vpop.f32.mrb[38].mxu0  ;;  %9590 = vmatprep.subr.bf16.mxu0 %v9857_v3  ;;  %8498 = vmatprep.mubr.f32.mxu1 %v6420_v32  ;;  %v6453_v4 = vld [vmem:[%s13356_s0 + $0xa88] sm:$0xff] }
 0x144   :  { %v11409_v14 = vmax.f32 %v722_v49, %v7669_v41  ;;  %v844_v31 = vpop.f32.mrb[39].mxu0  ;;  %8443 = vmatmul.mubr.f32.vlgmr.msra.gmra.mrb[144].mxu0 %v6405_v23  ;;  %v11411_v58 = vpop.f32.mrb[38].mxu1  ;;  %9622 = vmatprep.subr.bf16.mxu1 %v9857_v3  ;;  %v6408_v23 = vld [vmem:[%s13356_s0 + $0x920] sm:$0xff] }
 0x145   :  { %v11420_v32 = vmax.f32 %v721_v51, %v844_v31  ;;  %9592 = vmatpush3.bf16.msra.mxu0 %v9857_v3  ;;  %v11423_v30 = vpop.f32.mrb[39].mxu1  ;;  %8499 = vmatmul.mubr.f32.vlgmr.msra.gmra.mrb[144].mxu1 %v6421_v52  ;;  %v6424_v31 = vld [vmem:[%s13356_s0 + $0x9a0] sm:$0xff] }
 0x146   :  { %v1078_v49 = vmax.f32 %v11409_v14, %v11411_v58  ;;  %8445 = vmatprep.mubr.f32.mxu0 %v6406_v44  ;;  %9624 = vmatpush3.bf16.msra.mxu1 %v9857_v3  ;;  %v6439_v58 = vld [vmem:[%s13356_s0 + $0xa18] sm:$0xff] }
 0x147   :  { %v1077_v46 = vmax.f32 %v11420_v32, %v11423_v30  ;;  %v7672_v51 = vpop.f32.mrb[40].mxu0  ;;  %9594 = vmatprep.subr.bf16.mxu0 %v9862_v5  ;;  %8501 = vmatprep.mubr.f32.mxu1 %v6422_v18  ;;  %v6455_v32 = vld [vmem:[%s13356_s0 + $0xa98] sm:$0xff] }
 0x148   :  { %v11443_v52 = vmax.f32 %v724_v59, %v7672_v51  ;;  %v854_v41 = vpop.f32.mrb[41].mxu0  ;;  %8446 = vmatmul.mubr.f32.gmra.mrb[146].mxu0 %v6407_v12  ;;  %v11445_v44 = vpop.f32.mrb[40].mxu1  ;;  %9626 = vmatprep.subr.bf16.mxu1 %v9862_v5  ;;  %v6410_v12 = vld [vmem:[%s13356_s0 + $0x930] sm:$0xff] }
 0x149   :  { %v11454_v18 = vmax.f32 %v723_v61, %v854_v41  ;;  %9596 = vmatpush3.bf16.msra.mxu0 %v9862_v5  ;;  %v11457_v40 = vpop.f32.mrb[41].mxu1  ;;  %8502 = vmatmul.mubr.f32.gmra.mrb[146].mxu1 %v6423_v34  ;;  %v6426_v41 = vld [vmem:[%s13356_s0 + $0x9b0] sm:$0xff] }
 0x14a   :  { %v1080_v59 = vmax.f32 %v11443_v52, %v11445_v44  ;;  %8448 = vmatprep.mubr.f32.mxu0 %v6408_v23  ;;  %9628 = vmatpush3.bf16.msra.mxu1 %v9862_v5  ;;  %v6441_v44 = vld [vmem:[%s13356_s0 + $0xa28] sm:$0xff] }
 0x14b   :  { %v1079_v56 = vmax.f32 %v11454_v18, %v11457_v40  ;;  %v7675_v61 = vpop.f32.mrb[42].mxu0  ;;  %9598 = vmatprep.subr.bf16.mxu0 %v9876_v8  ;;  %8504 = vmatprep.mubr.f32.mxu1 %v6424_v31  ;;  %v6457_v18 = vld [vmem:[%s13356_s0 + $0xaa8] sm:$0xff] }
 0x14c   :  { %v11477_v34 = vmax.f32 %v726_v7, %v7675_v61  ;;  %v864_v51 = vpop.f32.mrb[43].mxu0  ;;  %8449 = vmatmul.mubr.f32.gmra.mrb[148].mxu0 %v6409_v27  ;;  %v11479_v23 = vpop.f32.mrb[42].mxu1  ;;  %9630 = vmatprep.subr.bf16.mxu1 %v9876_v8  ;;  %v6412_v27 = vld [vmem:[%s13356_s0 + $0x940] sm:$0xff] }
 0x14d   :  { %v11488_v31 = vmax.f32 %v725_v10, %v864_v51  ;;  %9600 = vmatpush3.bf16.msra.mxu0 %v9876_v8  ;;  %v11491_v50 = vpop.f32.mrb[43].mxu1  ;;  %8505 = vmatmul.mubr.f32.gmra.mrb[148].mxu1 %v6425_v21  ;;  %v6428_v51 = vld [vmem:[%s13356_s0 + $0x9c0] sm:$0xff] }
 0x14e   :  { %v1082_v7 = vmax.f32 %v11477_v34, %v11479_v23  ;;  %8451 = vmatprep.mubr.f32.mxu0 %v6410_v12  ;;  %9632 = vmatpush3.bf16.msra.mxu1 %v9876_v8  ;;  %v6443_v23 = vld [vmem:[%s13356_s0 + $0xa38] sm:$0xff] }
 0x14f   :  { %v7678_v10 = vpop.f32.mrb[44].mxu0  ;;  %9602 = vmatprep.subr.bf16.mxu0 %v9894_v13  ;;  %8507 = vmatprep.mubr.f32.mxu1 %v6426_v41  ;;  %v13362_v41 = vmax.f32 %v11250_v43, %v11253_v28  ;;  %v6429_v43 = vld [vmem:[%s13356_s0 + $0x9c8] sm:$0xff] }
 0x150   :  { %v11511_v21 = vmax.f32 %v728_v35, %v7678_v10  ;;  %v874_v61 = vpop.f32.mrb[45].mxu0  ;;  %8452 = vmatmul.mubr.f32.gmra.mrb[150].mxu0 %v6411_v37  ;;  %v11513_v12 = vpop.f32.mrb[44].mxu1  ;;  %9634 = vmatprep.subr.bf16.mxu1 %v9894_v13 }
 0x151   :  { %v11522_v2 = vmax.f32 %v13362_v41, %v874_v61  ;;  %9604 = vmatpush3.bf16.msra.mxu0 %v9894_v13  ;;  %v11525_v60 = vpop.f32.mrb[45].mxu1  ;;  %8508 = vmatmul.mubr.f32.gmra.mrb[150].mxu1 %v6427_v33  ;;  %v6414_v33 = vld [vmem:[%s13356_s0 + $0x950] sm:$0xff] }
 0x152   :  { %v1084_v35 = vmax.f32 %v11511_v21, %v11513_v12  ;;  %8454 = vmatprep.mubr.f32.mxu0 %v6412_v27  ;;  %9636 = vmatpush3.bf16.msra.mxu1 %v9894_v13  ;;  %v6430_v41 = vld [vmem:[%s13356_s0 + $0x9d0] sm:$0xff]  ;;  %v6445_v12 = vld [vmem:[%s13356_s0 + $0xa48] sm:$0xff] }
 0x153   :  { %v1083_v28 = vmax.f32 %v11522_v2, %v11525_v60  ;;  %v7681_v37 = vpop.f32.mrb[46].mxu0  ;;  %9606 = vmatprep.subr.bf16.mxu0 %v9906_v16  ;;  %8510 = vmatprep.mubr.f32.mxu1 %v6428_v51  ;;  %v6461_v2 = vld [vmem:[%s13356_s0 + $0xac8] sm:$0xff] }
 0x154   :  { %v11545_v10 = vmax.f32 %v730_v62, %v7681_v37  ;;  %v884_v27 = vpop.f32.mrb[47].mxu0  ;;  %8455 = vmatmul.mubr.f32.gmra.mrb[152].mxu0 %v6413_v47  ;;  %v11547_v61 = vpop.f32.mrb[46].mxu1  ;;  %9638 = vmatprep.subr.bf16.mxu1 %v9906_v16  ;;  %v6416_v47 = vld [vmem:[%s13356_s0 + $0x960] sm:$0xff] }
 0x155   :  { %v11556_v51 = vmax.f32 %v729_v1, %v884_v27  ;;  %9608 = vmatpush3.bf16.msra.mxu0 %v9906_v16  ;;  %v11559_v9 = vpop.f32.mrb[47].mxu1  ;;  %8511 = vmatmul.mubr.f32.gmra.mrb[152].mxu1 %v6429_v43  ;;  %v6432_v27 = vld [vmem:[%s13356_s0 + $0x9e0] sm:$0xff] }
 0x156   :  { %v1086_v62 = vmax.f32 %v11545_v10, %v11547_v61  ;;  %8457 = vmatprep.mubr.f32.mxu0 %v6414_v33  ;;  %9640 = vmatpush3.bf16.msra.mxu1 %v9906_v16  ;;  %v6447_v61 = vld [vmem:[%s13356_s0 + $0xa58] sm:$0xff] }
 0x157   :  { %v1085_v54 = vmax.f32 %v11556_v51, %v11559_v9  ;;  %v7772_v1 = vpop.f32.mrb[48].mxu0  ;;  %9610 = vmatprep.subr.bf16.mxu0 %v9918_v19  ;;  %8513 = vmatprep.mubr.f32.mxu1 %v6430_v41  ;;  %v6463_v51 = vld [vmem:[%s13356_s0 + $0xad8] sm:$0xff] }
 0x158   :  { %v11579_v43 = vmax.f32 %v1072_v15, %v7772_v1  ;;  %v1170_v37 = vpop.f32.mrb[49].mxu0  ;;  %8458 = vmatmul.mubr.f32.gmra.mrb[154].mxu0 %v6415_v57  ;;  %v11581_v33 = vpop.f32.mrb[48].mxu1  ;;  %9642 = vmatprep.subr.bf16.mxu1 %v9918_v19  ;;  %v6418_v57 = vld [vmem:[%s13356_s0 + $0x970] sm:$0xff] }
 0x159   :  { %v11590_v41 = vmax.f32 %v1071_v11, %v1170_v37  ;;  %9612 = vmatpush3.bf16.msra.mxu0 %v9918_v19  ;;  %v11593_v45 = vpop.f32.mrb[49].mxu1  ;;  %8514 = vmatmul.mubr.f32.gmra.mrb[154].mxu1 %v6431_v42  ;;  %v6434_v37 = vld [vmem:[%s13356_s0 + $0x9f0] sm:$0xff] }
 0x15a   :  { %v1428_v15 = vmax.f32 %v11579_v43, %v11581_v33  ;;  %8460 = vmatprep.mubr.f32.mxu0 %v6416_v47  ;;  %9644 = vmatpush3.bf16.msra.mxu1 %v9918_v19  ;;  %v6449_v33 = vld [vmem:[%s13356_s0 + $0xa68] sm:$0xff] }
 0x15b   :  { %v1427_v48 = vmax.f32 %v11590_v41, %v11593_v45  ;;  %v7775_v11 = vpop.f32.mrb[50].mxu0  ;;  %9614 = vmatprep.subr.bf16.mxu0 %v9930_v22  ;;  %8516 = vmatprep.mubr.f32.mxu1 %v6432_v27  ;;  %v6465_v41 = vld [vmem:[%s13356_s0 + $0xae8] sm:$0xff] }
 0x15c   :  { %v11613_v42 = vmax.f32 %v1074_v29, %v7775_v11  ;;  %v1180_v1 = vpop.f32.mrb[51].mxu0  ;;  %8461 = vmatmul.mubr.f32.gmra.mrb[156].mxu0 %v6417_v20  ;;  %v11615_v47 = vpop.f32.mrb[50].mxu1  ;;  %9646 = vmatprep.subr.bf16.mxu1 %v9930_v22  ;;  %v6436_v20 = vld [vmem:[%s13356_s0 + $0xa00] sm:$0xff] }
 0x15d   :  { %v11624_v27 = vmax.f32 %v1073_v26, %v1180_v1  ;;  %9616 = vmatpush3.bf16.msra.mxu0 %v9930_v22  ;;  %v11627_v0 = vpop.f32.mrb[51].mxu1  ;;  %8517 = vmatmul.mubr.f32.gmra.mrb[156].mxu1 %v6433_v63  ;;  %v6452_v1 = vld [vmem:[%s13356_s0 + $0xa80] sm:$0xff] }
 0x15e   :  { %v1430_v29 = vmax.f32 %v11613_v42, %v11615_v47  ;;  %8463 = vmatprep.mubr.f32.mxu0 %v6418_v57  ;;  %9648 = vmatpush3.bf16.msra.mxu1 %v9930_v22  ;;  %v6451_v47 = vld [vmem:[%s13356_s0 + $0xa78] sm:$0xff] }
 0x15f   :  { %v1429_v24 = vmax.f32 %v11624_v27, %v11627_v0  ;;  %v7778_v26 = vpop.f32.mrb[52].mxu0  ;;  %9618 = vmatprep.subr.bf16.mxu0 %v9942_v25  ;;  %8519 = vmatprep.mubr.f32.mxu1 %v6434_v37  ;;  %v6467_v27 = vld [vmem:[%s13356_s0 + $0xaf8] sm:$0xff] }
 0x160   :  { %v11647_v63 = vmax.f32 %v1076_v39, %v7778_v26  ;;  %v1190_v11 = vpop.f32.mrb[53].mxu0  ;;  %8464 = vmatmul.mubr.f32.gmra.mrb[158].mxu0 %v6419_v38  ;;  %v11649_v57 = vpop.f32.mrb[52].mxu1  ;;  %9650 = vmatprep.subr.bf16.mxu1 %v9942_v25  ;;  %v6438_v38 = vld [vmem:[%s13356_s0 + $0xa10] sm:$0xff] }
 0x161   :  { %v11658_v37 = vmax.f32 %v1075_v36, %v1190_v11  ;;  %9620 = vmatpush3.bf16.msra.mxu0 %v9942_v25  ;;  %v11661_v6 = vpop.f32.mrb[53].mxu1  ;;  %8520 = vmatmul.mubr.f32.gmra.mrb[158].mxu1 %v6435_v53  ;;  %v6454_v11 = vld [vmem:[%s13356_s0 + $0xa90] sm:$0xff] }
 0x162   :  { %v1432_v39 = vmax.f32 %v11647_v63, %v11649_v57  ;;  %8554 = vmatprep.mubr.f32.mxu0 %v6436_v20  ;;  %9652 = vmatpush3.bf16.msra.mxu1 %v9942_v25  ;;  %v6469_v57 = vld [vmem:[%s13356_s0 + $0xb08] sm:$0xff] }
 0x163   :  { %v1431_v17 = vmax.f32 %v11658_v37, %v11661_v6  ;;  %v7781_v36 = vpop.f32.mrb[54].mxu0  ;;  %9654 = vmatprep.subr.bf16.mxu0 %v9857_v3  ;;  %8610 = vmatprep.mubr.f32.mxu1 %v6452_v1  ;;  %v6485_v37 = vld [vmem:[%s13356_s0 + $0xb88] sm:$0xff] }
 0x164   :  { %v11681_v53 = vmax.f32 %v1078_v49, %v7781_v36  ;;  %v1200_v26 = vpop.f32.mrb[55].mxu0  ;;  %8555 = vmatmul.mubr.f32.vlgmr.msra.gmra.mrb[160].mxu0 %v6437_v55  ;;  %v11683_v20 = vpop.f32.mrb[54].mxu1  ;;  %9686 = vmatprep.subr.bf16.mxu1 %v9857_v3  ;;  %v6440_v55 = vld [vmem:[%s13356_s0 + $0xa20] sm:$0xff] }
 0x165   :  { %v11692_v1 = vmax.f32 %v1077_v46, %v1200_v26  ;;  %9656 = vmatpush3.bf16.msra.mxu0 %v9857_v3  ;;  %v11695_v14 = vpop.f32.mrb[55].mxu1  ;;  %8611 = vmatmul.mubr.f32.vlgmr.msra.gmra.mrb[160].mxu1 %v6453_v4  ;;  %v6456_v26 = vld [vmem:[%s13356_s0 + $0xaa0] sm:$0xff] }
 0x166   :  { %v1434_v49 = vmax.f32 %v11681_v53, %v11683_v20  ;;  %8557 = vmatprep.mubr.f32.mxu0 %v6438_v38  ;;  %9688 = vmatpush3.bf16.msra.mxu1 %v9857_v3  ;;  %v6471_v53 = vld [vmem:[%s13356_s0 + $0xb18] sm:$0xff] }
 0x167   :  { %v1433_v30 = vmax.f32 %v11692_v1, %v11695_v14  ;;  %v7784_v46 = vpop.f32.mrb[56].mxu0  ;;  %9658 = vmatprep.subr.bf16.mxu0 %v9862_v5  ;;  %8613 = vmatprep.mubr.f32.mxu1 %v6454_v11  ;;  %v6487_v1 = vld [vmem:[%s13356_s0 + $0xb98] sm:$0xff] }
 0x168   :  { %v11715_v4 = vmax.f32 %v1080_v59, %v7784_v46  ;;  %v1210_v36 = vpop.f32.mrb[57].mxu0  ;;  %8558 = vmatmul.mubr.f32.gmra.mrb[162].mxu0 %v6439_v58  ;;  %v11717_v38 = vpop.f32.mrb[56].mxu1  ;;  %9690 = vmatprep.subr.bf16.mxu1 %v9862_v5  ;;  %v6442_v58 = vld [vmem:[%s13356_s0 + $0xa30] sm:$0xff] }
 0x169   :  { %v11726_v11 = vmax.f32 %v1079_v56, %v1210_v36  ;;  %9660 = vmatpush3.bf16.msra.mxu0 %v9862_v5  ;;  %v11729_v52 = vpop.f32.mrb[57].mxu1  ;;  %8614 = vmatmul.mubr.f32.gmra.mrb[162].mxu1 %v6455_v32  ;;  %v6458_v36 = vld [vmem:[%s13356_s0 + $0xab0] sm:$0xff] }
 0x16a   :  { %v1436_v59 = vmax.f32 %v11715_v4, %v11717_v38  ;;  %8560 = vmatprep.mubr.f32.mxu0 %v6440_v55  ;;  %9692 = vmatpush3.bf16.msra.mxu1 %v9862_v5  ;;  %v6473_v4 = vld [vmem:[%s13356_s0 + $0xb28] sm:$0xff] }
 0x16b   :  { %v7787_v56 = vpop.f32.mrb[58].mxu0  ;;  %9662 = vmatprep.subr.bf16.mxu0 %v9876_v8  ;;  %8616 = vmatprep.mubr.f32.mxu1 %v6456_v26  ;;  %v13363_v26 = vmax.f32 %v11488_v31, %v11491_v50  ;;  %v6459_v31 = vld [vmem:[%s13356_s0 + $0xab8] sm:$0xff] }
 0x16c   :  { %v11749_v32 = vmax.f32 %v1082_v7, %v7787_v56  ;;  %v1220_v46 = vpop.f32.mrb[59].mxu0  ;;  %8561 = vmatmul.mubr.f32.gmra.mrb[164].mxu0 %v6441_v44  ;;  %v11751_v55 = vpop.f32.mrb[58].mxu1  ;;  %9694 = vmatprep.subr.bf16.mxu1 %v9876_v8 }
 0x16d   :  { %v11760_v40 = vmax.f32 %v13363_v26, %v1220_v46  ;;  %9664 = vmatpush3.bf16.msra.mxu0 %v9876_v8  ;;  %v11763_v34 = vpop.f32.mrb[59].mxu1  ;;  %8617 = vmatmul.mubr.f32.gmra.mrb[164].mxu1 %v6457_v18  ;;  %v6444_v18 = vld [vmem:[%s13356_s0 + $0xa40] sm:$0xff] }
 0x16e   :  { %v1438_v7 = vmax.f32 %v11749_v32, %v11751_v55  ;;  %8563 = vmatprep.mubr.f32.mxu0 %v6442_v58  ;;  %9696 = vmatpush3.bf16.msra.mxu1 %v9876_v8  ;;  %v6460_v26 = vld [vmem:[%s13356_s0 + $0xac0] sm:$0xff]  ;;  %v6475_v32 = vld [vmem:[%s13356_s0 + $0xb38] sm:$0xff] }
 0x16f   :  { %v1437_v50 = vmax.f32 %v11760_v40, %v11763_v34  ;;  %v7790_v44 = vpop.f32.mrb[60].mxu0  ;;  %9666 = vmatprep.subr.bf16.mxu0 %v9894_v13  ;;  %8619 = vmatprep.mubr.f32.mxu1 %v6458_v36  ;;  %v6491_v40 = vld [vmem:[%s13356_s0 + $0xbb8] sm:$0xff] }
 0x170   :  { %v11783_v56 = vmax.f32 %v1084_v35, %v7790_v44  ;;  %v1230_v58 = vpop.f32.mrb[61].mxu0  ;;  %8564 = vmatmul.mubr.f32.gmra.mrb[166].mxu0 %v6443_v23  ;;  %v11785_v46 = vpop.f32.mrb[60].mxu1  ;;  %9698 = vmatprep.subr.bf16.mxu1 %v9894_v13  ;;  %v6446_v23 = vld [vmem:[%s13356_s0 + $0xa50] sm:$0xff] }
 0x171   :  { %v11794_v36 = vmax.f32 %v1083_v28, %v1230_v58  ;;  %9668 = vmatpush3.bf16.msra.mxu0 %v9894_v13  ;;  %v11797_v21 = vpop.f32.mrb[61].mxu1  ;;  %8620 = vmatmul.mubr.f32.gmra.mrb[166].mxu1 %v6459_v31  ;;  %v6462_v58 = vld [vmem:[%s13356_s0 + $0xad0] sm:$0xff] }
 0x172   :  { %v1440_v35 = vmax.f32 %v11783_v56, %v11785_v46  ;;  %8566 = vmatprep.mubr.f32.mxu0 %v6444_v18  ;;  %9700 = vmatpush3.bf16.msra.mxu1 %v9894_v13  ;;  %v6477_v56 = vld [vmem:[%s13356_s0 + $0xb48] sm:$0xff] }
 0x173   :  { %v1439_v60 = vmax.f32 %v11794_v36, %v11797_v21  ;;  %v7793_v28 = vpop.f32.mrb[62].mxu0  ;;  %9670 = vmatprep.subr.bf16.mxu0 %v9906_v16  ;;  %8622 = vmatprep.mubr.f32.mxu1 %v6460_v26  ;;  %v6493_v36 = vld [vmem:[%s13356_s0 + $0xbc8] sm:$0xff] }
 0x174   :  { %v11817_v31 = vmax.f32 %v1086_v62, %v7793_v28  ;;  %v1240_v44 = vpop.f32.mrb[63].mxu0  ;;  %8567 = vmatmul.mubr.f32.gmra.mrb[168].mxu0 %v6445_v12  ;;  %v11819_v18 = vpop.f32.mrb[62].mxu1  ;;  %9702 = vmatprep.subr.bf16.mxu1 %v9906_v16  ;;  %v6448_v12 = vld [vmem:[%s13356_s0 + $0xa60] sm:$0xff] }
 0x175   :  { %v11828_v26 = vmax.f32 %v1085_v54, %v1240_v44  ;;  %9672 = vmatpush3.bf16.msra.mxu0 %v9906_v16  ;;  %v11831_v10 = vpop.f32.mrb[63].mxu1  ;;  %8623 = vmatmul.mubr.f32.gmra.mrb[168].mxu1 %v6461_v2  ;;  %v6464_v44 = vld [vmem:[%s13356_s0 + $0xae0] sm:$0xff] }
 0x176   :  { %v1442_v62 = vmax.f32 %v11817_v31, %v11819_v18  ;;  %8569 = vmatprep.mubr.f32.mxu0 %v6446_v23  ;;  %9704 = vmatpush3.bf16.msra.mxu1 %v9906_v16  ;;  %v6479_v31 = vld [vmem:[%s13356_s0 + $0xb58] sm:$0xff] }
 0x177   :  { %v1441_v9 = vmax.f32 %v11828_v26, %v11831_v10  ;;  %v7884_v54 = vpop.f32.mrb[64].mxu0  ;;  %9674 = vmatprep.subr.bf16.mxu0 %v9918_v19  ;;  %8625 = vmatprep.mubr.f32.mxu1 %v6462_v58  ;;  %v6495_v26 = vld [vmem:[%s13356_s0 + $0xbd8] sm:$0xff] }
 0x178   :  { %v11851_v2 = vmax.f32 %v1428_v15, %v7884_v54  ;;  %v1526_v28 = vpop.f32.mrb[65].mxu0  ;;  %8570 = vmatmul.mubr.f32.gmra.mrb[170].mxu0 %v6447_v61  ;;  %v11853_v23 = vpop.f32.mrb[64].mxu1  ;;  %9706 = vmatprep.subr.bf16.mxu1 %v9918_v19  ;;  %v6450_v61 = vld [vmem:[%s13356_s0 + $0xa70] sm:$0xff] }
 0x179   :  { %v11862_v58 = vmax.f32 %v1427_v48, %v1526_v28  ;;  %9676 = vmatpush3.bf16.msra.mxu0 %v9918_v19  ;;  %v11865_v43 = vpop.f32.mrb[65].mxu1  ;;  %8626 = vmatmul.mubr.f32.gmra.mrb[170].mxu1 %v6463_v51  ;;  %v6466_v28 = vld [vmem:[%s13356_s0 + $0xaf0] sm:$0xff] }
 0x17a   :  { %v1784_v15 = vmax.f32 %v11851_v2, %v11853_v23  ;;  %8572 = vmatprep.mubr.f32.mxu0 %v6448_v12  ;;  %9708 = vmatpush3.bf16.msra.mxu1 %v9918_v19  ;;  %v6481_v2 = vld [vmem:[%s13356_s0 + $0xb68] sm:$0xff] }
 0x17b   :  { %v1783_v45 = vmax.f32 %v11862_v58, %v11865_v43  ;;  %v7887_v48 = vpop.f32.mrb[66].mxu0  ;;  %9678 = vmatprep.subr.bf16.mxu0 %v9930_v22  ;;  %8628 = vmatprep.mubr.f32.mxu1 %v6464_v44  ;;  %v6497_v58 = vld [vmem:[%s13356_s0 + $0xbe8] sm:$0xff] }
 0x17c   :  { %v11885_v51 = vmax.f32 %v1430_v29, %v7887_v48  ;;  %v1536_v54 = vpop.f32.mrb[67].mxu0  ;;  %8573 = vmatmul.mubr.f32.gmra.mrb[172].mxu0 %v6449_v33  ;;  %v11887_v12 = vpop.f32.mrb[66].mxu1  ;;  %9710 = vmatprep.subr.bf16.mxu1 %v9930_v22  ;;  %v6468_v33 = vld [vmem:[%s13356_s0 + $0xb00] sm:$0xff] }
 0x17d   :  { %v11896_v44 = vmax.f32 %v1429_v24, %v1536_v54  ;;  %9680 = vmatpush3.bf16.msra.mxu0 %v9930_v22  ;;  %v11899_v42 = vpop.f32.mrb[67].mxu1  ;;  %8629 = vmatmul.mubr.f32.gmra.mrb[172].mxu1 %v6465_v41  ;;  %v6484_v54 = vld [vmem:[%s13356_s0 + $0xb80] sm:$0xff] }
 0x17e   :  { %v1786_v29 = vmax.f32 %v11885_v51, %v11887_v12  ;;  %8575 = vmatprep.mubr.f32.mxu0 %v6450_v61  ;;  %9712 = vmatpush3.bf16.msra.mxu1 %v9930_v22  ;;  %v6483_v51 = vld [vmem:[%s13356_s0 + $0xb78] sm:$0xff] }
 0x17f   :  { %v1785_v0 = vmax.f32 %v11896_v44, %v11899_v42  ;;  %v7890_v24 = vpop.f32.mrb[68].mxu0  ;;  %9682 = vmatprep.subr.bf16.mxu0 %v9942_v25  ;;  %8631 = vmatprep.mubr.f32.mxu1 %v6466_v28  ;;  %v6499_v44 = vld [vmem:[%s13356_s0 + $0xbf8] sm:$0xff] }
 0x180   :  { %v11919_v41 = vmax.f32 %v1432_v39, %v7890_v24  ;;  %v1546_v48 = vpop.f32.mrb[69].mxu0  ;;  %8576 = vmatmul.mubr.f32.gmra.mrb[174].mxu0 %v6451_v47  ;;  %v11921_v61 = vpop.f32.mrb[68].mxu1  ;;  %9714 = vmatprep.subr.bf16.mxu1 %v9942_v25  ;;  %v6470_v47 = vld [vmem:[%s13356_s0 + $0xb10] sm:$0xff] }
 0x181   :  { %v11930_v28 = vmax.f32 %v1431_v17, %v1546_v48  ;;  %9684 = vmatpush3.bf16.msra.mxu0 %v9942_v25  ;;  %v11933_v63 = vpop.f32.mrb[69].mxu1  ;;  %8632 = vmatmul.mubr.f32.gmra.mrb[174].mxu1 %v6467_v27  ;;  %v6486_v48 = vld [vmem:[%s13356_s0 + $0xb90] sm:$0xff] }
 0x182   :  { %v1788_v39 = vmax.f32 %v11919_v41, %v11921_v61  ;;  %8666 = vmatprep.mubr.f32.mxu0 %v6468_v33  ;;  %9716 = vmatpush3.bf16.msra.mxu1 %v9942_v25  ;;  %v6501_v41 = vld [vmem:[%s13356_s0 + $0xc08] sm:$0xff] }
 0x183   :  { %v7893_v17 = vpop.f32.mrb[70].mxu0  ;;  %9718 = vmatprep.subr.bf16.mxu0 %v9857_v3  ;;  %8722 = vmatprep.mubr.f32.mxu1 %v6484_v54 }
 0x184   :  { %v11953_v27 = vmax.f32 %v1434_v49, %v7893_v17  ;;  %v1556_v24 = vpop.f32.mrb[71].mxu0  ;;  %8667 = vmatmul.mubr.f32.vlgmr.msra.gmra.mrb[176].mxu0 %v6469_v57  ;;  %v11955_v33 = vpop.f32.mrb[70].mxu1  ;;  %v6472_v49 = vld [vmem:[%s13356_s0 + $0xb20] sm:$0xff] }
 0x185   :  { %v11963_v54 = vmax.f32 %v1433_v30, %v1556_v24  ;;  %9720 = vmatpush3.bf16.msra.mxu0 %v9857_v3  ;;  %v11966_v6 = vpop.f32.mrb[71].mxu1  ;;  %8723 = vmatmul.mubr.f32.vlgmr.msra.gmra.mrb[176].mxu1 %v6485_v37  ;;  %v6488_v17 = vld [vmem:[%s13356_s0 + $0xba0] sm:$0xff] }
 0x186   :  { %v1790_v20 = vmax.f32 %v11953_v27, %v11955_v33  ;;  %8669 = vmatprep.mubr.f32.mxu0 %v6470_v47  ;;  %9722 = vmatprep.subr.bf16.mxu0 %v9862_v5  ;;  %v13364_v47 = vmax.f32 %v11726_v11, %v11729_v52  ;;  %v6489_v11 = vld [vmem:[%s13356_s0 + $0xba8] sm:$0xff]  ;;  %v6504_v33 = vld [vmem:[%s13356_s0 + $0xc20] sm:$0xff] }
 0x187   :  { %v1789_v3 = vmax.f32 %v11963_v54, %v11966_v6  ;;  %v7896_v14 = vpop.f32.mrb[72].mxu0  ;;  %8725 = vmatprep.mubr.f32.mxu1 %v6486_v48 }
 0x188   :  { %v11985_v30 = vmax.f32 %v1436_v59, %v7896_v14  ;;  %v1566_v57 = vpop.f32.mrb[73].mxu0  ;;  %8670 = vmatmul.mubr.f32.gmra.mrb[178].mxu0 %v6471_v53  ;;  %v11987_v37 = vpop.f32.mrb[72].mxu1  ;;  %v6474_v59 = vld [vmem:[%s13356_s0 + $0xb30] sm:$0xff] }
 0x189   :  { %v11995_v24 = vmax.f32 %v13364_v47, %v1566_v57  ;;  %9724 = vmatpush3.bf16.msra.mxu0 %v9862_v5  ;;  %v11998_v48 = vpop.f32.mrb[73].mxu1  ;;  %8726 = vmatmul.mubr.f32.gmra.mrb[178].mxu1 %v6487_v1 }
 0x18a   :  { %v1792_v38 = vmax.f32 %v11985_v30, %v11987_v37  ;;  %8672 = vmatprep.mubr.f32.mxu0 %v6472_v49  ;;  %9726 = vmatprep.subr.bf16.mxu0 %v9876_v8  ;;  %v6490_v49 = vld [vmem:[%s13356_s0 + $0xbb0] sm:$0xff] }
 0x18b   :  { %v1791_v5 = vmax.f32 %v11995_v24, %v11998_v48  ;;  %v7899_v52 = vpop.f32.mrb[74].mxu0  ;;  %8728 = vmatprep.mubr.f32.mxu1 %v6488_v17  ;;  %v6506_v37 = vld [vmem:[%s13356_s0 + $0xc30] sm:$0xff] }
 0x18c   :  { %v12017_v53 = vmax.f32 %v1438_v7, %v7899_v52  ;;  %v1576_v1 = vpop.f32.mrb[75].mxu0  ;;  %8673 = vmatmul.mubr.f32.gmra.mrb[180].mxu0 %v6473_v4  ;;  %v12019_v14 = vpop.f32.mrb[74].mxu1  ;;  %v6476_v7 = vld [vmem:[%s13356_s0 + $0xb40] sm:$0xff] }
 0x18d   :  { %v12027_v57 = vmax.f32 %v1437_v50, %v1576_v1  ;;  %9728 = vmatpush3.bf16.msra.mxu0 %v9876_v8  ;;  %v12030_v17 = vpop.f32.mrb[75].mxu1  ;;  %8729 = vmatmul.mubr.f32.gmra.mrb[180].mxu1 %v6489_v11  ;;  %v6492_v11 = vld [vmem:[%s13356_s0 + $0xbc0] sm:$0xff] }
 0x18e   :  { %v1794_v55 = vmax.f32 %v12017_v53, %v12019_v14  ;;  %8675 = vmatprep.mubr.f32.mxu0 %v6474_v59  ;;  %9730 = vmatprep.subr.bf16.mxu0 %v9894_v13  ;;  %v6508_v14 = vld [vmem:[%s13356_s0 + $0xc40] sm:$0xff] }
 0x18f   :  { %v1793_v8 = vmax.f32 %v12027_v57, %v12030_v17  ;;  %v7902_v34 = vpop.f32.mrb[76].mxu0  ;;  %8731 = vmatprep.mubr.f32.mxu1 %v6490_v49 }
 0x190   :  { %v12049_v50 = vmax.f32 %v1440_v35, %v7902_v34  ;;  %v1586_v47 = vpop.f32.mrb[77].mxu0  ;;  %8676 = vmatmul.mubr.f32.gmra.mrb[182].mxu0 %v6475_v32  ;;  %v12051_v4 = vpop.f32.mrb[76].mxu1  ;;  %v6478_v35 = vld [vmem:[%s13356_s0 + $0xb50] sm:$0xff] }
 0x191   :  { %v12059_v52 = vmax.f32 %v1439_v60, %v1586_v47  ;;  %9732 = vmatpush3.bf16.msra.mxu0 %v9894_v13  ;;  %v12062_v59 = vpop.f32.mrb[77].mxu1  ;;  %8732 = vmatmul.mubr.f32.gmra.mrb[182].mxu1 %v6491_v40  ;;  %v6494_v32 = vld [vmem:[%s13356_s0 + $0xbd0] sm:$0xff] }
 0x192   :  { %v1796_v46 = vmax.f32 %v12049_v50, %v12051_v4  ;;  %8678 = vmatprep.mubr.f32.mxu0 %v6476_v7  ;;  %9734 = vmatprep.subr.bf16.mxu0 %v9906_v16  ;;  %v6510_v4 = vld [vmem:[%s13356_s0 + $0xc50] sm:$0xff] }
 0x193   :  { %v1795_v13 = vmax.f32 %v12059_v52, %v12062_v59  ;;  %v7905_v21 = vpop.f32.mrb[78].mxu0  ;;  %8734 = vmatprep.mubr.f32.mxu1 %v6492_v11  ;;  %v6496_v11 = vld [vmem:[%s13356_s0 + $0xbe0] sm:$0xff] }
 0x194   :  { %v12081_v60 = vmax.f32 %v1442_v62, %v7905_v21  ;;  %v1596_v1 = vpop.f32.mrb[79].mxu0  ;;  %8679 = vmatmul.mubr.f32.gmra.mrb[184].mxu0 %v6477_v56  ;;  %v12083_v49 = vpop.f32.mrb[78].mxu1  ;;  %v6480_v62 = vld [vmem:[%s13356_s0 + $0xb60] sm:$0xff] }
 0x195   :  { %v12091_v40 = vmax.f32 %v1441_v9, %v1596_v1  ;;  %9736 = vmatpush3.bf16.msra.mxu0 %v9906_v16  ;;  %v12094_v34 = vpop.f32.mrb[79].mxu1  ;;  %8735 = vmatmul.mubr.f32.gmra.mrb[184].mxu1 %v6493_v36  ;;  %v6498_v1 = vld [vmem:[%s13356_s0 + $0xbf0] sm:$0xff] }
 0x196   :  { %v1798_v18 = vmax.f32 %v12081_v60, %v12083_v49  ;;  %8681 = vmatprep.mubr.f32.mxu0 %v6478_v35  ;;  %9738 = vmatprep.subr.bf16.mxu0 %v9918_v19  ;;  %v6512_v49 = vld [vmem:[%s13356_s0 + $0xc60] sm:$0xff] }
 0x197   :  { %v1797_v16 = vmax.f32 %v12091_v40, %v12094_v34  ;;  %v7996_v10 = vpop.f32.mrb[80].mxu0  ;;  %8737 = vmatprep.mubr.f32.mxu1 %v6494_v32 }
 0x198   :  { %v12113_v9 = vmax.f32 %v1784_v15, %v7996_v10  ;;  %v1882_v7 = vpop.f32.mrb[81].mxu0  ;;  %8682 = vmatmul.mubr.f32.gmra.mrb[186].mxu0 %v6479_v31  ;;  %v12115_v47 = vpop.f32.mrb[80].mxu1  ;;  %v6482_v15 = vld [vmem:[%s13356_s0 + $0xb70] sm:$0xff] }
 0x199   :  { %v12123_v56 = vmax.f32 %v1783_v45, %v1882_v7  ;;  %9740 = vmatpush3.bf16.msra.mxu0 %v9918_v19  ;;  %v12126_v36 = vpop.f32.mrb[81].mxu1  ;;  %8738 = vmatmul.mubr.f32.gmra.mrb[186].mxu1 %v6495_v26 }
 0x19a   :  { %v2140_v23 = vmax.f32 %v12113_v9, %v12115_v47  ;;  %8684 = vmatprep.mubr.f32.mxu0 %v6480_v62  ;;  %9742 = vmatprep.subr.bf16.mxu0 %v9930_v22  ;;  %v13365_v62 = vmax.f32 %v11930_v28, %v11933_v63  ;;  %v6514_v47 = vld [vmem:[%s13356_s0 + $0xc70] sm:$0xff] }
 0x19b   :  { %v2139_v19 = vmax.f32 %v12123_v56, %v12126_v36  ;;  %v7999_v43 = vpop.f32.mrb[82].mxu0  ;;  %8740 = vmatprep.mubr.f32.mxu1 %v6496_v11 }
 0x19c   :  { %v12145_v45 = vmax.f32 %v1786_v29, %v7999_v43  ;;  %v1892_v21 = vpop.f32.mrb[83].mxu0  ;;  %8685 = vmatmul.mubr.f32.gmra.mrb[188].mxu0 %v6481_v2  ;;  %v12147_v35 = vpop.f32.mrb[82].mxu1  ;;  %v6500_v29 = vld [vmem:[%s13356_s0 + $0xc00] sm:$0xff] }
 0x19d   :  { %v12155_v32 = vmax.f32 %v1785_v0, %v1892_v21  ;;  %9744 = vmatpush3.bf16.msra.mxu0 %v9930_v22  ;;  %v12158_v31 = vpop.f32.mrb[83].mxu1  ;;  %8741 = vmatmul.mubr.f32.gmra.mrb[188].mxu1 %v6497_v58  ;;  %v6503_v21 = vld [vmem:[%s13356_s0 + $0xc18] sm:$0xff] }
 0x19e   :  { %v2142_v12 = vmax.f32 %v12145_v45, %v12147_v35  ;;  %8687 = vmatprep.mubr.f32.mxu0 %v6482_v15  ;;  %9746 = vmatprep.subr.bf16.mxu0 %v9942_v25 }
 0x19f   :  { %v2141_v22 = vmax.f32 %v12155_v32, %v12158_v31  ;;  %v8002_v42 = vpop.f32.mrb[84].mxu0  ;;  %8743 = vmatprep.mubr.f32.mxu1 %v6498_v1 }
 0x1a0   :  { %v12177_v0 = vmax.f32 %v1788_v39, %v8002_v42  ;;  %v1902_v26 = vpop.f32.mrb[85].mxu0  ;;  %8688 = vmatmul.mubr.f32.gmra.mrb[190].mxu0 %v6483_v51  ;;  %v12179_v10 = vpop.f32.mrb[84].mxu1  ;;  %v6502_v39 = vld [vmem:[%s13356_s0 + $0xc10] sm:$0xff]  ;;  %v6505_v42 = vld [vmem:[%s13356_s0 + $0xc28] sm:$0xff] }
 0x1a1   :  { %v12184_v7 = vmax.f32 %v13365_v62, %v1902_v26  ;;  %9748 = vmatpush3.bf16.msra.mxu0 %v9942_v25  ;;  %v12187_v11 = vpop.f32.mrb[85].mxu1  ;;  %8744 = vmatmul.mubr.f32.gmra.mrb[190].mxu1 %v6499_v44 }
 0x1a2   :  { %v2144_v61 = vmax.f32 %v12177_v0, %v12179_v10  ;;  %8778 = vmatprep.mubr.f32.mxu0 %v6500_v29 }
 0x1a3   :  { %v2143_v28 = vmax.f32 %v12184_v7, %v12187_v11  ;;  %v8005_v63 = vpop.f32.mrb[86].mxu0 }
 0x1a4   :  { %v12202_v25 = vmax.f32 %v1790_v20, %v8005_v63  ;;  %v1912_v2 = vpop.f32.mrb[87].mxu0  ;;  %8779 = vmatmul.mubr.f32.vlgmr.msra.gmra.mrb[192].mxu0 %v6501_v41  ;;  %v12204_v58 = vpop.f32.mrb[86].mxu1  ;;  %v6507_v41 = vld [vmem:[%s13356_s0 + $0xc38] sm:$0xff] }
 0x1a5   :  { %v12209_v43 = vmax.f32 %v1789_v3, %v1912_v2  ;;  %v12211_v15 = vpop.f32.mrb[87].mxu1  ;;  %8781 = vmatprep.mubr.f32.mxu0 %v6502_v39 }
 0x1a6   :  { %v2146_v27 = vmax.f32 %v12202_v25, %v12204_v58 }
 0x1a7   :  { %v2145_v20 = vmax.f32 %v12209_v43, %v12211_v15  ;;  %v8008_v6 = vpop.f32.mrb[88].mxu0 }
 0x1a8   :  { %v12226_v54 = vmax.f32 %v1792_v38, %v8008_v6  ;;  %v1922_v3 = vpop.f32.mrb[89].mxu0  ;;  %8782 = vmatmul.mubr.f32.gmra.mrb[194].mxu0 %v6503_v21  ;;  %v12228_v1 = vpop.f32.mrb[88].mxu1  ;;  %v6509_v21 = vld [vmem:[%s13356_s0 + $0xc48] sm:$0xff] }
 0x1a9   :  { %v12233_v51 = vmax.f32 %v1791_v5, %v1922_v3  ;;  %v12235_v44 = vpop.f32.mrb[89].mxu1  ;;  %8784 = vmatprep.mubr.f32.mxu0 %v6504_v33 }
 0x1aa   :  { %v2148_v30 = vmax.f32 %v12226_v54, %v12228_v1 }
 0x1ab   :  { %v2147_v38 = vmax.f32 %v12233_v51, %v12235_v44  ;;  %v8011_v24 = vpop.f32.mrb[90].mxu0 }
 0x1ac   :  { %v12250_v48 = vmax.f32 %v1794_v55, %v8011_v24  ;;  %v1932_v5 = vpop.f32.mrb[91].mxu0  ;;  %8785 = vmatmul.mubr.f32.gmra.mrb[196].mxu0 %v6505_v42  ;;  %v12252_v29 = vpop.f32.mrb[90].mxu1  ;;  %v6511_v42 = vld [vmem:[%s13356_s0 + $0xc58] sm:$0xff] }
 0x1ad   :  { %v12257_v26 = vmax.f32 %v1793_v8, %v1932_v5  ;;  %v12259_v62 = vpop.f32.mrb[91].mxu1  ;;  %8787 = vmatprep.mubr.f32.mxu0 %v6506_v37 }
 0x1ae   :  { %v2150_v53 = vmax.f32 %v12250_v48, %v12252_v29 }
 0x1af   :  { %v2149_v55 = vmax.f32 %v12257_v26, %v12259_v62  ;;  %v8014_v57 = vpop.f32.mrb[92].mxu0 }
 0x1b0   :  { %v12274_v17 = vmax.f32 %v1796_v46, %v8014_v57  ;;  %v1942_v8 = vpop.f32.mrb[93].mxu0  ;;  %8788 = vmatmul.mubr.f32.gmra.mrb[198].mxu0 %v6507_v41  ;;  %v12276_v39 = vpop.f32.mrb[92].mxu1  ;;  %v6513_v41 = vld [vmem:[%s13356_s0 + $0xc68] sm:$0xff] }
 0x1b1   :  { %v12281_v63 = vmax.f32 %v1795_v13, %v1942_v8  ;;  %v12283_v2 = vpop.f32.mrb[93].mxu1  ;;  %8790 = vmatprep.mubr.f32.mxu0 %v6508_v14 }
 0x1b2   :  { %v2152_v50 = vmax.f32 %v12274_v17, %v12276_v39 }
 0x1b3   :  { %v2151_v46 = vmax.f32 %v12281_v63, %v12283_v2  ;;  %v8017_v52 = vpop.f32.mrb[94].mxu0 }
 0x1b4   :  { %v12298_v59 = vmax.f32 %v1798_v18, %v8017_v52  ;;  %v1952_v13 = vpop.f32.mrb[95].mxu0  ;;  %8791 = vmatmul.mubr.f32.gmra.mrb[200].mxu0 %v6509_v21  ;;  %v12300_v33 = vpop.f32.mrb[94].mxu1  ;;  %v6515_v21 = vld [vmem:[%s13356_s0 + $0xc78] sm:$0xff] }
 0x1b5   :  { %v12305_v6 = vmax.f32 %v1797_v16, %v1952_v13  ;;  %v12307_v3 = vpop.f32.mrb[95].mxu1  ;;  %8793 = vmatprep.mubr.f32.mxu0 %v6510_v4 }
 0x1b6   :  { %v2154_v60 = vmax.f32 %v12298_v59, %v12300_v33 }
 0x1b7   :  { %v2153_v18 = vmax.f32 %v12305_v6, %v12307_v3  ;;  %v8108_v40 = vpop.f32.mrb[96].mxu0 }
 0x1b8   :  { %v12322_v34 = vmax.f32 %v2140_v23, %v8108_v40  ;;  %v2238_v16 = vpop.f32.mrb[97].mxu0  ;;  %8794 = vmatmul.mubr.f32.gmra.mrb[202].mxu0 %v6511_v42  ;;  %v12324_v37 = vpop.f32.mrb[96].mxu1 }
 0x1b9   :  { %v12329_v24 = vmax.f32 %v2139_v19, %v2238_v16  ;;  %v12331_v5 = vpop.f32.mrb[97].mxu1  ;;  %8796 = vmatprep.mubr.f32.mxu0 %v6512_v49 }
 0x1ba   :  { %v2496_v9 = vmax.f32 %v12322_v34, %v12324_v37 }
 0x1bb   :  { %v2495_v23 = vmax.f32 %v12329_v24, %v12331_v5  ;;  %v8111_v56 = vpop.f32.mrb[98].mxu0 }
 0x1bc   :  { %v12346_v36 = vmax.f32 %v2142_v12, %v8111_v56  ;;  %v2248_v19 = vpop.f32.mrb[99].mxu0  ;;  %8797 = vmatmul.mubr.f32.gmra.mrb[204].mxu0 %v6513_v41  ;;  %v12348_v14 = vpop.f32.mrb[98].mxu1 }
 0x1bd   :  { %v12353_v57 = vmax.f32 %v2141_v22, %v2248_v19  ;;  %v12355_v8 = vpop.f32.mrb[99].mxu1  ;;  %8799 = vmatprep.mubr.f32.mxu0 %v6514_v47 }
 0x1be   :  { %v2498_v45 = vmax.f32 %v12346_v36, %v12348_v14 }
 0x1bf   :  { %v2497_v35 = vmax.f32 %v12353_v57, %v12355_v8  ;;  %v8114_v12 = vpop.f32.mrb[100].mxu0 }
 0x1c0   :  { %v12367_v32 = vmax.f32 %v2144_v61, %v8114_v12  ;;  %v2258_v31 = vpop.f32.mrb[101].mxu0  ;;  %8800 = vmatmul.mubr.f32.gmra.mrb[206].mxu0 %v6515_v21  ;;  %v12369_v22 = vpop.f32.mrb[100].mxu1 }
 0x1c1   :  { %v12374_v4 = vmax.f32 %v2143_v28, %v2258_v31  ;;  %v12376_v52 = vpop.f32.mrb[101].mxu1 }
 0x1c2   :  { %v2500_v13 = vmax.f32 %v12367_v32, %v12369_v22 }
 0x1c3   :  { %v2499_v42 = vmax.f32 %v12374_v4, %v12376_v52  ;;  %v8117_v0 = vpop.f32.mrb[102].mxu0 }
 0x1c4   :  { %v12385_v10 = vmax.f32 %v2146_v27, %v8117_v0  ;;  %v2268_v61 = vpop.f32.mrb[103].mxu0  ;;  %v12387_v49 = vpop.f32.mrb[102].mxu1 }
 0x1c5   :  { %v12392_v7 = vmax.f32 %v2145_v20, %v2268_v61  ;;  %v12394_v11 = vpop.f32.mrb[103].mxu1 }
 0x1c6   :  { %v2502_v28 = vmax.f32 %v12385_v10, %v12387_v49 }
 0x1c7   :  { %v2501_v40 = vmax.f32 %v12392_v7, %v12394_v11  ;;  %v8120_v16 = vpop.f32.mrb[104].mxu0 }
 0x1c8   :  { %v12403_v25 = vmax.f32 %v2148_v30, %v8120_v16  ;;  %v2278_v58 = vpop.f32.mrb[105].mxu0  ;;  %v12405_v27 = vpop.f32.mrb[104].mxu1 }
 0x1c9   :  { %v12410_v43 = vmax.f32 %v2147_v38, %v2278_v58  ;;  %v12412_v15 = vpop.f32.mrb[105].mxu1 }
 0x1ca   :  { %v2504_v20 = vmax.f32 %v12403_v25, %v12405_v27 }
 0x1cb   :  { %v2503_v41 = vmax.f32 %v12410_v43, %v12412_v15  ;;  %v8123_v47 = vpop.f32.mrb[106].mxu0 }
 0x1cc   :  { %v12421_v54 = vmax.f32 %v2150_v53, %v8123_v47  ;;  %v2288_v1 = vpop.f32.mrb[107].mxu0  ;;  %v12423_v30 = vpop.f32.mrb[106].mxu1 }
 0x1cd   :  { %v12428_v51 = vmax.f32 %v2149_v55, %v2288_v1  ;;  %v12430_v44 = vpop.f32.mrb[107].mxu1 }
 0x1ce   :  { %v2506_v38 = vmax.f32 %v12421_v54, %v12423_v30 }
 0x1cf   :  { %v2505_v56 = vmax.f32 %v12428_v51, %v12430_v44  ;;  %v8126_v36 = vpop.f32.mrb[108].mxu0 }
 0x1d0   :  { %v12439_v48 = vmax.f32 %v2152_v50, %v8126_v36  ;;  %v2298_v29 = vpop.f32.mrb[109].mxu0  ;;  %v12441_v53 = vpop.f32.mrb[108].mxu1 }
 0x1d1   :  { %v12446_v26 = vmax.f32 %v2151_v46, %v2298_v29  ;;  %v12448_v62 = vpop.f32.mrb[109].mxu1 }
 0x1d2   :  { %v2508_v55 = vmax.f32 %v12439_v48, %v12441_v53 }
 0x1d3   :  { %v2507_v19 = vmax.f32 %v12446_v26, %v12448_v62  ;;  %v8129_v14 = vpop.f32.mrb[110].mxu0 }
 0x1d4   :  { %v12457_v17 = vmax.f32 %v2154_v60, %v8129_v14  ;;  %v2308_v39 = vpop.f32.mrb[111].mxu0  ;;  %v12459_v50 = vpop.f32.mrb[110].mxu1 }
 0x1d5   :  { %v12464_v63 = vmax.f32 %v2153_v18, %v2308_v39  ;;  %v12466_v2 = vpop.f32.mrb[111].mxu1 }
 0x1d6   :  { %v2510_v46 = vmax.f32 %v12457_v17, %v12459_v50 }
 0x1d7   :  { %v2509_v57 = vmax.f32 %v12464_v63, %v12466_v2  ;;  %v8220_v8 = vpop.f32.mrb[112].mxu0 }
 0x1d8   :  { %v12475_v59 = vmax.f32 %v2496_v9, %v8220_v8  ;;  %v2594_v33 = vpop.f32.mrb[113].mxu0  ;;  %v12477_v60 = vpop.f32.mrb[112].mxu1 }
 0x1d9   :  { %v12482_v6 = vmax.f32 %v2495_v23, %v2594_v33  ;;  %v12484_v3 = vpop.f32.mrb[113].mxu1 }
 0x1da   :  { %v2852_v18 = vmax.f32 %v12475_v59, %v12477_v60 }
 0x1db   :  { %v2851_v21 = vmax.f32 %v12482_v6, %v12484_v3  ;;  %v8223_v12 = vpop.f32.mrb[114].mxu0 }
 0x1dc   :  { %v12490_v34 = vmax.f32 %v2498_v45, %v8223_v12  ;;  %v2604_v37 = vpop.f32.mrb[115].mxu0  ;;  %v12492_v9 = vpop.f32.mrb[114].mxu1 }
 0x1dd   :  { %v12494_v32 = vmax.f32 %v2497_v35, %v2604_v37  ;;  %v12496_v31 = vpop.f32.mrb[115].mxu1 }
 0x1de   :  { %v2854_v24 = vmax.f32 %v12490_v34, %v12492_v9 }
 0x1df   :  { %v2853_v5 = vmax.f32 %v12494_v32, %v12496_v31  ;;  %v8226_v23 = vpop.f32.mrb[116].mxu0 }
 0x1e0   :  { %v12502_v22 = vmax.f32 %v2500_v13, %v8226_v23  ;;  %v2614_v4 = vpop.f32.mrb[117].mxu0  ;;  %v12504_v52 = vpop.f32.mrb[116].mxu1 }
 0x1e1   :  { %v12506_v45 = vmax.f32 %v2499_v42, %v2614_v4  ;;  %v12508_v0 = vpop.f32.mrb[117].mxu1 }
 0x1e2   :  { %v2856_v35 = vmax.f32 %v12502_v22, %v12504_v52  ;;  %v4526_v22 = vld [vmem:[%s13357_s3 + $0x18] sm:$0xff]  ;;  %v9817_v52 = vmov 0.0  }
 0x1e3   :  { %v2855_v10 = vmax.f32 %v12506_v45, %v12508_v0  ;;  %v8229_v61 = vpop.f32.mrb[118].mxu0  ;;  %8862 = vmatprep.mubr.msk.f32.mxu0 %vm9816_vm0, %v9817_v52  ;;  %8806 = vmatprep.mubr.msk.f32.mxu1 %vm9816_vm0, %v9817_v52 }
 0x1e4   :  { %v12514_v49 = vmax.f32 %v2502_v28, %v8229_v61  ;;  %v2624_v7 = vpop.f32.mrb[119].mxu0  ;;  %v12516_v11 = vpop.f32.mrb[118].mxu1 }
 0x1e5   :  { %v12518_v13 = vmax.f32 %v2501_v40, %v2624_v7  ;;  %v12520_v16 = vpop.f32.mrb[119].mxu1 }
 0x1e6   :  { %v2858_v42 = vmax.f32 %v12514_v49, %v12516_v11 }
 0x1e7   :  { %v2857_v25 = vmax.f32 %v12518_v13, %v12520_v16  ;;  %v8232_v58 = vpop.f32.mrb[120].mxu0 }
 0x1e8   :  { %v12526_v27 = vmax.f32 %v2504_v20, %v8232_v58  ;;  %v2634_v43 = vpop.f32.mrb[121].mxu0  ;;  %v12528_v15 = vpop.f32.mrb[120].mxu1 }
 0x1e9   :  { %v12530_v28 = vmax.f32 %v2503_v41, %v2634_v43  ;;  %v12532_v47 = vpop.f32.mrb[121].mxu1  ;;  %v9815_v43 = vmov 0.0|0.0  }
 0x1ea   :  { %v2860_v40 = vmax.f32 %v12526_v27, %v12528_v15  ;;  %9749 = vmatprep.subr.bf16.mxu1 %v9815_v43  ;;  %9773 = vmatprep.subr.bf16.mxu0 %v9815_v43 }
 0x1eb   :  { %v2859_v54 = vmax.f32 %v12530_v28, %v12532_v47  ;;  %v8235_v1 = vpop.f32.mrb[122].mxu0 }
 0x1ec   :  { %v12538_v30 = vmax.f32 %v2506_v38, %v8235_v1  ;;  %v2644_v51 = vpop.f32.mrb[123].mxu0  ;;  %v12540_v44 = vpop.f32.mrb[122].mxu1 }
 0x1ed   :  { %v12542_v20 = vmax.f32 %v2505_v56, %v2644_v51  ;;  %v12544_v36 = vpop.f32.mrb[123].mxu1 }
 0x1ee   :  { %v2862_v41 = vmax.f32 %v12538_v30, %v12540_v44 }
 0x1ef   :  { %v2861_v48 = vmax.f32 %v12542_v20, %v12544_v36  ;;  %v8238_v29 = vpop.f32.mrb[124].mxu0 }
 0x1f0   :  { %v12550_v53 = vmax.f32 %v2508_v55, %v8238_v29  ;;  %v2654_v26 = vpop.f32.mrb[125].mxu0  ;;  %v12552_v62 = vpop.f32.mrb[124].mxu1 }
 0x1f1   :  { %v12554_v38 = vmax.f32 %v2507_v19, %v2654_v26  ;;  %v12556_v14 = vpop.f32.mrb[125].mxu1 }
 0x1f2   :  { %v2864_v56 = vmax.f32 %v12550_v53, %v12552_v62 }
 0x1f3   :  { %v2863_v17 = vmax.f32 %v12554_v38, %v12556_v14  ;;  %v8241_v39 = vpop.f32.mrb[126].mxu0 }
 0x1f4   :  { %v12562_v50 = vmax.f32 %v2510_v46, %v8241_v39  ;;  %v2664_v63 = vpop.f32.mrb[127].mxu0  ;;  %v12564_v2 = vpop.f32.mrb[126].mxu1  ;;  %v4525_v39 = vld [vmem:[%s13357_s3 + $0x10] sm:$0xff] }
 0x1f5   :  { %v12566_v55 = vmax.f32 %v2509_v57, %v2664_v63  ;;  %v12568_v8 = vpop.f32.mrb[127].mxu1  ;;  %v9750_v0 = vpack.c.bf16 %v4526_v22, %v4525_v39 }
 0x1f6   :  { %v2866_v19 = vmax.f32 %v12562_v50, %v12564_v2 }
 0x1f7   :  { %v2865_v59 = vmax.f32 %v12566_v55, %v12568_v8  ;;  %v8332_v33 = vpop.f32.mrb[128].mxu0  ;;  %9751 = vmatpush3.bf16.msra.mxu1 %v9750_v0 }
 0x1f8   :  { %v12574_v60 = vmax.f32 %v2852_v18, %v8332_v33  ;;  %v2950_v6 = vpop.f32.mrb[129].mxu0  ;;  %v12576_v3 = vpop.f32.mrb[128].mxu1  ;;  %v4539_v18 = vld [vmem:[%s13357_s3 + $0x80] sm:$0xff]  ;;  %9752 = vmatprep.subr.bf16.mxu1 %v9815_v43 }
 0x1f9   :  { %v12578_v46 = vmax.f32 %v2851_v21, %v2950_v6  ;;  %v12580_v12 = vpop.f32.mrb[129].mxu1  ;;  %v4540_v21 = vld [vmem:[%s13357_s3 + $0x88] sm:$0xff] }
 0x1fa   :  { %v3208_v57 = vmax.f32 %v12574_v60, %v12576_v3 }
 0x1fb   :  { %v3207_v34 = vmax.f32 %v12578_v46, %v12580_v12  ;;  %v8335_v37 = vpop.f32.mrb[130].mxu0 }
 0x1fc   :  { %v12586_v9 = vmax.f32 %v2854_v24, %v8335_v37  ;;  %v2960_v23 = vpop.f32.mrb[131].mxu0  ;;  %v12588_v4 = vpop.f32.mrb[130].mxu1  ;;  %v9774_v24 = vpack.c.bf16 %v4540_v21, %v4539_v18 }
 0x1fd   :  { %v12599_v61 = vmax.f32 %v2853_v5, %v2960_v23  ;;  %v12601_v7 = vpop.f32.mrb[131].mxu1 }
 0x1fe   :  { %v3210_v58 = vmax.f32 %v12586_v9, %v12588_v4  ;;  %9775 = vmatpush3.bf16.msra.mxu0 %v9774_v24 }
 0x1ff   :  { %v3209_v1 = vmax.f32 %v12599_v61, %v12601_v7  ;;  %v8338_v51 = vpop.f32.mrb[132].mxu0  ;;  %9779 = vmatprep.subr.bf16.mxu0 %v9815_v43 }
 0x200   :  { %v12612_v32 = vmax.f32 %v2856_v35, %v8338_v51  ;;  %v2970_v31 = vpop.f32.mrb[133].mxu0  ;;  %v12614_v5 = vpop.f32.mrb[132].mxu1 }
 0x201   :  { %v12620_v29 = vmax.f32 %v2855_v10, %v2970_v31  ;;  %v12622_v26 = vpop.f32.mrb[133].mxu1 }
 0x202   :  { %v3212_v45 = vmax.f32 %v12612_v32, %v12614_v5 }
 0x203   :  { %v3211_v35 = vmax.f32 %v12620_v29, %v12622_v26  ;;  %v8341_v10 = vpop.f32.mrb[134].mxu0 }
 0x204   :  { %v12641_v63 = vmax.f32 %v2858_v42, %v8341_v10  ;;  %v2980_v33 = vpop.f32.mrb[135].mxu0  ;;  %v12643_v6 = vpop.f32.mrb[134].mxu1 }
 0x205   :  { %v12648_v37 = vmax.f32 %v2857_v25, %v2980_v33  ;;  %v12650_v23 = vpop.f32.mrb[135].mxu1 }
 0x206   :  { %v3214_v18 = vmax.f32 %v12641_v63, %v12643_v6 }
 0x207   :  { %v3213_v49 = vmax.f32 %v12648_v37, %v12650_v23  ;;  %v8344_v11 = vpop.f32.mrb[136].mxu0 }
 0x208   :  { %v12660_v42 = vmax.f32 %v2860_v40, %v8344_v11  ;;  %v2990_v21 = vpop.f32.mrb[137].mxu0  ;;  %v12662_v13 = vpop.f32.mrb[136].mxu1 }
 0x209   :  { %v12667_v16 = vmax.f32 %v2859_v54, %v2990_v21  ;;  %v12669_v25 = vpop.f32.mrb[137].mxu1 }
 0x20a   :  { %v3216_v24 = vmax.f32 %v12660_v42, %v12662_v13 }
 0x20b   :  { %v3215_v51 = vmax.f32 %v12667_v16, %v12669_v25  ;;  %v8347_v32 = vpop.f32.mrb[138].mxu0 }
 0x20c   :  { %v12678_v27 = vmax.f32 %v2862_v41, %v8347_v32  ;;  %v3000_v15 = vpop.f32.mrb[139].mxu0  ;;  %v12680_v40 = vpop.f32.mrb[138].mxu1 }
 0x20d   :  { %v12685_v28 = vmax.f32 %v2861_v48, %v3000_v15  ;;  %v12687_v47 = vpop.f32.mrb[139].mxu1 }
 0x20e   :  { %v3218_v54 = vmax.f32 %v12678_v27, %v12680_v40 }
 0x20f   :  { %v3217_v31 = vmax.f32 %v12685_v28, %v12687_v47  ;;  %v8350_v5 = vpop.f32.mrb[140].mxu0 }
 0x210   :  { %v12696_v30 = vmax.f32 %v2864_v56, %v8350_v5  ;;  %v3010_v44 = vpop.f32.mrb[141].mxu0  ;;  %v12698_v41 = vpop.f32.mrb[140].mxu1 }
 0x211   :  { %v12703_v20 = vmax.f32 %v2863_v17, %v3010_v44  ;;  %v12705_v36 = vpop.f32.mrb[141].mxu1 }
 0x212   :  { %v3220_v48 = vmax.f32 %v12696_v30, %v12698_v41 }
 0x213   :  { %v3219_v39 = vmax.f32 %v12703_v20, %v12705_v36  ;;  %v8353_v22 = vpop.f32.mrb[142].mxu0 }
 0x214   :  { %v12714_v53 = vmax.f32 %v2866_v19, %v8353_v22  ;;  %v3020_v62 = vpop.f32.mrb[143].mxu0  ;;  %v12716_v56 = vpop.f32.mrb[142].mxu1 }
 0x215   :  { %v12721_v38 = vmax.f32 %v2865_v59, %v3020_v62  ;;  %v12723_v14 = vpop.f32.mrb[143].mxu1 }
 0x216   :  { %v3222_v17 = vmax.f32 %v12714_v53, %v12716_v56 }
 0x217   :  { %v3221_v0 = vmax.f32 %v12721_v38, %v12723_v14  ;;  %v8444_v10 = vpop.f32.mrb[144].mxu0 }
 0x218   :  { %v12732_v50 = vmax.f32 %v3208_v57, %v8444_v10  ;;  %v3306_v2 = vpop.f32.mrb[145].mxu0  ;;  %v12734_v19 = vpop.f32.mrb[144].mxu1 }
 0x219   :  { %v12739_v55 = vmax.f32 %v3207_v34, %v3306_v2  ;;  %v12741_v8 = vpop.f32.mrb[145].mxu1 }
 0x21a   :  { %v3564_v59 = vmax.f32 %v12732_v50, %v12734_v19 }
 0x21b   :  { %v3563_v63 = vmax.f32 %v12739_v55, %v12741_v8  ;;  %v8447_v33 = vpop.f32.mrb[146].mxu0 }
 0x21c   :  { %v12750_v60 = vmax.f32 %v3210_v58, %v8447_v33  ;;  %v3316_v3 = vpop.f32.mrb[147].mxu0  ;;  %v12752_v57 = vpop.f32.mrb[146].mxu1 }
 0x21d   :  { %v12757_v46 = vmax.f32 %v3209_v1, %v3316_v3  ;;  %v12759_v12 = vpop.f32.mrb[147].mxu1 }
 0x21e   :  { %v3566_v34 = vmax.f32 %v12750_v60, %v12752_v57 }
 0x21f   :  { %v3565_v6 = vmax.f32 %v12757_v46, %v12759_v12  ;;  %v8450_v37 = vpop.f32.mrb[148].mxu0 }
 0x220   :  { %v12765_v9 = vmax.f32 %v3212_v45, %v8450_v37  ;;  %v3326_v4 = vpop.f32.mrb[149].mxu0  ;;  %v12767_v58 = vpop.f32.mrb[148].mxu1 }
 0x221   :  { %v12772_v61 = vmax.f32 %v3211_v35, %v3326_v4  ;;  %v12774_v7 = vpop.f32.mrb[149].mxu1 }
 0x222   :  { %v3568_v1 = vmax.f32 %v12765_v9, %v12767_v58 }
 0x223   :  { %v3567_v23 = vmax.f32 %v12772_v61, %v12774_v7  ;;  %v8453_v11 = vpop.f32.mrb[150].mxu0 }
 0x224   :  { %v12780_v42 = vmax.f32 %v3214_v18, %v8453_v11  ;;  %v3336_v45 = vpop.f32.mrb[151].mxu0  ;;  %v12782_v21 = vpop.f32.mrb[150].mxu1 }
 0x225   :  { %v12784_v13 = vmax.f32 %v3213_v49, %v3336_v45  ;;  %v12786_v16 = vpop.f32.mrb[151].mxu1 }
 0x226   :  { %v3570_v29 = vmax.f32 %v12780_v42, %v12782_v21 }
 0x227   :  { %v3569_v26 = vmax.f32 %v12784_v13, %v12786_v16  ;;  %v8456_v35 = vpop.f32.mrb[152].mxu0 }
 0x228   :  { %v12792_v25 = vmax.f32 %v3216_v24, %v8456_v35  ;;  %v3346_v32 = vpop.f32.mrb[153].mxu0  ;;  %v12794_v27 = vpop.f32.mrb[152].mxu1 }
 0x229   :  { %v12796_v18 = vmax.f32 %v3215_v51, %v3346_v32  ;;  %v12798_v15 = vpop.f32.mrb[153].mxu1 }
 0x22a   :  { %v3572_v49 = vmax.f32 %v12792_v25, %v12794_v27 }
 0x22b   :  { %v3571_v40 = vmax.f32 %v12796_v18, %v12798_v15  ;;  %v8459_v28 = vpop.f32.mrb[154].mxu0 }
 0x22c   :  { %v12804_v47 = vmax.f32 %v3218_v54, %v8459_v28  ;;  %v3356_v5 = vpop.f32.mrb[155].mxu0  ;;  %v12806_v30 = vpop.f32.mrb[154].mxu1 }
 0x22d   :  { %v12808_v24 = vmax.f32 %v3217_v31, %v3356_v5  ;;  %v12810_v44 = vpop.f32.mrb[155].mxu1 }
 0x22e   :  { %v3574_v51 = vmax.f32 %v12804_v47, %v12806_v30 }
 0x22f   :  { %v3573_v41 = vmax.f32 %v12808_v24, %v12810_v44  ;;  %v8462_v20 = vpop.f32.mrb[156].mxu0 }
 0x230   :  { %v12816_v36 = vmax.f32 %v3220_v48, %v8462_v20  ;;  %v3366_v22 = vpop.f32.mrb[157].mxu0  ;;  %v12818_v53 = vpop.f32.mrb[156].mxu1 }
 0x231   :  { %v12820_v54 = vmax.f32 %v3219_v39, %v3366_v22  ;;  %v12822_v62 = vpop.f32.mrb[157].mxu1 }
 0x232   :  { %v3576_v31 = vmax.f32 %v12816_v36, %v12818_v53 }
 0x233   :  { %v3575_v56 = vmax.f32 %v12820_v54, %v12822_v62  ;;  %v8465_v38 = vpop.f32.mrb[158].mxu0 }
 0x234   :  { %v12828_v14 = vmax.f32 %v3222_v17, %v8465_v38  ;;  %v3376_v10 = vpop.f32.mrb[159].mxu0  ;;  %v12830_v50 = vpop.f32.mrb[158].mxu1 }
 0x235   :  { %v12832_v48 = vmax.f32 %v3221_v0, %v3376_v10  ;;  %v12834_v2 = vpop.f32.mrb[159].mxu1 }
 0x236   :  { %v3578_v39 = vmax.f32 %v12828_v14, %v12830_v50 }
 0x237   :  { %v3577_v19 = vmax.f32 %v12832_v48, %v12834_v2  ;;  %v8556_v55 = vpop.f32.mrb[160].mxu0 }
 0x238   :  { %v12840_v8 = vmax.f32 %v3564_v59, %v8556_v55  ;;  %v3662_v33 = vpop.f32.mrb[161].mxu0  ;;  %v12842_v60 = vpop.f32.mrb[160].mxu1 }
 0x239   :  { %v12844_v17 = vmax.f32 %v3563_v63, %v3662_v33  ;;  %v12846_v3 = vpop.f32.mrb[161].mxu1 }
 0x23a   :  { %v3920_v0 = vmax.f32 %v12840_v8, %v12842_v60 }
 0x23b   :  { %v3919_v57 = vmax.f32 %v12844_v17, %v12846_v3  ;;  %v8559_v46 = vpop.f32.mrb[162].mxu0 }
 0x23c   :  { %v12852_v12 = vmax.f32 %v3566_v34, %v8559_v46  ;;  %v3672_v37 = vpop.f32.mrb[163].mxu0  ;;  %v12854_v9 = vpop.f32.mrb[162].mxu1 }
 0x23d   :  { %v12856_v59 = vmax.f32 %v3565_v6, %v3672_v37  ;;  %v12858_v4 = vpop.f32.mrb[163].mxu1 }
 0x23e   :  { %v3922_v63 = vmax.f32 %v12852_v12, %v12854_v9 }
 0x23f   :  { %v3921_v58 = vmax.f32 %v12856_v59, %v12858_v4  ;;  %v8562_v61 = vpop.f32.mrb[164].mxu0 }
 0x240   :  { %v12864_v7 = vmax.f32 %v3568_v1, %v8562_v61  ;;  %v3682_v11 = vpop.f32.mrb[165].mxu0  ;;  %v12866_v42 = vpop.f32.mrb[164].mxu1 }
 0x241   :  { %v12868_v34 = vmax.f32 %v3567_v23, %v3682_v11  ;;  %v12870_v45 = vpop.f32.mrb[165].mxu1 }
 0x242   :  { %v3924_v6 = vmax.f32 %v12864_v7, %v12866_v42 }
 0x243   :  { %v3923_v21 = vmax.f32 %v12868_v34, %v12870_v45  ;;  %v8565_v13 = vpop.f32.mrb[166].mxu0 }
 0x244   :  { %v12876_v16 = vmax.f32 %v3570_v29, %v8565_v13  ;;  %v3692_v35 = vpop.f32.mrb[167].mxu0  ;;  %v12878_v25 = vpop.f32.mrb[166].mxu1 }
 0x245   :  { %v12880_v1 = vmax.f32 %v3569_v26, %v3692_v35  ;;  %v12882_v32 = vpop.f32.mrb[167].mxu1 }
 0x246   :  { %v3926_v23 = vmax.f32 %v12876_v16, %v12878_v25 }
 0x247   :  { %v3925_v27 = vmax.f32 %v12880_v1, %v12882_v32  ;;  %v8568_v18 = vpop.f32.mrb[168].mxu0 }
 0x248   :  { %v12888_v15 = vmax.f32 %v3572_v49, %v8568_v18  ;;  %v3702_v28 = vpop.f32.mrb[169].mxu0  ;;  %v12890_v47 = vpop.f32.mrb[168].mxu1 }
 0x249   :  { %v12892_v29 = vmax.f32 %v3571_v40, %v3702_v28  ;;  %v12894_v5 = vpop.f32.mrb[169].mxu1 }
 0x24a   :  { %v3928_v26 = vmax.f32 %v12888_v15, %v12890_v47 }
 0x24b   :  { %v3927_v30 = vmax.f32 %v12892_v29, %v12894_v5  ;;  %v8571_v24 = vpop.f32.mrb[170].mxu0 }
 0x24c   :  { %v12900_v44 = vmax.f32 %v3574_v51, %v8571_v24  ;;  %v3712_v20 = vpop.f32.mrb[171].mxu0  ;;  %v12902_v36 = vpop.f32.mrb[170].mxu1 }
 0x24d   :  { %v12904_v49 = vmax.f32 %v3573_v41, %v3712_v20  ;;  %v12906_v22 = vpop.f32.mrb[171].mxu1 }
 0x24e   :  { %v3930_v40 = vmax.f32 %v12900_v44, %v12902_v36 }
 0x24f   :  { %v3929_v53 = vmax.f32 %v12904_v49, %v12906_v22  ;;  %v8574_v54 = vpop.f32.mrb[172].mxu0 }
 0x250   :  { %v12912_v62 = vmax.f32 %v3576_v31, %v8574_v54  ;;  %v3722_v38 = vpop.f32.mrb[173].mxu0  ;;  %v12914_v14 = vpop.f32.mrb[172].mxu1 }
 0x251   :  { %v12916_v51 = vmax.f32 %v3575_v56, %v3722_v38  ;;  %v12918_v10 = vpop.f32.mrb[173].mxu1 }
 0x252   :  { %v3932_v41 = vmax.f32 %v12912_v62, %v12914_v14 }
 0x253   :  { %v3931_v50 = vmax.f32 %v12916_v51, %v12918_v10  ;;  %v8577_v48 = vpop.f32.mrb[174].mxu0 }
 0x254   :  { %v12924_v2 = vmax.f32 %v3578_v39, %v8577_v48  ;;  %v3732_v55 = vpop.f32.mrb[175].mxu0  ;;  %v12926_v8 = vpop.f32.mrb[174].mxu1 }
 0x255   :  { %v12928_v31 = vmax.f32 %v3577_v19, %v3732_v55  ;;  %v12930_v33 = vpop.f32.mrb[175].mxu1 }
 0x256   :  { %v3934_v56 = vmax.f32 %v12924_v2, %v12926_v8 }
 0x257   :  { %v3933_v60 = vmax.f32 %v12928_v31, %v12930_v33  ;;  %v8668_v17 = vpop.f32.mrb[176].mxu0 }
 0x258   :  { %v12936_v3 = vmax.f32 %v3920_v0, %v8668_v17  ;;  %v4018_v46 = vpop.f32.mrb[177].mxu0  ;;  %v12938_v12 = vpop.f32.mrb[176].mxu1 }
 0x259   :  { %v12940_v39 = vmax.f32 %v3919_v57, %v4018_v46  ;;  %v12942_v37 = vpop.f32.mrb[177].mxu1 }
 0x25a   :  { %v4276_v19 = vmax.f32 %v12936_v3, %v12938_v12 }
 0x25b   :  { %v4275_v9 = vmax.f32 %v12940_v39, %v12942_v37  ;;  %v8671_v59 = vpop.f32.mrb[178].mxu0  ;;  %v13035_v37 = vld [vmem:[%s13358_s2] ss:$0 sm:$0xff] }
 0x25c   :  { %v12948_v4 = vmax.f32 %v3922_v63, %v8671_v59  ;;  %v4028_v61 = vpop.f32.mrb[179].mxu0  ;;  %v12950_v7 = vpop.f32.mrb[178].mxu1 }
 0x25d   :  { %v12952_v0 = vmax.f32 %v3921_v58, %v4028_v61  ;;  %v12954_v11 = vpop.f32.mrb[179].mxu1 }
 0x25e   :  { %v4278_v57 = vmax.f32 %v12948_v4, %v12950_v7 }
 0x25f   :  { %v4277_v42 = vmax.f32 %v12952_v0, %v12954_v11  ;;  %v8674_v34 = vpop.f32.mrb[180].mxu0  ;;  %v4547_v11 = vld [vmem:[%s13357_s3 + $0xc0] sm:$0xff] }
 0x260   :  { %v12960_v45 = vmax.f32 %v3924_v6, %v8674_v34  ;;  %v4038_v13 = vpop.f32.mrb[181].mxu0  ;;  %v12962_v16 = vpop.f32.mrb[180].mxu1 }
 0x261   :  { %v12964_v63 = vmax.f32 %v3923_v21, %v4038_v13  ;;  %v12966_v35 = vpop.f32.mrb[181].mxu1 }
 0x262   :  { %v4280_v58 = vmax.f32 %v12960_v45, %v12962_v16  ;;  %v4523_v45 = vld [vmem:[%s13357_s3] sm:$0xff]  ;;  %v4524_v16 = vld [vmem:[%s13357_s3 + $0x8] sm:$0xff] }
 0x263   :  { %v4279_v25 = vmax.f32 %v12964_v63, %v12966_v35  ;;  %v8677_v1 = vpop.f32.mrb[182].mxu0 }
 0x264   :  { %v12972_v32 = vmax.f32 %v3926_v23, %v8677_v1  ;;  %v4048_v18 = vpop.f32.mrb[183].mxu0  ;;  %v12974_v15 = vpop.f32.mrb[182].mxu1 }
 0x265   :  { %v12976_v6 = vmax.f32 %v3925_v27, %v4048_v18  ;;  %v12978_v28 = vpop.f32.mrb[183].mxu1  ;;  %v4543_v18 = vld [vmem:[%s13357_s3 + $0xa0] sm:$0xff] }
 0x266   :  { %v4282_v21 = vmax.f32 %v12972_v32, %v12974_v15  ;;  %v9753_v15 = vpack.c.bf16 %v4524_v16, %v4523_v45 }
 0x267   :  { %v4281_v47 = vmax.f32 %v12976_v6, %v12978_v28  ;;  %v8680_v29 = vpop.f32.mrb[184].mxu0 }
 0x268   :  { %v12984_v5 = vmax.f32 %v3928_v26, %v8680_v29  ;;  %v4058_v24 = vpop.f32.mrb[185].mxu0  ;;  %v12986_v44 = vpop.f32.mrb[184].mxu1 }
 0x269   :  { %v12988_v23 = vmax.f32 %v3927_v30, %v4058_v24  ;;  %v12990_v20 = vpop.f32.mrb[185].mxu1 }
 0x26a   :  { %v4284_v27 = vmax.f32 %v12984_v5, %v12986_v44 }
 0x26b   :  { %v4283_v36 = vmax.f32 %v12988_v23, %v12990_v20  ;;  %v8683_v49 = vpop.f32.mrb[186].mxu0  ;;  %v4559_v20 = vld [vmem:[%s13357_s3 + $0x120] sm:$0xff] }
 0x26c   :  { %v12996_v22 = vmax.f32 %v3930_v40, %v8683_v49  ;;  %v4068_v54 = vpop.f32.mrb[187].mxu0  ;;  %v12998_v62 = vpop.f32.mrb[186].mxu1 }
 0x26d   :  { %v13000_v26 = vmax.f32 %v3929_v53, %v4068_v54  ;;  %v13002_v38 = vpop.f32.mrb[187].mxu1 }
 0x26e   :  { %v4286_v30 = vmax.f32 %v12996_v22, %v12998_v62 }
 0x26f   :  { %v4285_v14 = vmax.f32 %v13000_v26, %v13002_v38  ;;  %v8686_v51 = vpop.f32.mrb[188].mxu0 }
 0x270   :  { %v13008_v10 = vmax.f32 %v3932_v41, %v8686_v51  ;;  %v4078_v48 = vpop.f32.mrb[189].mxu0  ;;  %v13010_v2 = vpop.f32.mrb[188].mxu1 }
 0x271   :  { %v13012_v40 = vmax.f32 %v3931_v50, %v4078_v48  ;;  %v13014_v55 = vpop.f32.mrb[189].mxu1 }
 0x272   :  { %v4288_v53 = vmax.f32 %v13008_v10, %v13010_v2 }
 0x273   :  { %v4287_v8 = vmax.f32 %v13012_v40, %v13014_v55  ;;  %v8689_v31 = vpop.f32.mrb[190].mxu0 }
 0x274   :  { %v13020_v33 = vmax.f32 %v3934_v56, %v8689_v31  ;;  %v4088_v17 = vpop.f32.mrb[191].mxu0  ;;  %v13022_v3 = vpop.f32.mrb[190].mxu1 }
 0x275   :  { %v13024_v41 = vmax.f32 %v3933_v60, %v4088_v17  ;;  %v13026_v46 = vpop.f32.mrb[191].mxu1 }
 0x276   :  { %v4290_v50 = vmax.f32 %v13020_v33, %v13022_v3 }
 0x277   :  { %v4289_v12 = vmax.f32 %v13024_v41, %v13026_v46  ;;  %v8780_v39 = vpop.f32.mrb[192].mxu0  ;;  %v4527_v46 = vld [vmem:[%s13357_s3 + $0x20] sm:$0xff] }
 0x278   :  { %v4454_v56 = vmax.f32 %v4276_v19, %v8780_v39  ;;  %v4374_v59 = vpop.f32.mrb[193].mxu0  ;;  %v4544_v19 = vld [vmem:[%s13357_s3 + $0xa8] sm:$0xff] }
 0x279   :  { %v4453_v4 = vmax.f32 %v4275_v9, %v4374_v59  ;;  %v9780_v51 = vpack.c.bf16 %v4544_v19, %v4543_v18 }
 0x27a   :  { %v13038_v60 = vadd.f32 %v13035_v37, %v4454_v56 }
 0x27b   :  { %v13041_v61 = vadd.f32 %v13035_v37, %v4453_v4  ;;  %v8783_v7 = vpop.f32.mrb[194].mxu0 }
 0x27c   :  { %v4493_v34 = vmax.f32 %v13038_v60, 0.0  ;;  %v4456_v13 = vmax.f32 %v4278_v57, %v8783_v7  ;;  %v4384_v1 = vpop.f32.mrb[195].mxu0 }
 0x27d   :  { %v4492_v9 = vmax.f32 %v13041_v61, 0.0  ;;  %v4455_v29 = vmax.f32 %v4277_v42, %v4384_v1  ;;  %v4548_v42 = vld [vmem:[%s13357_s3 + $0xc8] sm:$0xff] }
 0x27e   :  { %v4479_v24 = vadd.f32 %v13035_v37, %v4456_v13  ;;  %v9786_v35 = vpack.c.bf16 %v4548_v42, %v4547_v11  ;;  %v4551_v13 = vld [vmem:[%s13357_s3 + $0xe0] sm:$0xff]  ;;  %v4552_v1 = vld [vmem:[%s13357_s3 + $0xe8] sm:$0xff] }
 0x27f   :  { %v4508_v57 = vmax.f32 %v4492_v9, %v4493_v34  ;;  %v13060_v49 = vadd.f32 %v13035_v37, %v4455_v29  ;;  %v8786_v54 = vpop.f32.mrb[196].mxu0 }
 0x280   :  { %v4495_v48 = vmax.f32 %v4479_v24, 0.0  ;;  %v4458_v31 = vmax.f32 %v4280_v58, %v8786_v54  ;;  %v4394_v0 = vpop.f32.mrb[197].mxu0  ;;  %v9792_v54 = vpack.c.bf16 %v4552_v1, %v4551_v13 }
 0x281   :  { %v4494_v17 = vmax.f32 %v13060_v49, 0.0  ;;  %v4457_v39 = vmax.f32 %v4279_v25, %v4394_v0 }
 0x282   :  { %v4481_v56 = vadd.f32 %v13035_v37, %v4458_v31  ;;  %8863 = vmatmul.mubr.msk.f32.vlgmr.msra.gmra.mrb[208].mxu0 %vm4565_vm1, %v4495_v48 }
 0x283   :  { %v4509_v58 = vmax.f32 %v4508_v57, %v4494_v17  ;;  %v13086_v59 = vadd.f32 %v13035_v37, %v4457_v39  ;;  %v8789_v63 = vpop.f32.mrb[198].mxu0  ;;  %9781 = vmatpush3.bf16.msra.mxu0 %v9780_v51  ;;  %8876 = vmatprep.mubr.msk.f32.mxu0 %vm9816_vm0, %v9817_v52 }
 0x284   :  { %v4497_v25 = vmax.f32 %v4481_v56, 0.0  ;;  %v4460_v4 = vmax.f32 %v4282_v21, %v8789_v63  ;;  %v4404_v7 = vpop.f32.mrb[199].mxu0  ;;  %9785 = vmatprep.subr.bf16.mxu0 %v9815_v43 }
 0x285   :  { %v13100_v18 = vmax.f32 %v4509_v58, %v4495_v48  ;;  %v4496_v19 = vmax.f32 %v13086_v59, 0.0  ;;  %v4459_v32 = vmax.f32 %v4281_v47, %v4404_v7  ;;  %v4555_v47 = vld [vmem:[%s13357_s3 + $0x100] sm:$0xff]  ;;  %v4556_v48 = vld [vmem:[%s13357_s3 + $0x108] sm:$0xff] }
 0x286   :  { %v4483_v21 = vadd.f32 %v13035_v37, %v4460_v4  ;;  %8877 = vmatmul.mubr.msk.f32.vlgmr.msra.gmra.mrb[210].mxu0 %vm4565_vm1, %v4497_v25  ;;  %v9798_v23 = vpack.c.bf16 %v4556_v48, %v4555_v47  ;;  %v4563_v4 = vld [vmem:[%s13357_s3 + $0x140] sm:$0xff]  ;;  %v4564_v7 = vld [vmem:[%s13357_s3 + $0x148] sm:$0xff]  ;;  %v4529_v47 = vld [vmem:[%s13357_s3 + $0x30] sm:$0xff] }
 0x287   :  { %v4511_v29 = vmax.f32 %v4496_v19, %v4497_v25  ;;  %v13111_v24 = vadd.f32 %v13035_v37, %v4459_v32  ;;  %v8792_v57 = vpop.f32.mrb[200].mxu0  ;;  %8807 = vmatmul.mubr.msk.f32.vlgmr.msra.gmra.mrb[192].mxu1 %vm4565_vm1, %v13100_v18  ;;  %9787 = vmatpush3.bf16.msra.mxu0 %v9786_v35  ;;  %v9810_v32 = vpack.c.bf16 %v4564_v7, %v4563_v4  ;;  %v4530_v48 = vld [vmem:[%s13357_s3 + $0x38] sm:$0xff] }
 0x288   :  { %v4499_v51 = vmax.f32 %v4483_v21, 0.0  ;;  %v4462_v6 = vmax.f32 %v4284_v27, %v8792_v57  ;;  %v4414_v28 = vpop.f32.mrb[201].mxu0  ;;  %8890 = vmatprep.mubr.msk.f32.mxu0 %vm9816_vm0, %v9817_v52  ;;  %9791 = vmatprep.subr.bf16.mxu0 %v9815_v43 }
 0x289   :  { %v4498_v31 = vmax.f32 %v13111_v24, 0.0  ;;  %v4461_v5 = vmax.f32 %v4283_v36, %v4414_v28  ;;  %9754 = vmatpush3.bf16.msra.mxu1 %v9753_v15  ;;  %8813 = vmatprep.mubr.msk.f32.mxu1 %vm9816_vm0, %v9817_v52  ;;  %v4560_v36 = vld [vmem:[%s13357_s3 + $0x128] sm:$0xff] }
 0x28a   :  { %v4485_v44 = vadd.f32 %v13035_v37, %v4462_v6  ;;  %8891 = vmatmul.mubr.msk.f32.vlgmr.msra.gmra.mrb[212].mxu0 %vm4565_vm1, %v4499_v51  ;;  %9755 = vmatprep.subr.bf16.mxu1 %v9815_v43  ;;  %v9804_v35 = vpack.c.bf16 %v4560_v36, %v4559_v20  ;;  %v4534_v20 = vld [vmem:[%s13357_s3 + $0x58] sm:$0xff] }
 0x28b   :  { %v4512_v27 = vmax.f32 %v4511_v29, %v4498_v31  ;;  %v13139_v0 = vadd.f32 %v13035_v37, %v4461_v5  ;;  %v8795_v11 = vpop.f32.mrb[202].mxu0  ;;  %9793 = vmatpush3.bf16.msra.mxu0 %v9792_v54  ;;  %8904 = vmatprep.mubr.msk.f32.mxu0 %vm9816_vm0, %v9817_v52  ;;  %v9759_v5 = vpack.c.bf16 %v4530_v48, %v4529_v47 }
 0x28c   :  { %v4501_v42 = vmax.f32 %v4485_v44, 0.0  ;;  %v4464_v39 = vmax.f32 %v4286_v30, %v8795_v11  ;;  %v4424_v56 = vpop.f32.mrb[203].mxu0  ;;  %9797 = vmatprep.subr.bf16.mxu0 %v9815_v43  ;;  %v4531_v44 = vld [vmem:[%s13357_s3 + $0x40] sm:$0xff] }
 0x28d   :  { %v4513_v45 = vmax.f32 %v4512_v27, %v4499_v51  ;;  %v4500_v16 = vmax.f32 %v13139_v0, 0.0  ;;  %v4463_v58 = vmax.f32 %v4285_v14, %v4424_v56  ;;  %v4532_v27 = vld [vmem:[%s13357_s3 + $0x48] sm:$0xff] }
 0x28e   :  { %v4487_v63 = vadd.f32 %v13035_v37, %v4464_v39  ;;  %8905 = vmatmul.mubr.msk.f32.vlgmr.msra.gmra.mrb[214].mxu0 %vm4565_vm1, %v4501_v42  ;;  %v9762_v11 = vpack.c.bf16 %v4532_v27, %v4531_v44  ;;  %v4536_v39 = vld [vmem:[%s13357_s3 + $0x68] sm:$0xff] }
 0x28f   :  { %v4520_v25 = vmax.f32 %v13100_v18, %v4513_v45  ;;  %v4514_v22 = vmax.f32 %v4500_v16, %v4501_v42  ;;  %v13163_v62 = vadd.f32 %v13035_v37, %v4463_v58  ;;  %v8798_v30 = vpop.f32.mrb[204].mxu0  ;;  %9799 = vmatpush3.bf16.msra.mxu0 %v9798_v23  ;;  %8918 = vmatprep.mubr.msk.f32.mxu0 %vm9816_vm0, %v9817_v52  ;;  %v4533_v23 = vld [vmem:[%s13357_s3 + $0x50] sm:$0xff]  ;;  %v4535_v42 = vld [vmem:[%s13357_s3 + $0x60] sm:$0xff]  ;;  %v4538_v58 = vld [vmem:[%s13357_s3 + $0x78] sm:$0xff] }
 0x290   :  { %v4503_v26 = vmax.f32 %v4487_v63, 0.0  ;;  %v4466_v38 = vmax.f32 %v4288_v53, %v8798_v30  ;;  %v4434_v14 = vpop.f32.mrb[205].mxu0  ;;  %9803 = vmatprep.subr.bf16.mxu0 %v9815_v43  ;;  %v9765_v36 = vpack.c.bf16 %v4534_v20, %v4533_v23  ;;  %v9768_v56 = vpack.c.bf16 %v4536_v39, %v4535_v42  ;;  %v4550_v30 = vld [vmem:[%s13357_s3 + $0xd8] sm:$0xff] }
 0x291   :  { %v4502_v13 = vmax.f32 %v13163_v62, 0.0  ;;  %v4465_v1 = vmax.f32 %v4287_v8, %v4434_v14  ;;  %v4562_v14 = vld [vmem:[%s13357_s3 + $0x138] sm:$0xff] }
 0x292   :  { %v4489_v10 = vadd.f32 %v13035_v37, %v4466_v38  ;;  %8919 = vmatmul.mubr.msk.f32.vlgmr.msra.gmra.mrb[216].mxu0 %vm4565_vm1, %v4503_v26  ;;  %v4558_v38 = vld [vmem:[%s13357_s3 + $0x118] sm:$0xff] }
 0x293   :  { %v4515_v2 = vmax.f32 %v4514_v22, %v4502_v13  ;;  %v13186_v53 = vadd.f32 %v13035_v37, %v4465_v1  ;;  %v8801_v18 = vpop.f32.mrb[206].mxu0  ;;  %9805 = vmatpush3.bf16.msra.mxu0 %v9804_v35  ;;  %8932 = vmatprep.mubr.msk.f32.mxu0 %vm9816_vm0, %v9817_v52  ;;  %v4541_v35 = vld [vmem:[%s13357_s3 + $0x90] sm:$0xff]  ;;  %v4546_v22 = vld [vmem:[%s13357_s3 + $0xb8] sm:$0xff] }
 0x294   :  { %v4505_v15 = vmax.f32 %v4489_v10, 0.0  ;;  %v4468_v40 = vmax.f32 %v4290_v50, %v8801_v18  ;;  %v4444_v55 = vpop.f32.mrb[207].mxu0  ;;  %9809 = vmatprep.subr.bf16.mxu0 %v9815_v43 }
 0x295   :  { %v4516_v8 = vmax.f32 %v4515_v2, %v4503_v26  ;;  %v4504_v21 = vmax.f32 %v13186_v53, 0.0  ;;  %v4467_v29 = vmax.f32 %v4289_v12, %v4444_v55  ;;  %v4528_v12 = vld [vmem:[%s13357_s3 + $0x28] sm:$0xff]  ;;  %v4554_v26 = vld [vmem:[%s13357_s3 + $0xf8] sm:$0xff] }
 0x296   :  { %v4491_v57 = vadd.f32 %v13035_v37, %v4468_v40  ;;  %8933 = vmatmul.mubr.msk.f32.vlgmr.msra.gmra.mrb[218].mxu0 %vm4565_vm1, %v4505_v15  ;;  %v9756_v6 = vpack.c.bf16 %v4528_v12, %v4527_v46 }
 0x297   :  { %v4521_v54 = vmax.f32 %v4520_v25, %v4516_v8  ;;  %v4517_v51 = vmax.f32 %v4504_v21, %v4505_v15  ;;  %v13203_v33 = vadd.f32 %v13035_v37, %v4467_v29  ;;  %9811 = vmatpush3.bf16.msra.mxu0 %v9810_v32  ;;  %8946 = vmatprep.mubr.msk.f32.mxu0 %vm9816_vm0, %v9817_v52  ;;  %v4542_v25 = vld [vmem:[%s13357_s3 + $0x98] sm:$0xff] }
 0x298   :  { %v4507_v3 = vmax.f32 %v4491_v57, 0.0  ;;  %v9777_v61 = vpack.c.bf16 %v4542_v25, %v4541_v35 }
 0x299   :  { %v4506_v50 = vmax.f32 %v13203_v33, 0.0 }
 0x29a   :  { %8947 = vmatmul.mubr.msk.f32.vlgmr.msra.gmra.mrb[220].mxu0 %vm4565_vm1, %v4507_v3 }
 0x29b   :  { %v4518_v41 = vmax.f32 %v4517_v51, %v4506_v50 }
 0x29d   :  { %v4519_v37 = vmax.f32 %v4518_v41, %v4507_v3 }
 0x29f   :  { %v4522_v28 = vmax.f32 %v4521_v54, %v4519_v37 }
 0x2a1   :  { %8814 = vmatmul.mubr.msk.f32.vlgmr.msra.gmra.mrb[194].mxu1 %vm4565_vm1, %v4522_v28 }
 0x2a2   :  { %9757 = vmatpush3.bf16.msra.mxu1 %v9756_v6  ;;  %8820 = vmatprep.mubr.msk.f32.mxu1 %vm9816_vm0, %v9817_v52 }
 0x2a3   :  { %9758 = vmatprep.subr.bf16.mxu1 %v9815_v43 }
 0x2a5   :  { %8821 = vmatmul.mubr.msk.f32.vlgmr.msra.gmra.mrb[196].mxu1 %vm4565_vm1, %v4513_v45  ;;  %v4537_v45 = vld [vmem:[%s13357_s3 + $0x70] sm:$0xff] }
 0x2a6   :  { %9760 = vmatpush3.bf16.msra.mxu1 %v9759_v5  ;;  %8827 = vmatprep.mubr.msk.f32.mxu1 %vm9816_vm0, %v9817_v52  ;;  %v9771_v63 = vpack.c.bf16 %v4538_v58, %v4537_v45 }
 0x2a7   :  { %9761 = vmatprep.subr.bf16.mxu1 %v9815_v43 }
 0x2a9   :  { %8828 = vmatmul.mubr.msk.f32.vlgmr.msra.gmra.mrb[198].mxu1 %vm4565_vm1, %v4516_v8 }
 0x2aa   :  { %9763 = vmatpush3.bf16.msra.mxu1 %v9762_v11  ;;  %8834 = vmatprep.mubr.msk.f32.mxu1 %vm9816_vm0, %v9817_v52 }
 0x2ab   :  { %9764 = vmatprep.subr.bf16.mxu1 %v9815_v43 }
 0x2ad   :  { %8835 = vmatmul.mubr.msk.f32.vlgmr.msra.gmra.mrb[200].mxu1 %vm4565_vm1, %v4519_v37 }
 0x2ae   :  { %9766 = vmatpush3.bf16.msra.mxu1 %v9765_v36  ;;  %8841 = vmatprep.mubr.msk.f32.mxu1 %vm9816_vm0, %v9817_v52 }
 0x2af   :  { %9767 = vmatprep.subr.bf16.mxu1 %v9815_v43 }
 0x2b1   :  { %8842 = vmatmul.mubr.msk.f32.vlgmr.msra.gmra.mrb[202].mxu1 %vm4565_vm1, %v4492_v9  ;;  %v4545_v9 = vld [vmem:[%s13357_s3 + $0xb0] sm:$0xff] }
 0x2b2   :  { %9769 = vmatpush3.bf16.msra.mxu1 %v9768_v56  ;;  %8848 = vmatprep.mubr.msk.f32.mxu1 %vm9816_vm0, %v9817_v52  ;;  %v9783_v60 = vpack.c.bf16 %v4546_v22, %v4545_v9 }
 0x2b3   :  { %9770 = vmatprep.subr.bf16.mxu1 %v9815_v43 }
 0x2b5   :  { %8849 = vmatmul.mubr.msk.f32.vlgmr.msra.gmra.mrb[204].mxu1 %vm4565_vm1, %v4493_v34  ;;  %v4549_v34 = vld [vmem:[%s13357_s3 + $0xd0] sm:$0xff] }
 0x2b6   :  { %9772 = vmatpush3.bf16.msra.mxu1 %v9771_v63  ;;  %8855 = vmatprep.mubr.msk.f32.mxu1 %vm9816_vm0, %v9817_v52  ;;  %v9789_v49 = vpack.c.bf16 %v4550_v30, %v4549_v34 }
 0x2b7   :  { %9776 = vmatprep.subr.bf16.mxu1 %v9815_v43 }
 0x2b9   :  { %8856 = vmatmul.mubr.msk.f32.vlgmr.msra.gmra.mrb[206].mxu1 %vm4565_vm1, %v4494_v17  ;;  %v4553_v17 = vld [vmem:[%s13357_s3 + $0xf0] sm:$0xff] }
 0x2ba   :  { %9778 = vmatpush3.bf16.msra.mxu1 %v9777_v61  ;;  %8869 = vmatprep.mubr.msk.f32.mxu1 %vm9816_vm0, %v9817_v52  ;;  %v9795_v59 = vpack.c.bf16 %v4554_v26, %v4553_v17 }
 0x2bb   :  { %9782 = vmatprep.subr.bf16.mxu1 %v9815_v43 }
 0x2bd   :  { %8870 = vmatmul.mubr.msk.f32.vlgmr.msra.gmra.mrb[208].mxu1 %vm4565_vm1, %v4496_v19  ;;  %v4557_v19 = vld [vmem:[%s13357_s3 + $0x110] sm:$0xff] }
 0x2be   :  { %9784 = vmatpush3.bf16.msra.mxu1 %v9783_v60  ;;  %8883 = vmatprep.mubr.msk.f32.mxu1 %vm9816_vm0, %v9817_v52  ;;  %v9801_v24 = vpack.c.bf16 %v4558_v38, %v4557_v19 }
 0x2bf   :  { %9788 = vmatprep.subr.bf16.mxu1 %v9815_v43 }
 0x2c1   :  { %8884 = vmatmul.mubr.msk.f32.vlgmr.msra.gmra.mrb[210].mxu1 %vm4565_vm1, %v4498_v31  ;;  %v4561_v31 = vld [vmem:[%s13357_s3 + $0x130] sm:$0xff] }
 0x2c2   :  { %9790 = vmatpush3.bf16.msra.mxu1 %v9789_v49  ;;  %8897 = vmatprep.mubr.msk.f32.mxu1 %vm9816_vm0, %v9817_v52  ;;  %v9807_v0 = vpack.c.bf16 %v4562_v14, %v4561_v31  ;;  %v6538_v31 = vld [vmem:[%s13359_s4] ss:$0 sm:$0xff] }
 0x2c3   :  { %9794 = vmatprep.subr.bf16.mxu1 %v9815_v43 }
 0x2c5   :  { %8898 = vmatmul.mubr.msk.f32.vlgmr.msra.gmra.mrb[212].mxu1 %vm4565_vm1, %v4500_v16 }
 0x2c6   :  { %9796 = vmatpush3.bf16.msra.mxu1 %v9795_v59  ;;  %8911 = vmatprep.mubr.msk.f32.mxu1 %vm9816_vm0, %v9817_v52 }
 0x2c7   :  { %9800 = vmatprep.subr.bf16.mxu1 %v9815_v43 }
 0x2c9   :  { %8912 = vmatmul.mubr.msk.f32.vlgmr.msra.gmra.mrb[214].mxu1 %vm4565_vm1, %v4502_v13 }
 0x2ca   :  { %9802 = vmatpush3.bf16.msra.mxu1 %v9801_v24  ;;  %8925 = vmatprep.mubr.msk.f32.mxu1 %vm9816_vm0, %v9817_v52 }
 0x2cb   :  { %9806 = vmatprep.subr.bf16.mxu1 %v9815_v43 }
 0x2cd   :  { %8926 = vmatmul.mubr.msk.f32.vlgmr.msra.gmra.mrb[216].mxu1 %vm4565_vm1, %v4504_v21 }
 0x2ce   :  { %9808 = vmatpush3.bf16.msra.mxu1 %v9807_v0  ;;  %8939 = vmatprep.mubr.msk.f32.mxu1 %vm9816_vm0, %v9817_v52 }
 0x2d1   :  { %8940 = vmatmul.mubr.msk.f32.vlgmr.msra.gmra.mrb[218].mxu1 %vm4565_vm1, %v4506_v50 }
 0x355   :  { %v5225_v16 = vpop.f32.mrb[208].mxu0 }
 0x356   :  { %v8864_v62 = vpop.f32.mrb[209].mxu0 }
 0x359   :  { %v5373_v4 = vpop.f32.mrb[210].mxu0 }
 0x35a   :  { %v4635_v7 = vpop.f32.mrb[192].mxu1  ;;  %v8878_v13 = vpop.f32.mrb[211].mxu0 }
 0x35b   :  { %v8808_v1 = vpop.f32.mrb[193].mxu1 }
 0x35d   :  { %v5521_v10 = vpop.f32.mrb[212].mxu0 }
 0x35e   :  { %v8892_v43 = vpop.f32.mrb[213].mxu0 }
 0x361   :  { %v5669_v2 = vpop.f32.mrb[214].mxu0 }
 0x362   :  { %v8906_v53 = vpop.f32.mrb[215].mxu0 }
 0x365   :  { %v5817_v18 = vpop.f32.mrb[216].mxu0 }
 0x366   :  { %v8920_v32 = vpop.f32.mrb[217].mxu0 }
 0x369   :  { %v5965_v15 = vpop.f32.mrb[218].mxu0 }
 0x36a   :  { %v8934_v40 = vpop.f32.mrb[219].mxu0 }
 0x36d   :  { %v6113_v55 = vpop.f32.mrb[220].mxu0 }
 0x36e   :  { %v8948_v52 = vpop.f32.mrb[221].mxu0 }
 0x374   :  { %v4708_v8 = vpop.f32.mrb[194].mxu1 }
 0x375   :  { %v4709_v21 = vadd.f32 %v4708_v8, %v4635_v7  ;;  %v8815_v29 = vpop.f32.mrb[195].mxu1 }
 0x378   :  { %v4781_v57 = vpop.f32.mrb[196].mxu1 }
 0x379   :  { %v4785_v54 = vadd.f32 %v4781_v57, %v4709_v21  ;;  %v8822_v51 = vpop.f32.mrb[197].mxu1 }
 0x37c   :  { %v4855_v33 = vpop.f32.mrb[198].mxu1 }
 0x37d   :  { %v4859_v3 = vadd.f32 %v4855_v33, %v4785_v54  ;;  %v8829_v50 = vpop.f32.mrb[199].mxu1 }
 0x380   :  { %v4929_v41 = vpop.f32.mrb[200].mxu1 }
 0x381   :  { %v4933_v46 = vadd.f32 %v4929_v41, %v4859_v3  ;;  %v8836_v12 = vpop.f32.mrb[201].mxu1 }
 0x384   :  { %v5003_v37 = vpop.f32.mrb[202].mxu1 }
 0x385   :  { %v5007_v6 = vadd.f32 %v5003_v37, %v4933_v46  ;;  %v8843_v28 = vpop.f32.mrb[203].mxu1 }
 0x388   :  { %v5077_v47 = vpop.f32.mrb[204].mxu1 }
 0x389   :  { %v5081_v48 = vadd.f32 %v5077_v47, %v5007_v6  ;;  %v8850_v5 = vpop.f32.mrb[205].mxu1 }
 0x38c   :  { %v5151_v44 = vpop.f32.mrb[206].mxu1 }
 0x38d   :  { %v5155_v27 = vadd.f32 %v5151_v44, %v5081_v48  ;;  %v8857_v11 = vpop.f32.mrb[207].mxu1 }
 0x38f   :  { %v5229_v23 = vadd.f32 %v5225_v16, %v5155_v27 }
 0x390   :  { %v5299_v20 = vpop.f32.mrb[208].mxu1 }
 0x391   :  { %v5303_v36 = vadd.f32 %v5299_v20, %v5229_v23  ;;  %v8871_v42 = vpop.f32.mrb[209].mxu1 }
 0x393   :  { %v5377_v39 = vadd.f32 %v5373_v4, %v5303_v36 }
 0x394   :  { %v5447_v56 = vpop.f32.mrb[210].mxu1 }
 0x395   :  { %v5451_v45 = vadd.f32 %v5447_v56, %v5377_v39  ;;  %v8885_v58 = vpop.f32.mrb[211].mxu1 }
 0x397   :  { %v5525_v63 = vadd.f32 %v5521_v10, %v5451_v45 }
 0x398   :  { %v5595_v35 = vpop.f32.mrb[212].mxu1 }
 0x399   :  { %v5599_v25 = vadd.f32 %v5595_v35, %v5525_v63  ;;  %v8899_v61 = vpop.f32.mrb[213].mxu1 }
 0x39b   :  { %v5673_v9 = vadd.f32 %v5669_v2, %v5599_v25 }
 0x39c   :  { %v5743_v22 = vpop.f32.mrb[214].mxu1 }
 0x39d   :  { %v5747_v60 = vadd.f32 %v5743_v22, %v5673_v9  ;;  %v8913_v34 = vpop.f32.mrb[215].mxu1 }
 0x39f   :  { %v5821_v30 = vadd.f32 %v5817_v18, %v5747_v60 }
 0x3a0   :  { %v5891_v49 = vpop.f32.mrb[216].mxu1 }
 0x3a1   :  { %v5895_v17 = vadd.f32 %v5891_v49, %v5821_v30  ;;  %v8927_v26 = vpop.f32.mrb[217].mxu1 }
 0x3a3   :  { %v5969_v59 = vadd.f32 %v5965_v15, %v5895_v17 }
 0x3a4   :  { %v6039_v19 = vpop.f32.mrb[218].mxu1 }
 0x3a5   :  { %v6043_v38 = vadd.f32 %v6039_v19, %v5969_v59  ;;  %v8941_v24 = vpop.f32.mrb[219].mxu1 }
 0x3a7   :  { %v6117_v14 = vadd.f32 %v6113_v55, %v6043_v38 }
 0x3a9   :  { %v6125_v0 = vadd.f32 %v6538_v31, %v6117_v14 }
 0x3ab   :  { %6127 = vst.msk [vmem:[%s13360_s5] sm:$0xff] %vm6126_vm2, %v6125_v0 }

</bundles_post_ra>
